<compile_context>
chip_gen: v6e
topology: v6e:2x2x1
jax: 0.10.0
libtpu: 0.0.40
codegen_flags: <defaults>
</compile_context>

<pallas_src>
import functools
import math

import jax
import jax.numpy as jnp
from jax import lax
from jax.experimental import pallas as pl
from jax.experimental.pallas import tpu as pltpu


# ----------------------------------------------------------------------------
# Device introspection (memoized; degrades gracefully if lookup fails).
# ----------------------------------------------------------------------------
@functools.lru_cache(maxsize=1)
def _device_kind():
    try:
        return jax.devices()[0].device_kind.lower()
    except Exception:
        return ""


def _lane_pack_target():
    """Row-pack factor so the packed channel width hits the MXU/lane width:
    4*32 = 128 on v5e (and unknown chips), 8*32 = 256 on v6e/v7x."""
    kind = _device_kind()
    return 8 if ("v6" in kind or "v7" in kind) else 4


def _num_tensorcores():
    """Only v7x has 2 TensorCores per chip worth splitting tiny grids for."""
    return 2 if "v7" in _device_kind() else 1


def choose_pack_factor(n_rows):
    p = _lane_pack_target()
    while p > 1 and n_rows % p != 0:
        p //= 2
    return max(p, 1)


_ACTIVATIONS = {
    "tanh": jnp.tanh,
    "relu": lambda v: jnp.maximum(v, 0.0),
    "gelu": jax.nn.gelu,
}


# ----------------------------------------------------------------------------
# Row-tile sizing: target a VMEM byte budget per streamed tile; only return
# multiples of 8 that divide n_rows (or n_rows itself) so no masking/padding
# is ever needed.
# ----------------------------------------------------------------------------
def _tile_rows(n_rows, row_bytes, cap=8192, target_bytes=2 << 20):
    budget = max(8, target_bytes // max(int(row_bytes), 1))
    cap = int(min(cap, budget))
    if n_rows <= cap:
        return n_rows
    t = (cap // 8) * 8
    while t >= 8:
        if n_rows % t == 0:
            return t
        t -= 8
    return n_rows  # fallback: single block


# ----------------------------------------------------------------------------
# Kernel 1: lane-dense fused pointwise channel op on packed rows.
#   y = x @ Wbd + b (+ residual) ; optional activation ; optional fused
#   second affine y = y @ W2bd + b2 (encoder_to_decoder).
# Wbd / W2bd are block-diagonal packed weights built once at parameter prep,
# so all loads/stores are 128/256-lane dense (no masked vst).
# ----------------------------------------------------------------------------
def _pointwise_kernel(*refs, act_fn, has_res, has_second, dot_dtype):
    refs = list(refs)
    x_ref, w_ref, b_ref = refs[0], refs[1], refs[2]
    idx = 3
    r_ref = None
    if has_res:
        r_ref = refs[idx]
        idx += 1
    w2_ref = b2_ref = None
    if has_second:
        w2_ref, b2_ref = refs[idx], refs[idx + 1]
        idx += 2
    o_ref = refs[idx]

    y = jnp.dot(x_ref[...].astype(dot_dtype), w_ref[...].astype(dot_dtype),
                preferred_element_type=jnp.float32)
    y = y + b_ref[...].astype(jnp.float32)
    if has_res:
        y = y + r_ref[...].astype(jnp.float32)   # f32 VPU add (safe on v5e)
    if act_fn is not None:
        y = act_fn(y)                            # f32 EUP op (safe on v5e)
    if has_second:
        y = jnp.dot(y.astype(dot_dtype), w2_ref[...].astype(dot_dtype),
                    preferred_element_type=jnp.float32)
        y = y + b2_ref[...].astype(jnp.float32)
    o_ref[...] = y.astype(o_ref.dtype)


def pointwise_affine(x, w, b, residual=None, w2=None, b2=None, act_fn=None,
                     out_dtype=jnp.float32, dot_dtype=jnp.float32):
    """x: (Np, Kin) packed rows; w: (Kin, Kout) block-diag packed weight;
    b: (Kout,) tiled bias; residual: (Np, Kout) or None; optional fused
    second affine w2 (Kout, Kfin), b2 (Kfin,)."""
    Np, Kin = x.shape
    Kout = w.shape[1]
    has_res = residual is not None
    has_second = w2 is not None
    Kfin = w2.shape[1] if has_second else Kout
    out_isz = jnp.dtype(out_dtype).itemsize

    row_bytes = (Kin * x.dtype.itemsize
                 + (Kout * residual.dtype.itemsize if has_res else 0)
                 + Kfin * out_isz
                 + (Kout * 4 if has_second else 0))
    # Cap the fused-e2d call so the inter-dot intermediate stays small.
    t = _tile_rows(Np, row_bytes, cap=(1024 if has_second else 8192))
    grid = (Np // t,)

    in_specs = [
        pl.BlockSpec((t, Kin), lambda i: (i, 0)),
        pl.BlockSpec((Kin, Kout), lambda i: (0, 0)),
        pl.BlockSpec((1, Kout), lambda i: (0, 0)),
    ]
    args = [x, w, b.reshape(1, Kout)]
    if has_res:
        in_specs.append(pl.BlockSpec((t, Kout), lambda i: (i, 0)))
        args.append(residual)
    if has_second:
        in_specs.append(pl.BlockSpec((Kout, Kfin), lambda i: (0, 0)))
        in_specs.append(pl.BlockSpec((1, Kfin), lambda i: (0, 0)))
        args.extend([w2, b2.reshape(1, Kfin)])

    flops = 2 * Np * Kin * Kout + (2 * Np * Kout * Kfin if has_second else 0)
    trans = Np * Kout if act_fn is not None else 0
    bytes_accessed = int(
        x.size * x.dtype.itemsize + w.size * w.dtype.itemsize + Kout * 4
        + (residual.size * residual.dtype.itemsize if has_res else 0)
        + (w2.size * w2.dtype.itemsize + Kfin * 4 if has_second else 0)
        + Np * Kfin * out_isz)

    # VMEM footprint: double-buffered streamed tiles + resident weights.
    footprint = (2 * t * Kin * x.dtype.itemsize
                 + (2 * t * Kout * residual.dtype.itemsize if has_res else 0)
                 + 2 * t * Kfin * out_isz
                 + (t * Kout * 4 if has_second else 0)
                 + w.size * w.dtype.itemsize
                 + (w2.size * w2.dtype.itemsize if has_second else 0)
                 + 4 * (Kout + Kfin))
    vmem_limit = int(min(max(2 * footprint, 32 << 20), 48 << 20))

    kernel = functools.partial(
        _pointwise_kernel, act_fn=act_fn, has_res=has_res,
        has_second=has_second, dot_dtype=dot_dtype)

    return pl.pallas_call(
        kernel,
        out_shape=jax.ShapeDtypeStruct((Np, Kfin), out_dtype),
        grid=grid,
        in_specs=in_specs,
        out_specs=pl.BlockSpec((t, Kfin), lambda i: (i, 0)),
        compiler_params=pltpu.CompilerParams(
            dimension_semantics=("parallel",),
            vmem_limit_bytes=vmem_limit),
        cost_estimate=pl.CostEstimate(
            flops=int(flops), transcendentals=int(trans),
            bytes_accessed=bytes_accessed),
    )(*args)


# ----------------------------------------------------------------------------
# Kernel 2: spectral mode mixing as a single real batched matmul (2x2 trick).
#   xc: (M, B, 2Cin)  = [xr | xi] per mode (lane-stacked real/imag)
#   wp: (M, 2Cin, 2Cout) = [[wr, wi], [-wi, wr]] per mode (prepacked at init)
#   y : (M, B, 2Cout) = [yr | yi]  -- one stacked output
# ----------------------------------------------------------------------------
def _spectral_mix_kernel(xc_ref, wp_ref, y_ref, *, dot_dtype):
    y = jnp.einsum('mbi,mio->mbo',
                   xc_ref[...].astype(dot_dtype),
                   wp_ref[...].astype(dot_dtype),
                   preferred_element_type=jnp.float32)
    y_ref[...] = y.astype(y_ref.dtype)


def spectral_mode_matmul(xc, wp, dot_dtype=jnp.float32):
    M, B, K2 = xc.shape
    N2 = wp.shape[2]
    # 2 grid steps only on v7x (2 TensorCores); 1 elsewhere (avoids a useless
    # extra ~0.35us grid step on v5e/v6e).
    nsplit = 2 if (_num_tensorcores() >= 2 and M % 2 == 0) else 1
    Mb = M // nsplit

    flops = 2 * M * B * K2 * N2
    bytes_accessed = int(xc.size * xc.dtype.itemsize
                         + wp.size * wp.dtype.itemsize + M * B * N2 * 4)

    return pl.pallas_call(
        functools.partial(_spectral_mix_kernel, dot_dtype=dot_dtype),
        out_shape=jax.ShapeDtypeStruct((M, B, N2), jnp.float32),
        grid=(nsplit,),
        in_specs=[pl.BlockSpec((Mb, B, K2), lambda m: (m, 0, 0)),
                  pl.BlockSpec((Mb, K2, N2), lambda m: (m, 0, 0))],
        out_specs=pl.BlockSpec((Mb, B, N2), lambda m: (m, 0, 0)),
        compiler_params=pltpu.CompilerParams(
            dimension_semantics=("parallel",)),
        cost_estimate=pl.CostEstimate(flops=int(flops), transcendentals=0,
                                      bytes_accessed=bytes_accessed),
    )(xc, wp)


def spectral_conv2d(x, wp, m1, m2, dot_dtype=jnp.float32):
    """x: (B, H, W, Cin); wp: (2*m1*m2, 2Cin, 2Cout) prepacked real-2x2 weight
    -> (B, H, W, Cout) f32."""
    B, H, W, Cin = x.shape
    Cout = wp.shape[2] // 2
    Wf = W // 2 + 1
    assert m1 <= H and m2 <= Wf, "mode counts exceed spectrum size"

    # TODO(synk): rfft2/irfft2 have no Pallas primitive; XLA FFT is used.
    x_ft = jnp.fft.rfft2(x.astype(jnp.float32), axes=(1, 2))  # (B,H,Wf,Cin) c64

    slab = jnp.concatenate(
        [x_ft[:, :m1, :m2, :], x_ft[:, H - m1:, :m2, :]], axis=1)  # (B,2m1,m2,Cin)
    M = 2 * m1 * m2
    xs = jnp.transpose(slab, (1, 2, 0, 3)).reshape(M, B, Cin)
    xc = jnp.concatenate([jnp.real(xs), jnp.imag(xs)], axis=-1)     # (M,B,2Cin)

    y = spectral_mode_matmul(xc, wp, dot_dtype=dot_dtype)           # (M,B,2Cout)
    yc = lax.complex(y[..., :Cout], y[..., Cout:])                  # (M,B,Cout)
    yc = jnp.transpose(yc.reshape(2 * m1, m2, B, Cout), (2, 0, 1, 3))

    # zeros + static slab updates (matches PyTorch overwrite-on-overlap;
    # much less HBM traffic than pads + add at production H, W).
    out_ft = jnp.zeros((B, H, Wf, Cout), jnp.complex64)
    out_ft = out_ft.at[:, :m1, :m2, :].set(yc[:, :m1])
    out_ft = out_ft.at[:, H - m1:, :m2, :].set(yc[:, m1:])
    return jnp.fft.irfft2(out_ft, s=(H, W), axes=(1, 2)).astype(jnp.float32)


# ----------------------------------------------------------------------------
# FNN2d_Backbone / FNN2d_MAE forward (channels-last internally).
# ----------------------------------------------------------------------------
def backbone_forward(x, params, modes1, modes2, pack, fuse_tail=None,
                     act_name="tanh", act_dtype=jnp.float32,
                     dot_dtype=jnp.float32, final_dtype=jnp.float32):
    """x: (B, H, W, Cin) channels-last.  fuse_tail=(w2bd, b2t) folds the
    encoder_to_decoder Linear into the last layer's pointwise kernel."""
    B, H, W, Cin = x.shape
    N = B * H * W
    assert N % pack == 0
    Np = N // pack
    act_fn = _ACTIVATIONS[act_name]

    def packed(a, C):          # contiguous reshape only -- no transpose
        return a.reshape(Np, pack * C)

    def unpacked(a, C):
        return a.reshape(B, H, W, C)

    # fc0 lift, folded into the packing so K = pack*in_dim (not in_dim).
    C0 = params["fc0_b"].shape[0] // pack
    rows = pointwise_affine(packed(x, Cin), params["fc0_w"], params["fc0_b"],
                            out_dtype=act_dtype, dot_dtype=dot_dtype)
    x = unpacked(rows, C0)

    num = len(params["sp_w"])
    for i in range(num):
        Ci = x.shape[-1]
        wp = params["sp_w"][i]
        Co = wp.shape[2] // 2
        x1 = spectral_conv2d(x, wp, modes1[i], modes2[i], dot_dtype=dot_dtype)

        is_last = (i == num - 1)
        w2 = b2 = None
        if is_last and fuse_tail is not None:
            w2, b2 = fuse_tail
        # 1x1 Conv1d "w" path + spectral residual (+ act) (+ fused e2d tail)
        y = pointwise_affine(
            packed(x, Ci), params["w"][i], params["b"][i],
            residual=packed(x1, Co), w2=w2, b2=b2,
            act_fn=(None if is_last else act_fn),
            out_dtype=(final_dtype if is_last else act_dtype),
            dot_dtype=dot_dtype)
        Cn = (b2.shape[0] // pack) if b2 is not None else Co
        x = unpacked(y, Cn)
        # dropout(p=0) == identity
    return x


def fnn2d_mae_forward(x, params, mask=None, *, modes1, modes2, pack,
                      act_name="tanh", act_dtype=jnp.float32,
                      dot_dtype=jnp.float32):
    """x: (B, C, H, W) NCHW (PyTorch layout). Returns (B, in_dim, H, W) f32."""
    if mask is not None:
        x = x * mask
    x = jnp.transpose(x, (0, 2, 3, 1))   # one NCHW->NHWC boundary transpose
    x_enc = backbone_forward(
        x, params["encoder"], modes1, modes2, pack,
        fuse_tail=(params["e2d_w"], params["e2d_b"]),
        act_name=act_name, act_dtype=act_dtype, dot_dtype=dot_dtype,
        final_dtype=act_dtype)
    x_dec = backbone_forward(
        x_enc, params["decoder"], modes1, modes2, pack,
        act_name=act_name, act_dtype=act_dtype, dot_dtype=dot_dtype,
        final_dtype=jnp.float32)
    return jnp.transpose(x_dec, (0, 3, 1, 2))


# ----------------------------------------------------------------------------
# Parameter init (raw nn.Module-shaped) + one-time packed layout prep.
# ----------------------------------------------------------------------------
def init_linear(key, cin, cout):
    k1, k2 = jax.random.split(key)
    bound = 1.0 / math.sqrt(cin)
    w = jax.random.uniform(k1, (cin, cout), jnp.float32, -bound, bound)
    b = jax.random.uniform(k2, (cout,), jnp.float32, -bound, bound)
    return w, b


def init_spectral(key, cin, cout, m1, m2):
    scale = 1.0 / (cin * cout)
    k1, k2, k3, k4 = jax.random.split(key, 4)
    shp = (cin, cout, m1, m2)
    return {
        "w1r": scale * jax.random.uniform(k1, shp, jnp.float32),
        "w1i": scale * jax.random.uniform(k2, shp, jnp.float32),
        "w2r": scale * jax.random.uniform(k3, shp, jnp.float32),
        "w2i": scale * jax.random.uniform(k4, shp, jnp.float32),
    }


def init_backbone_raw(key, layers, in_dim, modes1, modes2):
    n = len(layers) - 1
    keys = jax.random.split(key, 1 + 2 * n)
    fc0_w, fc0_b = init_linear(keys[0], in_dim, layers[0])
    sp, ws = [], []
    for i in range(n):
        sp.append(init_spectral(keys[1 + 2 * i], layers[i], layers[i + 1],
                                modes1[i], modes2[i]))
        w, b = init_linear(keys[2 + 2 * i], layers[i], layers[i + 1])
        ws.append({"w": w, "b": b})
    return {"fc0_w": fc0_w, "fc0_b": fc0_b, "sp": sp, "w": ws}


def _block_diag(w, pack):
    cin, cout = w.shape
    out = jnp.zeros((pack * cin, pack * cout), w.dtype)
    for p in range(pack):
        out = out.at[p * cin:(p + 1) * cin, p * cout:(p + 1) * cout].set(w)
    return out


def _pack_spectral(sp):
    """(cin,cout,m1,m2) x4 -> (2*m1*m2, 2cin, 2cout) real 2x2-block weight."""
    cin, cout, m1, m2 = sp["w1r"].shape

    def mcc(w):
        return jnp.transpose(w, (2, 3, 0, 1)).reshape(m1 * m2, cin, cout)

    wr = jnp.concatenate([mcc(sp["w1r"]), mcc(sp["w2r"])], axis=0)
    wi = jnp.concatenate([mcc(sp["w1i"]), mcc(sp["w2i"])], axis=0)
    top = jnp.concatenate([wr, wi], axis=2)      # (M, cin, 2cout)
    bot = jnp.concatenate([-wi, wr], axis=2)     # (M, cin, 2cout)
    return jnp.concatenate([top, bot], axis=1)   # (M, 2cin, 2cout)


def prep_backbone(raw, pack, weight_dtype=jnp.float32):
    out = {
        "fc0_w": _block_diag(raw["fc0_w"], pack).astype(weight_dtype),
        "fc0_b": jnp.tile(raw["fc0_b"], pack),
        "sp_w": [], "w": [], "b": [],
    }
    for sp, wb in zip(raw["sp"], raw["w"]):
        out["sp_w"].append(_pack_spectral(sp).astype(weight_dtype))
        out["w"].append(_block_diag(wb["w"], pack).astype(weight_dtype))
        out["b"].append(jnp.tile(wb["b"], pack))
    return out


# ----------------------------------------------------------------------------
# Pure-JAX reference (direct transcription of the PyTorch forward).
# ----------------------------------------------------------------------------
def _ref_spectral(x, sp, m1, m2):
    B, H, W, _ = x.shape
    Cout = sp["w1r"].shape[1]
    Wf = W // 2 + 1
    x_ft = jnp.fft.rfft2(x, axes=(1, 2))
    w1 = sp["w1r"] + 1j * sp["w1i"]
    w2 = sp["w2r"] + 1j * sp["w2i"]
    top = jnp.einsum('bxyi,ioxy->bxyo', x_ft[:, :m1, :m2, :], w1,
                     precision=lax.Precision.HIGHEST)
    bot = jnp.einsum('bxyi,ioxy->bxyo', x_ft[:, H - m1:, :m2, :], w2,
                     precision=lax.Precision.HIGHEST)
    out_ft = jnp.zeros((B, H, Wf, Cout), jnp.complex64)
    out_ft = out_ft.at[:, :m1, :m2, :].set(top)
    out_ft = out_ft.at[:, H - m1:, :m2, :].set(bot)
    return jnp.fft.irfft2(out_ft, s=(H, W), axes=(1, 2))


def _ref_backbone(x, raw, modes1, modes2):
    B, H, W, _ = x.shape
    x = (jnp.dot(x.reshape(-1, x.shape[-1]), raw["fc0_w"],
                 precision=lax.Precision.HIGHEST)
         + raw["fc0_b"]).reshape(B, H, W, -1)
    n = len(raw["sp"])
    for i in range(n):
        x1 = _ref_spectral(x, raw["sp"][i], modes1[i], modes2[i])
        x2 = (jnp.dot(x.reshape(-1, x.shape[-1]), raw["w"][i]["w"],
                      precision=lax.Precision.HIGHEST)
              + raw["w"][i]["b"]).reshape(B, H, W, -1)
        x = x1 + x2
        if i != n - 1:
            x = jnp.tanh(x)
    return x


def _ref_forward(x, raw_enc, raw_dec, e2d_w, e2d_b, modes1, modes2):
    xh = jnp.transpose(x, (0, 2, 3, 1))
    xe = _ref_backbone(xh, raw_enc, modes1, modes2)
    B, H, W, C = xe.shape
    xe = (jnp.dot(xe.reshape(-1, C), e2d_w,
                  precision=lax.Precision.HIGHEST) + e2d_b).reshape(B, H, W, -1)
    xd = _ref_backbone(xe, raw_dec, modes1, modes2)
    return jnp.transpose(xd, (0, 3, 1, 2))


# ----------------------------------------------------------------------------
if __name__ == "__main__":
    B, in_dim, H, W = 2, 4, 16, 16
    layers = [32, 32, 32, 32]            # encoder; decoder: layers[:-1]+[in_dim]
    modes1 = (4, 4, 4)
    modes2 = (4, 4, 4)

    key = jax.random.PRNGKey(0)
    kx, kenc, kdec, ke2d = jax.random.split(key, 4)
    x = jax.random.normal(kx, (B, in_dim, H, W), jnp.float32)

    pack = choose_pack_factor(B * H * W)
    C_fno = layers[-1]
    layers_dec = layers[:-1] + [in_dim]

    raw_enc = init_backbone_raw(kenc, layers, in_dim, modes1, modes2)
    raw_dec = init_backbone_raw(kdec, layers_dec, C_fno, modes1, modes2)
    e2d_w, e2d_b = init_linear(ke2d, C_fno, C_fno)

    # One-time packed layouts (block-diagonal pointwise weights, 2x2-real
    # spectral weights, tiled biases).  Flip weight_dtype here and dot_dtype
    # below to jnp.bfloat16 for the opt-in bf16 path on v6e/v7x.
    params = {
        "encoder": prep_backbone(raw_enc, pack),
        "decoder": prep_backbone(raw_dec, pack),
        "e2d_w": _block_diag(e2d_w, pack),
        "e2d_b": jnp.tile(e2d_b, pack),
    }

    fwd = jax.jit(functools.partial(
        fnn2d_mae_forward, modes1=modes1, modes2=modes2, pack=pack))
    out = jax.block_until_ready(fwd(x, params))
    assert out.shape == (B, in_dim, H, W), out.shape
    assert out.dtype == jnp.float32

    ref = jax.block_until_ready(
        _ref_forward(x, raw_enc, raw_dec, e2d_w, e2d_b, modes1, modes2))
    rel_err = float(jnp.max(jnp.abs(out - ref)) /
                    (jnp.max(jnp.abs(ref)) + 1e-8))
    assert rel_err < 1e-2, f"mismatch vs pure-JAX reference: rel_err={rel_err}"

    print("KERNEL_OK")
</pallas_src>

<mosaic_0001>
module attributes {stable_mosaic.version = 11 : i64} {
  func.func @_pointwise_kernel(%arg0: i32, %arg1: memref<128x16xf32, #tpu.memory_space<vmem>>, %arg2: memref<16x128xf32, #tpu.memory_space<vmem>>, %arg3: memref<1x128xf32, #tpu.memory_space<vmem>>, %arg4: memref<128x128xf32, #tpu.memory_space<vmem>>) attributes {dimension_semantics = [#tpu.dimension_semantics<parallel>], iteration_bounds = array<i64: 1>, scalar_prefetch = 0 : i64, scratch_operands = 0 : i64, tpu.core_type = #tpu.core_type<tc>, window_params = [{transform_indices = @transform_0, window_bounds = array<i64: 128, 16>}, {pipeline_mode = #tpu.pipeline_mode<synchronous>, transform_indices = @transform_1, window_bounds = array<i64: 16, 128>}, {pipeline_mode = #tpu.pipeline_mode<synchronous>, transform_indices = @transform_2, window_bounds = array<i64: 1, 128>}, {transform_indices = @transform_3, window_bounds = array<i64: 128, 128>}]} {
    %c0 = arith.constant 0 : index
    %c0_0 = arith.constant 0 : index
    %0 = vector.load %arg1[%c0, %c0_0] : memref<128x16xf32, #tpu.memory_space<vmem>>, vector<128x16xf32>
    %c0_1 = arith.constant 0 : index
    %c0_2 = arith.constant 0 : index
    %1 = vector.load %arg2[%c0_1, %c0_2] : memref<16x128xf32, #tpu.memory_space<vmem>>, vector<16x128xf32>
    %cst = arith.constant dense<0.000000e+00> : vector<128x128xf32>
    %2 = tpu.matmul %0, %1, %cst {dimension_numbers = #tpu.dot_dimension_numbers<[1], [0], [0], [1], [0, 0, 1, 1], [], []>} : vector<128x16xf32>, vector<16x128xf32>, vector<128x128xf32> -> vector<128x128xf32>
    %c0_3 = arith.constant 0 : index
    %c0_4 = arith.constant 0 : index
    %3 = vector.load %arg3[%c0_3, %c0_4] : memref<1x128xf32, #tpu.memory_space<vmem>>, vector<1x128xf32>
    %4 = vector.broadcast %3 : vector<1x128xf32> to vector<128x128xf32>
    %5 = arith.addf %2, %4 : vector<128x128xf32>
    %c0_5 = arith.constant 0 : index
    %c0_6 = arith.constant 0 : index
    %6 = vector.load %arg4[%c0_5, %c0_6] : memref<128x128xf32, #tpu.memory_space<vmem>>, vector<128x128xf32>
    tpu.vector_store %arg4[%c0_5, %c0_6], %5 {strides = array<i32>} : memref<128x128xf32, #tpu.memory_space<vmem>>, vector<128x128xf32>,
    return
  }
  func.func @transform_0(%arg0: i32) -> (i32, i32) {
    %c0_i32 = arith.constant 0 : i32
    %c0_i32_0 = arith.constant 0 : i32
    return %arg0, %c0_i32 : i32, i32
  }
  func.func @transform_1(%arg0: i32) -> (i32, i32) {
    %c0_i32 = arith.constant 0 : i32
    %c0_i32_0 = arith.constant 0 : i32
    %c0_i32_1 = arith.constant 0 : i32
    return %c0_i32, %c0_i32_0 : i32, i32
  }
  func.func @transform_2(%arg0: i32) -> (i32, i32) {
    %c0_i32 = arith.constant 0 : i32
    %c0_i32_0 = arith.constant 0 : i32
    %c0_i32_1 = arith.constant 0 : i32
    return %c0_i32, %c0_i32_0 : i32, i32
  }
  func.func @transform_3(%arg0: i32) -> (i32, i32) {
    %c0_i32 = arith.constant 0 : i32
    %c0_i32_0 = arith.constant 0 : i32
    return %arg0, %c0_i32 : i32, i32
  }
}

module attributes {stable_mosaic.version = 11 : i64} {
  func.func @_spectral_mix_kernel(%arg0: i32, %arg1: memref<32x2x64xf32, #tpu.memory_space<vmem>>, %arg2: memref<32x64x64xf32, #tpu.memory_space<vmem>>, %arg3: memref<32x2x64xf32, #tpu.memory_space<vmem>>) attributes {dimension_semantics = [#tpu.dimension_semantics<parallel>], iteration_bounds = array<i64: 1>, scalar_prefetch = 0 : i64, scratch_operands = 0 : i64, tpu.core_type = #tpu.core_type<tc>, window_params = [{transform_indices = @transform_0, window_bounds = array<i64: 32, 2, 64>}, {transform_indices = @transform_1, window_bounds = array<i64: 32, 64, 64>}, {transform_indices = @transform_2, window_bounds = array<i64: 32, 2, 64>}]} {
    %c0 = arith.constant 0 : index
    %c0_0 = arith.constant 0 : index
    %c0_1 = arith.constant 0 : index
    %0 = vector.load %arg1[%c0, %c0_0, %c0_1] : memref<32x2x64xf32, #tpu.memory_space<vmem>>, vector<32x2x64xf32>
    %c0_2 = arith.constant 0 : index
    %c0_3 = arith.constant 0 : index
    %c0_4 = arith.constant 0 : index
    %1 = vector.load %arg2[%c0_2, %c0_3, %c0_4] : memref<32x64x64xf32, #tpu.memory_space<vmem>>, vector<32x64x64xf32>
    "tpu.trace_start"() <{level = 10 : i32, message = "mbi,mio->mbo"}> : () -> ()
    %cst = arith.constant dense<0.000000e+00> : vector<32x2x64xf32>
    %2 = tpu.matmul %0, %1, %cst {dimension_numbers = #tpu.dot_dimension_numbers<[2], [1], [1], [2], [0, 0, 0, 1, 1, 2], [0], [0]>} : vector<32x2x64xf32>, vector<32x64x64xf32>, vector<32x2x64xf32> -> vector<32x2x64xf32>
    "tpu.trace_stop"() : () -> ()
    %c0_5 = arith.constant 0 : index
    %c0_6 = arith.constant 0 : index
    %c0_7 = arith.constant 0 : index
    %3 = vector.load %arg3[%c0_5, %c0_6, %c0_7] : memref<32x2x64xf32, #tpu.memory_space<vmem>>, vector<32x2x64xf32>
    tpu.vector_store %arg3[%c0_5, %c0_6, %c0_7], %2 {strides = array<i32>} : memref<32x2x64xf32, #tpu.memory_space<vmem>>, vector<32x2x64xf32>,
    return
  }
  func.func @transform_0(%arg0: i32) -> (i32, i32, i32) {
    %c0_i32 = arith.constant 0 : i32
    %c0_i32_0 = arith.constant 0 : i32
    %c0_i32_1 = arith.constant 0 : i32
    return %arg0, %c0_i32, %c0_i32_0 : i32, i32, i32
  }
  func.func @transform_1(%arg0: i32) -> (i32, i32, i32) {
    %c0_i32 = arith.constant 0 : i32
    %c0_i32_0 = arith.constant 0 : i32
    %c0_i32_1 = arith.constant 0 : i32
    return %arg0, %c0_i32, %c0_i32_0 : i32, i32, i32
  }
  func.func @transform_2(%arg0: i32) -> (i32, i32, i32) {
    %c0_i32 = arith.constant 0 : i32
    %c0_i32_0 = arith.constant 0 : i32
    %c0_i32_1 = arith.constant 0 : i32
    return %arg0, %c0_i32, %c0_i32_0 : i32, i32, i32
  }
}

module attributes {stable_mosaic.version = 11 : i64} {
  func.func @_pointwise_kernel(%arg0: i32, %arg1: memref<128x128xf32, #tpu.memory_space<vmem>>, %arg2: memref<128x128xf32, #tpu.memory_space<vmem>>, %arg3: memref<1x128xf32, #tpu.memory_space<vmem>>, %arg4: memref<128x128xf32, #tpu.memory_space<vmem>>, %arg5: memref<128x128xf32, #tpu.memory_space<vmem>>) attributes {dimension_semantics = [#tpu.dimension_semantics<parallel>], iteration_bounds = array<i64: 1>, scalar_prefetch = 0 : i64, scratch_operands = 0 : i64, tpu.core_type = #tpu.core_type<tc>, window_params = [{transform_indices = @transform_0, window_bounds = array<i64: 128, 128>}, {pipeline_mode = #tpu.pipeline_mode<synchronous>, transform_indices = @transform_1, window_bounds = array<i64: 128, 128>}, {pipeline_mode = #tpu.pipeline_mode<synchronous>, transform_indices = @transform_2, window_bounds = array<i64: 1, 128>}, {transform_indices = @transform_3, window_bounds = array<i64: 128, 128>}, {transform_indices = @transform_4, window_bounds = array<i64: 128, 128>}]} {
    %c0 = arith.constant 0 : index
    %c0_0 = arith.constant 0 : index
    %0 = vector.load %arg1[%c0, %c0_0] : memref<128x128xf32, #tpu.memory_space<vmem>>, vector<128x128xf32>
    %c0_1 = arith.constant 0 : index
    %c0_2 = arith.constant 0 : index
    %1 = vector.load %arg2[%c0_1, %c0_2] : memref<128x128xf32, #tpu.memory_space<vmem>>, vector<128x128xf32>
    %cst = arith.constant dense<0.000000e+00> : vector<128x128xf32>
    %2 = tpu.matmul %0, %1, %cst {dimension_numbers = #tpu.dot_dimension_numbers<[1], [0], [0], [1], [0, 0, 1, 1], [], []>} : vector<128x128xf32>, vector<128x128xf32>, vector<128x128xf32> -> vector<128x128xf32>
    %c0_3 = arith.constant 0 : index
    %c0_4 = arith.constant 0 : index
    %3 = vector.load %arg3[%c0_3, %c0_4] : memref<1x128xf32, #tpu.memory_space<vmem>>, vector<1x128xf32>
    %4 = vector.broadcast %3 : vector<1x128xf32> to vector<128x128xf32>
    %5 = arith.addf %2, %4 : vector<128x128xf32>
    %c0_5 = arith.constant 0 : index
    %c0_6 = arith.constant 0 : index
    %6 = vector.load %arg4[%c0_5, %c0_6] : memref<128x128xf32, #tpu.memory_space<vmem>>, vector<128x128xf32>
    %7 = arith.addf %5, %6 : vector<128x128xf32>
    %8 = math.tanh %7 : vector<128x128xf32>
    %c0_7 = arith.constant 0 : index
    %c0_8 = arith.constant 0 : index
    %9 = vector.load %arg5[%c0_7, %c0_8] : memref<128x128xf32, #tpu.memory_space<vmem>>, vector<128x128xf32>
    tpu.vector_store %arg5[%c0_7, %c0_8], %8 {strides = array<i32>} : memref<128x128xf32, #tpu.memory_space<vmem>>, vector<128x128xf32>,
    return
  }
  func.func @transform_0(%arg0: i32) -> (i32, i32) {
    %c0_i32 = arith.constant 0 : i32
    %c0_i32_0 = arith.constant 0 : i32
    return %arg0, %c0_i32 : i32, i32
  }
  func.func @transform_1(%arg0: i32) -> (i32, i32) {
    %c0_i32 = arith.constant 0 : i32
    %c0_i32_0 = arith.constant 0 : i32
    %c0_i32_1 = arith.constant 0 : i32
    return %c0_i32, %c0_i32_0 : i32, i32
  }
  func.func @transform_2(%arg0: i32) -> (i32, i32) {
    %c0_i32 = arith.constant 0 : i32
    %c0_i32_0 = arith.constant 0 : i32
    %c0_i32_1 = arith.constant 0 : i32
    return %c0_i32, %c0_i32_0 : i32, i32
  }
  func.func @transform_3(%arg0: i32) -> (i32, i32) {
    %c0_i32 = arith.constant 0 : i32
    %c0_i32_0 = arith.constant 0 : i32
    return %arg0, %c0_i32 : i32, i32
  }
  func.func @transform_4(%arg0: i32) -> (i32, i32) {
    %c0_i32 = arith.constant 0 : i32
    %c0_i32_0 = arith.constant 0 : i32
    return %arg0, %c0_i32 : i32, i32
  }
}

module attributes {stable_mosaic.version = 11 : i64} {
  func.func @_pointwise_kernel(%arg0: i32, %arg1: memref<128x128xf32, #tpu.memory_space<vmem>>, %arg2: memref<128x128xf32, #tpu.memory_space<vmem>>, %arg3: memref<1x128xf32, #tpu.memory_space<vmem>>, %arg4: memref<128x128xf32, #tpu.memory_space<vmem>>, %arg5: memref<128x128xf32, #tpu.memory_space<vmem>>, %arg6: memref<1x128xf32, #tpu.memory_space<vmem>>, %arg7: memref<128x128xf32, #tpu.memory_space<vmem>>) attributes {dimension_semantics = [#tpu.dimension_semantics<parallel>], iteration_bounds = array<i64: 1>, scalar_prefetch = 0 : i64, scratch_operands = 0 : i64, tpu.core_type = #tpu.core_type<tc>, window_params = [{transform_indices = @transform_0, window_bounds = array<i64: 128, 128>}, {pipeline_mode = #tpu.pipeline_mode<synchronous>, transform_indices = @transform_1, window_bounds = array<i64: 128, 128>}, {pipeline_mode = #tpu.pipeline_mode<synchronous>, transform_indices = @transform_2, window_bounds = array<i64: 1, 128>}, {transform_indices = @transform_3, window_bounds = array<i64: 128, 128>}, {pipeline_mode = #tpu.pipeline_mode<synchronous>, transform_indices = @transform_4, window_bounds = array<i64: 128, 128>}, {pipeline_mode = #tpu.pipeline_mode<synchronous>, transform_indices = @transform_5, window_bounds = array<i64: 1, 128>}, {transform_indices = @transform_6, window_bounds = array<i64: 128, 128>}]} {
    %c0 = arith.constant 0 : index
    %c0_0 = arith.constant 0 : index
    %0 = vector.load %arg1[%c0, %c0_0] : memref<128x128xf32, #tpu.memory_space<vmem>>, vector<128x128xf32>
    %c0_1 = arith.constant 0 : index
    %c0_2 = arith.constant 0 : index
    %1 = vector.load %arg2[%c0_1, %c0_2] : memref<128x128xf32, #tpu.memory_space<vmem>>, vector<128x128xf32>
    %cst = arith.constant dense<0.000000e+00> : vector<128x128xf32>
    %2 = tpu.matmul %0, %1, %cst {dimension_numbers = #tpu.dot_dimension_numbers<[1], [0], [0], [1], [0, 0, 1, 1], [], []>} : vector<128x128xf32>, vector<128x128xf32>, vector<128x128xf32> -> vector<128x128xf32>
    %c0_3 = arith.constant 0 : index
    %c0_4 = arith.constant 0 : index
    %3 = vector.load %arg3[%c0_3, %c0_4] : memref<1x128xf32, #tpu.memory_space<vmem>>, vector<1x128xf32>
    %4 = vector.broadcast %3 : vector<1x128xf32> to vector<128x128xf32>
    %5 = arith.addf %2, %4 : vector<128x128xf32>
    %c0_5 = arith.constant 0 : index
    %c0_6 = arith.constant 0 : index
    %6 = vector.load %arg4[%c0_5, %c0_6] : memref<128x128xf32, #tpu.memory_space<vmem>>, vector<128x128xf32>
    %7 = arith.addf %5, %6 : vector<128x128xf32>
    %c0_7 = arith.constant 0 : index
    %c0_8 = arith.constant 0 : index
    %8 = vector.load %arg5[%c0_7, %c0_8] : memref<128x128xf32, #tpu.memory_space<vmem>>, vector<128x128xf32>
    %cst_9 = arith.constant dense<0.000000e+00> : vector<128x128xf32>
    %9 = tpu.matmul %7, %8, %cst_9 {dimension_numbers = #tpu.dot_dimension_numbers<[1], [0], [0], [1], [0, 0, 1, 1], [], []>} : vector<128x128xf32>, vector<128x128xf32>, vector<128x128xf32> -> vector<128x128xf32>
    %c0_10 = arith.constant 0 : index
    %c0_11 = arith.constant 0 : index
    %10 = vector.load %arg6[%c0_10, %c0_11] : memref<1x128xf32, #tpu.memory_space<vmem>>, vector<1x128xf32>
    %11 = vector.broadcast %10 : vector<1x128xf32> to vector<128x128xf32>
    %12 = arith.addf %9, %11 : vector<128x128xf32>
    %c0_12 = arith.constant 0 : index
    %c0_13 = arith.constant 0 : index
    %13 = vector.load %arg7[%c0_12, %c0_13] : memref<128x128xf32, #tpu.memory_space<vmem>>, vector<128x128xf32>
    tpu.vector_store %arg7[%c0_12, %c0_13], %12 {strides = array<i32>} : memref<128x128xf32, #tpu.memory_space<vmem>>, vector<128x128xf32>,
    return
  }
  func.func @transform_0(%arg0: i32) -> (i32, i32) {
    %c0_i32 = arith.constant 0 : i32
    %c0_i32_0 = arith.constant 0 : i32
    return %arg0, %c0_i32 : i32, i32
  }
  func.func @transform_1(%arg0: i32) -> (i32, i32) {
    %c0_i32 = arith.constant 0 : i32
    %c0_i32_0 = arith.constant 0 : i32
    %c0_i32_1 = arith.constant 0 : i32
    return %c0_i32, %c0_i32_0 : i32, i32
  }
  func.func @transform_2(%arg0: i32) -> (i32, i32) {
    %c0_i32 = arith.constant 0 : i32
    %c0_i32_0 = arith.constant 0 : i32
    %c0_i32_1 = arith.constant 0 : i32
    return %c0_i32, %c0_i32_0 : i32, i32
  }
  func.func @transform_3(%arg0: i32) -> (i32, i32) {
    %c0_i32 = arith.constant 0 : i32
    %c0_i32_0 = arith.constant 0 : i32
    return %arg0, %c0_i32 : i32, i32
  }
  func.func @transform_4(%arg0: i32) -> (i32, i32) {
    %c0_i32 = arith.constant 0 : i32
    %c0_i32_0 = arith.constant 0 : i32
    %c0_i32_1 = arith.constant 0 : i32
    return %c0_i32, %c0_i32_0 : i32, i32
  }
  func.func @transform_5(%arg0: i32) -> (i32, i32) {
    %c0_i32 = arith.constant 0 : i32
    %c0_i32_0 = arith.constant 0 : i32
    %c0_i32_1 = arith.constant 0 : i32
    return %c0_i32, %c0_i32_0 : i32, i32
  }
  func.func @transform_6(%arg0: i32) -> (i32, i32) {
    %c0_i32 = arith.constant 0 : i32
    %c0_i32_0 = arith.constant 0 : i32
    return %arg0, %c0_i32 : i32, i32
  }
}

module attributes {stable_mosaic.version = 11 : i64} {
  func.func @_pointwise_kernel(%arg0: i32, %arg1: memref<128x128xf32, #tpu.memory_space<vmem>>, %arg2: memref<128x128xf32, #tpu.memory_space<vmem>>, %arg3: memref<1x128xf32, #tpu.memory_space<vmem>>, %arg4: memref<128x128xf32, #tpu.memory_space<vmem>>) attributes {dimension_semantics = [#tpu.dimension_semantics<parallel>], iteration_bounds = array<i64: 1>, scalar_prefetch = 0 : i64, scratch_operands = 0 : i64, tpu.core_type = #tpu.core_type<tc>, window_params = [{transform_indices = @transform_0, window_bounds = array<i64: 128, 128>}, {pipeline_mode = #tpu.pipeline_mode<synchronous>, transform_indices = @transform_1, window_bounds = array<i64: 128, 128>}, {pipeline_mode = #tpu.pipeline_mode<synchronous>, transform_indices = @transform_2, window_bounds = array<i64: 1, 128>}, {transform_indices = @transform_3, window_bounds = array<i64: 128, 128>}]} {
    %c0 = arith.constant 0 : index
    %c0_0 = arith.constant 0 : index
    %0 = vector.load %arg1[%c0, %c0_0] : memref<128x128xf32, #tpu.memory_space<vmem>>, vector<128x128xf32>
    %c0_1 = arith.constant 0 : index
    %c0_2 = arith.constant 0 : index
    %1 = vector.load %arg2[%c0_1, %c0_2] : memref<128x128xf32, #tpu.memory_space<vmem>>, vector<128x128xf32>
    %cst = arith.constant dense<0.000000e+00> : vector<128x128xf32>
    %2 = tpu.matmul %0, %1, %cst {dimension_numbers = #tpu.dot_dimension_numbers<[1], [0], [0], [1], [0, 0, 1, 1], [], []>} : vector<128x128xf32>, vector<128x128xf32>, vector<128x128xf32> -> vector<128x128xf32>
    %c0_3 = arith.constant 0 : index
    %c0_4 = arith.constant 0 : index
    %3 = vector.load %arg3[%c0_3, %c0_4] : memref<1x128xf32, #tpu.memory_space<vmem>>, vector<1x128xf32>
    %4 = vector.broadcast %3 : vector<1x128xf32> to vector<128x128xf32>
    %5 = arith.addf %2, %4 : vector<128x128xf32>
    %c0_5 = arith.constant 0 : index
    %c0_6 = arith.constant 0 : index
    %6 = vector.load %arg4[%c0_5, %c0_6] : memref<128x128xf32, #tpu.memory_space<vmem>>, vector<128x128xf32>
    tpu.vector_store %arg4[%c0_5, %c0_6], %5 {strides = array<i32>} : memref<128x128xf32, #tpu.memory_space<vmem>>, vector<128x128xf32>,
    return
  }
  func.func @transform_0(%arg0: i32) -> (i32, i32) {
    %c0_i32 = arith.constant 0 : i32
    %c0_i32_0 = arith.constant 0 : i32
    return %arg0, %c0_i32 : i32, i32
  }
  func.func @transform_1(%arg0: i32) -> (i32, i32) {
    %c0_i32 = arith.constant 0 : i32
    %c0_i32_0 = arith.constant 0 : i32
    %c0_i32_1 = arith.constant 0 : i32
    return %c0_i32, %c0_i32_0 : i32, i32
  }
  func.func @transform_2(%arg0: i32) -> (i32, i32) {
    %c0_i32 = arith.constant 0 : i32
    %c0_i32_0 = arith.constant 0 : i32
    %c0_i32_1 = arith.constant 0 : i32
    return %c0_i32, %c0_i32_0 : i32, i32
  }
  func.func @transform_3(%arg0: i32) -> (i32, i32) {
    %c0_i32 = arith.constant 0 : i32
    %c0_i32_0 = arith.constant 0 : i32
    return %arg0, %c0_i32 : i32, i32
  }
}

module attributes {stable_mosaic.version = 11 : i64} {
  func.func @_spectral_mix_kernel(%arg0: i32, %arg1: memref<32x2x64xf32, #tpu.memory_space<vmem>>, %arg2: memref<32x64x8xf32, #tpu.memory_space<vmem>>, %arg3: memref<32x2x8xf32, #tpu.memory_space<vmem>>) attributes {dimension_semantics = [#tpu.dimension_semantics<parallel>], iteration_bounds = array<i64: 1>, scalar_prefetch = 0 : i64, scratch_operands = 0 : i64, tpu.core_type = #tpu.core_type<tc>, window_params = [{transform_indices = @transform_0, window_bounds = array<i64: 32, 2, 64>}, {transform_indices = @transform_1, window_bounds = array<i64: 32, 64, 8>}, {transform_indices = @transform_2, window_bounds = array<i64: 32, 2, 8>}]} {
    %c0 = arith.constant 0 : index
    %c0_0 = arith.constant 0 : index
    %c0_1 = arith.constant 0 : index
    %0 = vector.load %arg1[%c0, %c0_0, %c0_1] : memref<32x2x64xf32, #tpu.memory_space<vmem>>, vector<32x2x64xf32>
    %c0_2 = arith.constant 0 : index
    %c0_3 = arith.constant 0 : index
    %c0_4 = arith.constant 0 : index
    %1 = vector.load %arg2[%c0_2, %c0_3, %c0_4] : memref<32x64x8xf32, #tpu.memory_space<vmem>>, vector<32x64x8xf32>
    "tpu.trace_start"() <{level = 10 : i32, message = "mbi,mio->mbo"}> : () -> ()
    %cst = arith.constant dense<0.000000e+00> : vector<32x2x8xf32>
    %2 = tpu.matmul %0, %1, %cst {dimension_numbers = #tpu.dot_dimension_numbers<[2], [1], [1], [2], [0, 0, 0, 1, 1, 2], [0], [0]>} : vector<32x2x64xf32>, vector<32x64x8xf32>, vector<32x2x8xf32> -> vector<32x2x8xf32>
    "tpu.trace_stop"() : () -> ()
    %c0_5 = arith.constant 0 : index
    %c0_6 = arith.constant 0 : index
    %c0_7 = arith.constant 0 : index
    %3 = vector.load %arg3[%c0_5, %c0_6, %c0_7] : memref<32x2x8xf32, #tpu.memory_space<vmem>>, vector<32x2x8xf32>
    tpu.vector_store %arg3[%c0_5, %c0_6, %c0_7], %2 {strides = array<i32>} : memref<32x2x8xf32, #tpu.memory_space<vmem>>, vector<32x2x8xf32>,
    return
  }
  func.func @transform_0(%arg0: i32) -> (i32, i32, i32) {
    %c0_i32 = arith.constant 0 : i32
    %c0_i32_0 = arith.constant 0 : i32
    %c0_i32_1 = arith.constant 0 : i32
    return %arg0, %c0_i32, %c0_i32_0 : i32, i32, i32
  }
  func.func @transform_1(%arg0: i32) -> (i32, i32, i32) {
    %c0_i32 = arith.constant 0 : i32
    %c0_i32_0 = arith.constant 0 : i32
    %c0_i32_1 = arith.constant 0 : i32
    return %arg0, %c0_i32, %c0_i32_0 : i32, i32, i32
  }
  func.func @transform_2(%arg0: i32) -> (i32, i32, i32) {
    %c0_i32 = arith.constant 0 : i32
    %c0_i32_0 = arith.constant 0 : i32
    %c0_i32_1 = arith.constant 0 : i32
    return %arg0, %c0_i32, %c0_i32_0 : i32, i32, i32
  }
}

module attributes {stable_mosaic.version = 11 : i64} {
  func.func @_pointwise_kernel(%arg0: i32, %arg1: memref<128x128xf32, #tpu.memory_space<vmem>>, %arg2: memref<128x16xf32, #tpu.memory_space<vmem>>, %arg3: memref<1x16xf32, #tpu.memory_space<vmem>>, %arg4: memref<128x16xf32, #tpu.memory_space<vmem>>, %arg5: memref<128x16xf32, #tpu.memory_space<vmem>>) attributes {dimension_semantics = [#tpu.dimension_semantics<parallel>], iteration_bounds = array<i64: 1>, scalar_prefetch = 0 : i64, scratch_operands = 0 : i64, tpu.core_type = #tpu.core_type<tc>, window_params = [{transform_indices = @transform_0, window_bounds = array<i64: 128, 128>}, {pipeline_mode = #tpu.pipeline_mode<synchronous>, transform_indices = @transform_1, window_bounds = array<i64: 128, 16>}, {pipeline_mode = #tpu.pipeline_mode<synchronous>, transform_indices = @transform_2, window_bounds = array<i64: 1, 16>}, {transform_indices = @transform_3, window_bounds = array<i64: 128, 16>}, {transform_indices = @transform_4, window_bounds = array<i64: 128, 16>}]} {
    %c0 = arith.constant 0 : index
    %c0_0 = arith.constant 0 : index
    %0 = vector.load %arg1[%c0, %c0_0] : memref<128x128xf32, #tpu.memory_space<vmem>>, vector<128x128xf32>
    %c0_1 = arith.constant 0 : index
    %c0_2 = arith.constant 0 : index
    %1 = vector.load %arg2[%c0_1, %c0_2] : memref<128x16xf32, #tpu.memory_space<vmem>>, vector<128x16xf32>
    %cst = arith.constant dense<0.000000e+00> : vector<128x16xf32>
    %2 = tpu.matmul %0, %1, %cst {dimension_numbers = #tpu.dot_dimension_numbers<[1], [0], [0], [1], [0, 0, 1, 1], [], []>} : vector<128x128xf32>, vector<128x16xf32>, vector<128x16xf32> -> vector<128x16xf32>
    %c0_3 = arith.constant 0 : index
    %c0_4 = arith.constant 0 : index
    %3 = vector.load %arg3[%c0_3, %c0_4] : memref<1x16xf32, #tpu.memory_space<vmem>>, vector<1x16xf32>
    %4 = vector.broadcast %3 : vector<1x16xf32> to vector<128x16xf32>
    %5 = arith.addf %2, %4 : vector<128x16xf32>
    %c0_5 = arith.constant 0 : index
    %c0_6 = arith.constant 0 : index
    %6 = vector.load %arg4[%c0_5, %c0_6] : memref<128x16xf32, #tpu.memory_space<vmem>>, vector<128x16xf32>
    %7 = arith.addf %5, %6 : vector<128x16xf32>
    %c0_7 = arith.constant 0 : index
    %c0_8 = arith.constant 0 : index
    %8 = vector.load %arg5[%c0_7, %c0_8] : memref<128x16xf32, #tpu.memory_space<vmem>>, vector<128x16xf32>
    tpu.vector_store %arg5[%c0_7, %c0_8], %7 {strides = array<i32>} : memref<128x16xf32, #tpu.memory_space<vmem>>, vector<128x16xf32>,
    return
  }
  func.func @transform_0(%arg0: i32) -> (i32, i32) {
    %c0_i32 = arith.constant 0 : i32
    %c0_i32_0 = arith.constant 0 : i32
    return %arg0, %c0_i32 : i32, i32
  }
  func.func @transform_1(%arg0: i32) -> (i32, i32) {
    %c0_i32 = arith.constant 0 : i32
    %c0_i32_0 = arith.constant 0 : i32
    %c0_i32_1 = arith.constant 0 : i32
    return %c0_i32, %c0_i32_0 : i32, i32
  }
  func.func @transform_2(%arg0: i32) -> (i32, i32) {
    %c0_i32 = arith.constant 0 : i32
    %c0_i32_0 = arith.constant 0 : i32
    %c0_i32_1 = arith.constant 0 : i32
    return %c0_i32, %c0_i32_0 : i32, i32
  }
  func.func @transform_3(%arg0: i32) -> (i32, i32) {
    %c0_i32 = arith.constant 0 : i32
    %c0_i32_0 = arith.constant 0 : i32
    return %arg0, %c0_i32 : i32, i32
  }
  func.func @transform_4(%arg0: i32) -> (i32, i32) {
    %c0_i32 = arith.constant 0 : i32
    %c0_i32_0 = arith.constant 0 : i32
    return %arg0, %c0_i32 : i32, i32
  }
}

</mosaic_0001>

<bundles_post_ra>
// kernel: fnn2d_mae_forward.14
= control target key start
LH: loop header
LB: loop body
LE: loop exit
PB: predicated region body
PF: predicated region fallthrough
CT: control target
= control target key end

     0   :  { %vm39_vm0 = vcmask 130048   ;;  %s461_s1 = inlined_call_operand.vmem [shape: f32[16,128], index: 1, kind: input, shape index: {}]   ;;  %s462_s0 = inlined_call_operand.vmem [shape: f32[128,16], index: 0, kind: input, shape index: {}]   ;;  %s463_s2 = inlined_call_operand.vmem [shape: f32[1,128], index: 2, kind: input, shape index: {}]   ;;  %s464_s3 = inlined_call_operand.vmem [shape: f32[128,128], index: 3, kind: output, shape index: {}]  }
   0x1   :  { %v31_v0 = vld [vmem:[%s461_s1 + $0x8] sm:$0xff]  ;;  %v30_v1 = vld [vmem:[%s461_s1] sm:$0xff]  ;;  %v16_v6 = vld [vmem:[%s462_s0 + $0x10] sm:$0xff] }
   0x2   :  { %288 = vmatprep.subr.mxu0 %v31_v0  ;;  %316 = vmatprep.subr.mxu1 %v31_v0  ;;  %v14_v2 = vld [vmem:[%s462_s0] sm:$0xff]  ;;  %v15_v4 = vld [vmem:[%s462_s0 + $0x8] sm:$0xff]  ;;  %v24_v7 = vld [vmem:[%s462_s0 + $0x50] sm:$0xff] }
   0x3   :  { %289 = vmatpush3.msra.mxu0 %v31_v0  ;;  %318 = vmatpush3.msra.mxu1 %v31_v0  ;;  %v22_v3 = vld [vmem:[%s462_s0 + $0x40] sm:$0xff]  ;;  %v23_v5 = vld [vmem:[%s462_s0 + $0x48] sm:$0xff]  ;;  %v17_v8 = vld [vmem:[%s462_s0 + $0x18] sm:$0xff] }
   0x4   :  { %290 = vmatprep.subr.mxu0 %v30_v1  ;;  %317 = vmatprep.subr.mxu1 %v30_v1  ;;  %v25_v9 = vld [vmem:[%s462_s0 + $0x58] sm:$0xff]  ;;  %v18_v10 = vld [vmem:[%s462_s0 + $0x20] sm:$0xff]  ;;  %v19_v12 = vld [vmem:[%s462_s0 + $0x28] sm:$0xff] }
   0x5   :  { %291 = vmatpush3.msra.mxu0 %v30_v1  ;;  %319 = vmatpush3.msra.mxu1 %v30_v1  ;;  %v26_v11 = vld [vmem:[%s462_s0 + $0x60] sm:$0xff]  ;;  %v27_v13 = vld [vmem:[%s462_s0 + $0x68] sm:$0xff]  ;;  %v20_v14 = vld [vmem:[%s462_s0 + $0x30] sm:$0xff] }
   0x6   :  { %292 = vmatprep.mubr.msk.f32.mxu0 %vm39_vm0, %v14_v2  ;;  %304 = vmatprep.mubr.msk.f32.mxu1 %vm39_vm0, %v22_v3  ;;  %v28_v15 = vld [vmem:[%s462_s0 + $0x70] sm:$0xff]  ;;  %v21_v16 = vld [vmem:[%s462_s0 + $0x38] sm:$0xff]  ;;  %v253_v18 = vld [vmem:[%s463_s2] ss:$0 sm:$0xff] }
   0x7   :  { %293 = vmatmul.mubr.msk.f32.vlgmr.msra.gmra.mxu0 %vm39_vm0, %v15_v4  ;;  %305 = vmatmul.mubr.msk.f32.vlgmr.msra.gmra.mxu1 %vm39_vm0, %v23_v5  ;;  %v29_v17 = vld [vmem:[%s462_s0 + $0x78] sm:$0xff] }
   0x8   :  { %295 = vmatprep.mubr.msk.f32.mxu0 %vm39_vm0, %v16_v6  ;;  %307 = vmatprep.mubr.msk.f32.mxu1 %vm39_vm0, %v24_v7 }
   0xb   :  { %296 = vmatmul.mubr.msk.f32.gmra.mxu0 %vm39_vm0, %v17_v8  ;;  %308 = vmatmul.mubr.msk.f32.gmra.mxu1 %vm39_vm0, %v25_v9 }
   0xc   :  { %298 = vmatprep.mubr.msk.f32.mxu0 %vm39_vm0, %v18_v10  ;;  %310 = vmatprep.mubr.msk.f32.mxu1 %vm39_vm0, %v26_v11 }
   0xf   :  { %299 = vmatmul.mubr.msk.f32.gmra.mxu0 %vm39_vm0, %v19_v12  ;;  %311 = vmatmul.mubr.msk.f32.gmra.mxu1 %vm39_vm0, %v27_v13 }
  0x10   :  { %301 = vmatprep.mubr.msk.f32.mxu0 %vm39_vm0, %v20_v14  ;;  %313 = vmatprep.mubr.msk.f32.mxu1 %vm39_vm0, %v28_v15 }
  0x13   :  { %302 = vmatmul.mubr.msk.f32.gmra.mxu0 %vm39_vm0, %v21_v16  ;;  %314 = vmatmul.mubr.msk.f32.gmra.mxu1 %vm39_vm0, %v29_v17 }
  0xc7   :  { %v294_v19 = vpop.f32.mrf.mxu0  ;;  %v306_v20 = vpop.f32.mrf.mxu1 }
  0xc8   :  { %v160_v21 = vadd.f32 %v294_v19, %v253_v18  ;;  %v200_v22 = vadd.f32 %v306_v20, %v253_v18 }
  0xc9   :  { %v154_v23 = vpop.f32.mrf.mxu0  ;;  %v194_v24 = vpop.f32.mrf.mxu1 }
  0xca   :  { %234 = vst [vmem:[%s464_s3 + $0x8] sm:$0xff] %v160_v21  ;;  %242 = vst [vmem:[%s464_s3 + $0x48] sm:$0xff] %v200_v22  ;;  %v155_v25 = vadd.f32 %v253_v18, %v154_v23  ;;  %v195_v26 = vadd.f32 %v253_v18, %v194_v24 }
  0xcb   :  { %v297_v27 = vpop.f32.mrf.mxu0  ;;  %v309_v28 = vpop.f32.mrf.mxu1 }
  0xcc   :  { %233 = vst [vmem:[%s464_s3] sm:$0xff] %v155_v25  ;;  %241 = vst [vmem:[%s464_s3 + $0x40] sm:$0xff] %v195_v26  ;;  %v170_v29 = vadd.f32 %v297_v27, %v253_v18  ;;  %v210_v30 = vadd.f32 %v309_v28, %v253_v18 }
  0xcd   :  { %v164_v31 = vpop.f32.mrf.mxu0  ;;  %v204_v32 = vpop.f32.mrf.mxu1 }
  0xce   :  { %236 = vst [vmem:[%s464_s3 + $0x18] sm:$0xff] %v170_v29  ;;  %244 = vst [vmem:[%s464_s3 + $0x58] sm:$0xff] %v210_v30  ;;  %v165_v33 = vadd.f32 %v253_v18, %v164_v31  ;;  %v205_v34 = vadd.f32 %v253_v18, %v204_v32 }
  0xcf   :  { %v300_v35 = vpop.f32.mrf.mxu0  ;;  %v312_v36 = vpop.f32.mrf.mxu1 }
  0xd0   :  { %235 = vst [vmem:[%s464_s3 + $0x10] sm:$0xff] %v165_v33  ;;  %243 = vst [vmem:[%s464_s3 + $0x50] sm:$0xff] %v205_v34  ;;  %v180_v37 = vadd.f32 %v300_v35, %v253_v18  ;;  %v220_v38 = vadd.f32 %v312_v36, %v253_v18 }
  0xd1   :  { %v174_v39 = vpop.f32.mrf.mxu0  ;;  %v214_v40 = vpop.f32.mrf.mxu1 }
  0xd2   :  { %238 = vst [vmem:[%s464_s3 + $0x28] sm:$0xff] %v180_v37  ;;  %246 = vst [vmem:[%s464_s3 + $0x68] sm:$0xff] %v220_v38  ;;  %v175_v41 = vadd.f32 %v253_v18, %v174_v39  ;;  %v215_v42 = vadd.f32 %v253_v18, %v214_v40 }
  0xd3   :  { %v303_v43 = vpop.f32.mrf.mxu0  ;;  %v315_v44 = vpop.f32.mrf.mxu1 }
  0xd4   :  { %237 = vst [vmem:[%s464_s3 + $0x20] sm:$0xff] %v175_v41  ;;  %245 = vst [vmem:[%s464_s3 + $0x60] sm:$0xff] %v215_v42  ;;  %v190_v45 = vadd.f32 %v303_v43, %v253_v18  ;;  %v230_v46 = vadd.f32 %v315_v44, %v253_v18 }
  0xd5   :  { %v184_v47 = vpop.f32.mrf.mxu0  ;;  %v224_v48 = vpop.f32.mrf.mxu1 }
  0xd6   :  { %240 = vst [vmem:[%s464_s3 + $0x38] sm:$0xff] %v190_v45  ;;  %248 = vst [vmem:[%s464_s3 + $0x78] sm:$0xff] %v230_v46  ;;  %v185_v49 = vadd.f32 %v253_v18, %v184_v47  ;;  %v225_v50 = vadd.f32 %v253_v18, %v224_v48 }
  0xd8   :  { %239 = vst [vmem:[%s464_s3 + $0x30] sm:$0xff] %v185_v49  ;;  %247 = vst [vmem:[%s464_s3 + $0x70] sm:$0xff] %v225_v50 }

// kernel: fnn2d_mae_forward.15
= control target key start
LH: loop header
LB: loop body
LE: loop exit
PB: predicated region body
PF: predicated region fallthrough
CT: control target
= control target key end

     0   :  { %v3603_v0 = vmov 0.0   ;;  %vm299_vm0 = vcmask 523264   ;;  %vm3604_vm1 = vmmov 0   ;;  %vm2636_vm2 = vcmask 517120   ;;  %s4964_s1 = inlined_call_operand.vmem [shape: f32[32,64,64], index: 1, kind: input, shape index: {}]   ;;  %s4965_s0 = inlined_call_operand.vmem [shape: f32[32,2,64], index: 0, kind: input, shape index: {}]   ;;  %s4966_s2 = inlined_call_operand.vmem [shape: f32[32,2,64], index: 2, kind: output, shape index: {}]  }
   0x1   :  { %2993 = vmatprep.subr.mxu0 %v3603_v0  ;;  %3012 = vmatprep.subr.mxu1 %v3603_v0  ;;  %v50_v1 = vld [vmem:[%s4964_s1 + $0x38] sm:$0xff]  ;;  %v49_v3 = vld [vmem:[%s4964_s1 + $0x30] sm:$0xff]  ;;  %v48_v5 = vld [vmem:[%s4964_s1 + $0x28] sm:$0xff] }
   0x2   :  { %v58_v2 = vld [vmem:[%s4964_s1 + $0x78] sm:$0xff]  ;;  %2994 = vmatpush3.msra.mxu0 %v50_v1  ;;  %v57_v4 = vld [vmem:[%s4964_s1 + $0x70] sm:$0xff]  ;;  %v56_v6 = vld [vmem:[%s4964_s1 + $0x68] sm:$0xff]  ;;  %3009 = vmatprep.mubr.msk.f32.mxu0 %vm3604_vm1, %v3603_v0 }
   0x3   :  { %3013 = vmatpush3.msra.mxu1 %v58_v2  ;;  %2995 = vmatprep.subr.mxu0 %v3603_v0  ;;  %v47_v7 = vld [vmem:[%s4964_s1 + $0x20] sm:$0xff]  ;;  %v46_v9 = vld [vmem:[%s4964_s1 + $0x18] sm:$0xff]  ;;  %v45_v11 = vld [vmem:[%s4964_s1 + $0x10] sm:$0xff] }
   0x4   :  { %3014 = vmatprep.subr.mxu1 %v3603_v0  ;;  %2996 = vmatpush3.msra.mxu0 %v49_v3  ;;  %v55_v8 = vld [vmem:[%s4964_s1 + $0x60] sm:$0xff]  ;;  %v54_v10 = vld [vmem:[%s4964_s1 + $0x58] sm:$0xff]  ;;  %v53_v12 = vld [vmem:[%s4964_s1 + $0x50] sm:$0xff] }
   0x5   :  { %3015 = vmatpush3.msra.mxu1 %v57_v4  ;;  %2997 = vmatprep.subr.mxu0 %v3603_v0  ;;  %v44_v13 = vld [vmem:[%s4964_s1 + $0x8] sm:$0xff]  ;;  %v43_v15 = vld [vmem:[%s4964_s1] sm:$0xff]  ;;  %v66_v19 = vld [vmem:[%s4964_s1 + $0xb8] sm:$0xff] }
   0x6   :  { %3016 = vmatprep.subr.mxu1 %v3603_v0  ;;  %2998 = vmatpush3.msra.mxu0 %v48_v5  ;;  %v52_v14 = vld [vmem:[%s4964_s1 + $0x48] sm:$0xff]  ;;  %v51_v16 = vld [vmem:[%s4964_s1 + $0x40] sm:$0xff]  ;;  %v74_v20 = vld [vmem:[%s4964_s1 + $0xf8] sm:$0xff] }
   0x7   :  { %3017 = vmatpush3.msra.mxu1 %v56_v6  ;;  %2999 = vmatprep.subr.mxu0 %v3603_v0  ;;  %v11_v17 = vld [vmem:[%s4965_s0] sm:$0x3]  ;;  %v12_v18 = vld [vmem:[%s4965_s0 + $0x2] sm:$0x3]  ;;  %v65_v21 = vld [vmem:[%s4964_s1 + $0xb0] sm:$0xff] }
   0x8   :  { %3018 = vmatprep.subr.mxu1 %v3603_v0  ;;  %3000 = vmatpush3.msra.mxu0 %v47_v7  ;;  %v73_v22 = vld [vmem:[%s4964_s1 + $0xf0] sm:$0xff]  ;;  %v64_v23 = vld [vmem:[%s4964_s1 + $0xa8] sm:$0xff]  ;;  %v63_v25 = vld [vmem:[%s4964_s1 + $0xa0] sm:$0xff] }
   0x9   :  { %3019 = vmatpush3.msra.mxu1 %v55_v8  ;;  %3001 = vmatprep.subr.mxu0 %v3603_v0  ;;  %v72_v24 = vld [vmem:[%s4964_s1 + $0xe8] sm:$0xff]  ;;  %v71_v26 = vld [vmem:[%s4964_s1 + $0xe0] sm:$0xff]  ;;  %v62_v27 = vld [vmem:[%s4964_s1 + $0x98] sm:$0xff] }
   0xa   :  { %3020 = vmatprep.subr.mxu1 %v3603_v0  ;;  %3002 = vmatpush3.msra.mxu0 %v46_v9  ;;  %v70_v28 = vld [vmem:[%s4964_s1 + $0xd8] sm:$0xff]  ;;  %v61_v29 = vld [vmem:[%s4964_s1 + $0x90] sm:$0xff]  ;;  %v60_v31 = vld [vmem:[%s4964_s1 + $0x88] sm:$0xff] }
   0xb   :  { %3021 = vmatpush3.msra.mxu1 %v54_v10  ;;  %3003 = vmatprep.subr.mxu0 %v3603_v0  ;;  %v69_v30 = vld [vmem:[%s4964_s1 + $0xd0] sm:$0xff]  ;;  %v68_v32 = vld [vmem:[%s4964_s1 + $0xc8] sm:$0xff]  ;;  %v59_v33 = vld [vmem:[%s4964_s1 + $0x80] sm:$0xff] }
   0xc   :  { %3022 = vmatprep.subr.mxu1 %v3603_v0  ;;  %3004 = vmatpush3.msra.mxu0 %v45_v11  ;;  %v67_v34 = vld [vmem:[%s4964_s1 + $0xc0] sm:$0xff]  ;;  %v82_v37 = vld [vmem:[%s4964_s1 + $0x138] sm:$0xff]  ;;  %v81_v39 = vld [vmem:[%s4964_s1 + $0x130] sm:$0xff] }
   0xd   :  { %3023 = vmatpush3.msra.mxu1 %v53_v12  ;;  %3005 = vmatprep.subr.mxu0 %v3603_v0  ;;  %v13_v35 = vld [vmem:[%s4965_s0 + $0x4] sm:$0x3]  ;;  %v14_v36 = vld [vmem:[%s4965_s0 + $0x6] sm:$0x3]  ;;  %v90_v38 = vld [vmem:[%s4964_s1 + $0x178] sm:$0xff] }
   0xe   :  { %3024 = vmatprep.subr.mxu1 %v3603_v0  ;;  %3006 = vmatpush3.msra.mxu0 %v44_v13  ;;  %v89_v40 = vld [vmem:[%s4964_s1 + $0x170] sm:$0xff]  ;;  %v80_v41 = vld [vmem:[%s4964_s1 + $0x128] sm:$0xff]  ;;  %v79_v43 = vld [vmem:[%s4964_s1 + $0x120] sm:$0xff] }
   0xf   :  { %3025 = vmatpush3.msra.mxu1 %v52_v14  ;;  %3007 = vmatprep.subr.mxu0 %v3603_v0  ;;  %v88_v42 = vld [vmem:[%s4964_s1 + $0x168] sm:$0xff]  ;;  %v87_v44 = vld [vmem:[%s4964_s1 + $0x160] sm:$0xff]  ;;  %v78_v45 = vld [vmem:[%s4964_s1 + $0x118] sm:$0xff] }
  0x10   :  { %3026 = vmatprep.subr.mxu1 %v3603_v0  ;;  %3008 = vmatpush3.msra.mxu0 %v43_v15  ;;  %v86_v46 = vld [vmem:[%s4964_s1 + $0x158] sm:$0xff]  ;;  %v77_v47 = vld [vmem:[%s4964_s1 + $0x110] sm:$0xff]  ;;  %v76_v49 = vld [vmem:[%s4964_s1 + $0x108] sm:$0xff] }
  0x11   :  { %3027 = vmatpush3.msra.mxu1 %v51_v16  ;;  %3028 = vmatprep.mubr.msk.f32.mxu1 %vm3604_vm1, %v3603_v0  ;;  %v85_v48 = vld [vmem:[%s4964_s1 + $0x150] sm:$0xff]  ;;  %v84_v50 = vld [vmem:[%s4964_s1 + $0x148] sm:$0xff]  ;;  %v75_v51 = vld [vmem:[%s4964_s1 + $0x100] sm:$0xff] }
  0x12   :  { %3010 = vmatmul.mubr.msk.f32.vlgmr.msra.gmra.mxu0 %vm299_vm0, %v11_v17  ;;  %3029 = vmatmul.mubr.msk.f32.vlgmr.msra.gmra.mxu1 %vm299_vm0, %v12_v18  ;;  %v83_v52 = vld [vmem:[%s4964_s1 + $0x140] sm:$0xff]  ;;  %v15_v53 = vld [vmem:[%s4965_s0 + $0x8] sm:$0x3]  ;;  %v16_v54 = vld [vmem:[%s4965_s0 + $0xa] sm:$0x3] }
  0x13   :  { %3031 = vmatprep.subr.mxu0 %v3603_v0  ;;  %3050 = vmatprep.subr.mxu1 %v3603_v0  ;;  %v98_v55 = vld [vmem:[%s4964_s1 + $0x1b8] sm:$0xff]  ;;  %v97_v57 = vld [vmem:[%s4964_s1 + $0x1b0] sm:$0xff]  ;;  %v96_v59 = vld [vmem:[%s4964_s1 + $0x1a8] sm:$0xff] }
  0x14   :  { %3032 = vmatpush3.msra.mxu0 %v66_v19  ;;  %3051 = vmatpush3.msra.mxu1 %v74_v20  ;;  %v106_v56 = vld [vmem:[%s4964_s1 + $0x1f8] sm:$0xff]  ;;  %v105_v58 = vld [vmem:[%s4964_s1 + $0x1f0] sm:$0xff]  ;;  %v104_v60 = vld [vmem:[%s4964_s1 + $0x1e8] sm:$0xff] }
  0x15   :  { %3033 = vmatprep.subr.mxu0 %v3603_v0  ;;  %3052 = vmatprep.subr.mxu1 %v3603_v0  ;;  %v95_v61 = vld [vmem:[%s4964_s1 + $0x1a0] sm:$0xff]  ;;  %v94_v63 = vld [vmem:[%s4964_s1 + $0x198] sm:$0xff]  ;;  %v93_v2 = vld [vmem:[%s4964_s1 + $0x190] sm:$0xff] }
  0x16   :  { %3034 = vmatpush3.msra.mxu0 %v65_v21  ;;  %3053 = vmatpush3.msra.mxu1 %v73_v22  ;;  %v103_v62 = vld [vmem:[%s4964_s1 + $0x1e0] sm:$0xff]  ;;  %v102_v1 = vld [vmem:[%s4964_s1 + $0x1d8] sm:$0xff]  ;;  %v101_v3 = vld [vmem:[%s4964_s1 + $0x1d0] sm:$0xff] }
  0x17   :  { %3035 = vmatprep.subr.mxu0 %v3603_v0  ;;  %3054 = vmatprep.subr.mxu1 %v3603_v0  ;;  %v92_v4 = vld [vmem:[%s4964_s1 + $0x188] sm:$0xff]  ;;  %v91_v6 = vld [vmem:[%s4964_s1 + $0x180] sm:$0xff]  ;;  %v114_v10 = vld [vmem:[%s4964_s1 + $0x238] sm:$0xff] }
  0x18   :  { %3036 = vmatpush3.msra.mxu0 %v64_v23  ;;  %3055 = vmatpush3.msra.mxu1 %v72_v24  ;;  %v100_v5 = vld [vmem:[%s4964_s1 + $0x1c8] sm:$0xff]  ;;  %v99_v7 = vld [vmem:[%s4964_s1 + $0x1c0] sm:$0xff]  ;;  %v122_v11 = vld [vmem:[%s4964_s1 + $0x278] sm:$0xff] }
  0x19   :  { %3037 = vmatprep.subr.mxu0 %v3603_v0  ;;  %3056 = vmatprep.subr.mxu1 %v3603_v0  ;;  %v17_v8 = vld [vmem:[%s4965_s0 + $0xc] sm:$0x3]  ;;  %v18_v9 = vld [vmem:[%s4965_s0 + $0xe] sm:$0x3]  ;;  %v113_v12 = vld [vmem:[%s4964_s1 + $0x230] sm:$0xff] }
  0x1a   :  { %3038 = vmatpush3.msra.mxu0 %v63_v25  ;;  %3057 = vmatpush3.msra.mxu1 %v71_v26  ;;  %v121_v13 = vld [vmem:[%s4964_s1 + $0x270] sm:$0xff]  ;;  %v112_v14 = vld [vmem:[%s4964_s1 + $0x228] sm:$0xff]  ;;  %v111_v16 = vld [vmem:[%s4964_s1 + $0x220] sm:$0xff] }
  0x1b   :  { %3039 = vmatprep.subr.mxu0 %v3603_v0  ;;  %3058 = vmatprep.subr.mxu1 %v3603_v0  ;;  %v120_v15 = vld [vmem:[%s4964_s1 + $0x268] sm:$0xff]  ;;  %v119_v17 = vld [vmem:[%s4964_s1 + $0x260] sm:$0xff]  ;;  %v110_v18 = vld [vmem:[%s4964_s1 + $0x218] sm:$0xff] }
  0x1c   :  { %3040 = vmatpush3.msra.mxu0 %v62_v27  ;;  %3059 = vmatpush3.msra.mxu1 %v70_v28  ;;  %v118_v19 = vld [vmem:[%s4964_s1 + $0x258] sm:$0xff]  ;;  %v109_v20 = vld [vmem:[%s4964_s1 + $0x210] sm:$0xff]  ;;  %v108_v22 = vld [vmem:[%s4964_s1 + $0x208] sm:$0xff] }
  0x1d   :  { %3041 = vmatprep.subr.mxu0 %v3603_v0  ;;  %3060 = vmatprep.subr.mxu1 %v3603_v0  ;;  %v117_v21 = vld [vmem:[%s4964_s1 + $0x250] sm:$0xff]  ;;  %v116_v23 = vld [vmem:[%s4964_s1 + $0x248] sm:$0xff]  ;;  %v107_v24 = vld [vmem:[%s4964_s1 + $0x200] sm:$0xff] }
  0x1e   :  { %3042 = vmatpush3.msra.mxu0 %v61_v29  ;;  %3061 = vmatpush3.msra.mxu1 %v69_v30  ;;  %v115_v25 = vld [vmem:[%s4964_s1 + $0x240] sm:$0xff]  ;;  %v19_v26 = vld [vmem:[%s4965_s0 + $0x10] sm:$0x3]  ;;  %v20_v27 = vld [vmem:[%s4965_s0 + $0x12] sm:$0x3] }
  0x1f   :  { %3043 = vmatprep.subr.mxu0 %v3603_v0  ;;  %3062 = vmatprep.subr.mxu1 %v3603_v0  ;;  %v130_v28 = vld [vmem:[%s4964_s1 + $0x2b8] sm:$0xff]  ;;  %v129_v30 = vld [vmem:[%s4964_s1 + $0x2b0] sm:$0xff] }
  0x20   :  { %3044 = vmatpush3.msra.mxu0 %v60_v31  ;;  %3063 = vmatpush3.msra.mxu1 %v68_v32  ;;  %v138_v29 = vld [vmem:[%s4964_s1 + $0x2f8] sm:$0xff]  ;;  %v137_v31 = vld [vmem:[%s4964_s1 + $0x2f0] sm:$0xff]  ;;  %v128_v32 = vld [vmem:[%s4964_s1 + $0x2a8] sm:$0xff] }
  0x21   :  { %3045 = vmatprep.subr.mxu0 %v3603_v0  ;;  %3064 = vmatprep.subr.mxu1 %v3603_v0 }
  0x22   :  { %3046 = vmatpush3.msra.mxu0 %v59_v33  ;;  %3047 = vmatprep.mubr.msk.f32.mxu0 %vm3604_vm1, %v3603_v0  ;;  %v136_v33 = vld [vmem:[%s4964_s1 + $0x2e8] sm:$0xff] }
  0x23   :  { %3065 = vmatpush3.msra.mxu1 %v67_v34  ;;  %3066 = vmatprep.mubr.msk.f32.mxu1 %vm3604_vm1, %v3603_v0  ;;  %v127_v34 = vld [vmem:[%s4964_s1 + $0x2a0] sm:$0xff] }
  0x24   :  { %3048 = vmatmul.mubr.msk.f32.vlgmr.msra.gmra.mxu0 %vm299_vm0, %v13_v35  ;;  %3067 = vmatmul.mubr.msk.f32.vlgmr.msra.gmra.mxu1 %vm299_vm0, %v14_v36  ;;  %v135_v35 = vld [vmem:[%s4964_s1 + $0x2e0] sm:$0xff]  ;;  %v126_v36 = vld [vmem:[%s4964_s1 + $0x298] sm:$0xff] }
  0x25   :  { %3069 = vmatprep.subr.mxu0 %v3603_v0  ;;  %3088 = vmatprep.subr.mxu1 %v3603_v0 }
  0x26   :  { %3070 = vmatpush3.msra.mxu0 %v82_v37  ;;  %3089 = vmatpush3.msra.mxu1 %v90_v38  ;;  %v134_v37 = vld [vmem:[%s4964_s1 + $0x2d8] sm:$0xff]  ;;  %v125_v38 = vld [vmem:[%s4964_s1 + $0x290] sm:$0xff] }
  0x27   :  { %3071 = vmatprep.subr.mxu0 %v3603_v0  ;;  %3090 = vmatprep.subr.mxu1 %v3603_v0 }
  0x28   :  { %3072 = vmatpush3.msra.mxu0 %v81_v39  ;;  %3091 = vmatpush3.msra.mxu1 %v89_v40  ;;  %v133_v39 = vld [vmem:[%s4964_s1 + $0x2d0] sm:$0xff]  ;;  %v124_v40 = vld [vmem:[%s4964_s1 + $0x288] sm:$0xff] }
  0x29   :  { %3073 = vmatprep.subr.mxu0 %v3603_v0  ;;  %3092 = vmatprep.subr.mxu1 %v3603_v0 }
  0x2a   :  { %3074 = vmatpush3.msra.mxu0 %v80_v41  ;;  %3093 = vmatpush3.msra.mxu1 %v88_v42  ;;  %v132_v41 = vld [vmem:[%s4964_s1 + $0x2c8] sm:$0xff]  ;;  %v123_v42 = vld [vmem:[%s4964_s1 + $0x280] sm:$0xff] }
  0x2b   :  { %3075 = vmatprep.subr.mxu0 %v3603_v0  ;;  %3094 = vmatprep.subr.mxu1 %v3603_v0 }
  0x2c   :  { %3076 = vmatpush3.msra.mxu0 %v79_v43  ;;  %3095 = vmatpush3.msra.mxu1 %v87_v44  ;;  %v131_v43 = vld [vmem:[%s4964_s1 + $0x2c0] sm:$0xff]  ;;  %v21_v44 = vld [vmem:[%s4965_s0 + $0x14] sm:$0x3] }
  0x2d   :  { %3077 = vmatprep.subr.mxu0 %v3603_v0  ;;  %3096 = vmatprep.subr.mxu1 %v3603_v0 }
  0x2e   :  { %3078 = vmatpush3.msra.mxu0 %v78_v45  ;;  %3097 = vmatpush3.msra.mxu1 %v86_v46  ;;  %v22_v45 = vld [vmem:[%s4965_s0 + $0x16] sm:$0x3]  ;;  %v146_v46 = vld [vmem:[%s4964_s1 + $0x338] sm:$0xff] }
  0x2f   :  { %3079 = vmatprep.subr.mxu0 %v3603_v0  ;;  %3098 = vmatprep.subr.mxu1 %v3603_v0 }
  0x30   :  { %3080 = vmatpush3.msra.mxu0 %v77_v47  ;;  %3099 = vmatpush3.msra.mxu1 %v85_v48  ;;  %v154_v47 = vld [vmem:[%s4964_s1 + $0x378] sm:$0xff]  ;;  %v145_v48 = vld [vmem:[%s4964_s1 + $0x330] sm:$0xff] }
  0x31   :  { %3081 = vmatprep.subr.mxu0 %v3603_v0  ;;  %3100 = vmatprep.subr.mxu1 %v3603_v0 }
  0x32   :  { %3082 = vmatpush3.msra.mxu0 %v76_v49  ;;  %3101 = vmatpush3.msra.mxu1 %v84_v50  ;;  %v153_v49 = vld [vmem:[%s4964_s1 + $0x370] sm:$0xff]  ;;  %v144_v50 = vld [vmem:[%s4964_s1 + $0x328] sm:$0xff] }
  0x33   :  { %3083 = vmatprep.subr.mxu0 %v3603_v0  ;;  %3102 = vmatprep.subr.mxu1 %v3603_v0 }
  0x34   :  { %3084 = vmatpush3.msra.mxu0 %v75_v51  ;;  %3085 = vmatprep.mubr.msk.f32.mxu0 %vm3604_vm1, %v3603_v0  ;;  %v152_v51 = vld [vmem:[%s4964_s1 + $0x368] sm:$0xff] }
  0x35   :  { %3103 = vmatpush3.msra.mxu1 %v83_v52  ;;  %3104 = vmatprep.mubr.msk.f32.mxu1 %vm3604_vm1, %v3603_v0  ;;  %v143_v52 = vld [vmem:[%s4964_s1 + $0x320] sm:$0xff] }
  0x36   :  { %3086 = vmatmul.mubr.msk.f32.vlgmr.msra.gmra.mxu0 %vm299_vm0, %v15_v53  ;;  %3105 = vmatmul.mubr.msk.f32.vlgmr.msra.gmra.mxu1 %vm299_vm0, %v16_v54  ;;  %v151_v53 = vld [vmem:[%s4964_s1 + $0x360] sm:$0xff]  ;;  %v142_v54 = vld [vmem:[%s4964_s1 + $0x318] sm:$0xff] }
  0x37   :  { %3107 = vmatprep.subr.mxu0 %v3603_v0  ;;  %3126 = vmatprep.subr.mxu1 %v3603_v0 }
  0x38   :  { %3108 = vmatpush3.msra.mxu0 %v98_v55  ;;  %3127 = vmatpush3.msra.mxu1 %v106_v56  ;;  %v150_v55 = vld [vmem:[%s4964_s1 + $0x358] sm:$0xff]  ;;  %v141_v56 = vld [vmem:[%s4964_s1 + $0x310] sm:$0xff] }
  0x39   :  { %3109 = vmatprep.subr.mxu0 %v3603_v0  ;;  %3128 = vmatprep.subr.mxu1 %v3603_v0 }
  0x3a   :  { %3110 = vmatpush3.msra.mxu0 %v97_v57  ;;  %3129 = vmatpush3.msra.mxu1 %v105_v58  ;;  %v149_v57 = vld [vmem:[%s4964_s1 + $0x350] sm:$0xff]  ;;  %v140_v58 = vld [vmem:[%s4964_s1 + $0x308] sm:$0xff] }
  0x3b   :  { %3111 = vmatprep.subr.mxu0 %v3603_v0  ;;  %3130 = vmatprep.subr.mxu1 %v3603_v0 }
  0x3c   :  { %3112 = vmatpush3.msra.mxu0 %v96_v59  ;;  %3131 = vmatpush3.msra.mxu1 %v104_v60  ;;  %v148_v59 = vld [vmem:[%s4964_s1 + $0x348] sm:$0xff]  ;;  %v139_v60 = vld [vmem:[%s4964_s1 + $0x300] sm:$0xff] }
  0x3d   :  { %3113 = vmatprep.subr.mxu0 %v3603_v0  ;;  %3132 = vmatprep.subr.mxu1 %v3603_v0 }
  0x3e   :  { %3114 = vmatpush3.msra.mxu0 %v95_v61  ;;  %3133 = vmatpush3.msra.mxu1 %v103_v62  ;;  %v147_v61 = vld [vmem:[%s4964_s1 + $0x340] sm:$0xff]  ;;  %v23_v62 = vld [vmem:[%s4965_s0 + $0x18] sm:$0x3] }
  0x3f   :  { %3115 = vmatprep.subr.mxu0 %v3603_v0  ;;  %3134 = vmatprep.subr.mxu1 %v3603_v0 }
  0x40   :  { %3116 = vmatpush3.msra.mxu0 %v94_v63  ;;  %3135 = vmatpush3.msra.mxu1 %v102_v1  ;;  %v24_v63 = vld [vmem:[%s4965_s0 + $0x1a] sm:$0x3] }
  0x41   :  { %3117 = vmatprep.subr.mxu0 %v3603_v0  ;;  %3136 = vmatprep.subr.mxu1 %v3603_v0  ;;  %v162_v1 = vld [vmem:[%s4964_s1 + $0x3b8] sm:$0xff] }
  0x42   :  { %3118 = vmatpush3.msra.mxu0 %v93_v2  ;;  %3137 = vmatpush3.msra.mxu1 %v101_v3  ;;  %v170_v2 = vld [vmem:[%s4964_s1 + $0x3f8] sm:$0xff]  ;;  %v161_v3 = vld [vmem:[%s4964_s1 + $0x3b0] sm:$0xff] }
  0x43   :  { %3119 = vmatprep.subr.mxu0 %v3603_v0  ;;  %3138 = vmatprep.subr.mxu1 %v3603_v0 }
  0x44   :  { %3120 = vmatpush3.msra.mxu0 %v92_v4  ;;  %3139 = vmatpush3.msra.mxu1 %v100_v5  ;;  %v169_v4 = vld [vmem:[%s4964_s1 + $0x3f0] sm:$0xff]  ;;  %v160_v5 = vld [vmem:[%s4964_s1 + $0x3a8] sm:$0xff] }
  0x45   :  { %3121 = vmatprep.subr.mxu0 %v3603_v0  ;;  %3140 = vmatprep.subr.mxu1 %v3603_v0 }
  0x46   :  { %3122 = vmatpush3.msra.mxu0 %v91_v6  ;;  %3123 = vmatprep.mubr.msk.f32.mxu0 %vm3604_vm1, %v3603_v0  ;;  %v168_v6 = vld [vmem:[%s4964_s1 + $0x3e8] sm:$0xff] }
  0x47   :  { %3141 = vmatpush3.msra.mxu1 %v99_v7  ;;  %3142 = vmatprep.mubr.msk.f32.mxu1 %vm3604_vm1, %v3603_v0  ;;  %v159_v7 = vld [vmem:[%s4964_s1 + $0x3a0] sm:$0xff] }
  0x48   :  { %3124 = vmatmul.mubr.msk.f32.vlgmr.msra.gmra.mxu0 %vm299_vm0, %v17_v8  ;;  %3143 = vmatmul.mubr.msk.f32.vlgmr.msra.gmra.mxu1 %vm299_vm0, %v18_v9  ;;  %v167_v8 = vld [vmem:[%s4964_s1 + $0x3e0] sm:$0xff]  ;;  %v158_v9 = vld [vmem:[%s4964_s1 + $0x398] sm:$0xff] }
  0x49   :  { %3145 = vmatprep.subr.mxu0 %v3603_v0  ;;  %3164 = vmatprep.subr.mxu1 %v3603_v0 }
  0x4a   :  { %3146 = vmatpush3.msra.mxu0 %v114_v10  ;;  %3165 = vmatpush3.msra.mxu1 %v122_v11  ;;  %v166_v10 = vld [vmem:[%s4964_s1 + $0x3d8] sm:$0xff]  ;;  %v157_v11 = vld [vmem:[%s4964_s1 + $0x390] sm:$0xff] }
  0x4b   :  { %3147 = vmatprep.subr.mxu0 %v3603_v0  ;;  %3166 = vmatprep.subr.mxu1 %v3603_v0 }
  0x4c   :  { %3148 = vmatpush3.msra.mxu0 %v113_v12  ;;  %3167 = vmatpush3.msra.mxu1 %v121_v13  ;;  %v165_v12 = vld [vmem:[%s4964_s1 + $0x3d0] sm:$0xff]  ;;  %v156_v13 = vld [vmem:[%s4964_s1 + $0x388] sm:$0xff] }
  0x4d   :  { %3149 = vmatprep.subr.mxu0 %v3603_v0  ;;  %3168 = vmatprep.subr.mxu1 %v3603_v0 }
  0x4e   :  { %3150 = vmatpush3.msra.mxu0 %v112_v14  ;;  %3169 = vmatpush3.msra.mxu1 %v120_v15  ;;  %v164_v14 = vld [vmem:[%s4964_s1 + $0x3c8] sm:$0xff]  ;;  %v155_v15 = vld [vmem:[%s4964_s1 + $0x380] sm:$0xff] }
  0x4f   :  { %3151 = vmatprep.subr.mxu0 %v3603_v0  ;;  %3170 = vmatprep.subr.mxu1 %v3603_v0 }
  0x50   :  { %3152 = vmatpush3.msra.mxu0 %v111_v16  ;;  %3171 = vmatpush3.msra.mxu1 %v119_v17  ;;  %v163_v16 = vld [vmem:[%s4964_s1 + $0x3c0] sm:$0xff]  ;;  %v25_v17 = vld [vmem:[%s4965_s0 + $0x1c] sm:$0x3] }
  0x51   :  { %3153 = vmatprep.subr.mxu0 %v3603_v0  ;;  %3172 = vmatprep.subr.mxu1 %v3603_v0 }
  0x52   :  { %3154 = vmatpush3.msra.mxu0 %v110_v18  ;;  %3173 = vmatpush3.msra.mxu1 %v118_v19  ;;  %v26_v18 = vld [vmem:[%s4965_s0 + $0x1e] sm:$0x3] }
  0x53   :  { %3155 = vmatprep.subr.mxu0 %v3603_v0  ;;  %3174 = vmatprep.subr.mxu1 %v3603_v0  ;;  %v178_v19 = vld [vmem:[%s4964_s1 + $0x438] sm:$0xff] }
  0x54   :  { %3156 = vmatpush3.msra.mxu0 %v109_v20  ;;  %3175 = vmatpush3.msra.mxu1 %v117_v21  ;;  %v186_v20 = vld [vmem:[%s4964_s1 + $0x478] sm:$0xff]  ;;  %v177_v21 = vld [vmem:[%s4964_s1 + $0x430] sm:$0xff] }
  0x55   :  { %3157 = vmatprep.subr.mxu0 %v3603_v0  ;;  %3176 = vmatprep.subr.mxu1 %v3603_v0 }
  0x56   :  { %3158 = vmatpush3.msra.mxu0 %v108_v22  ;;  %3177 = vmatpush3.msra.mxu1 %v116_v23  ;;  %v185_v22 = vld [vmem:[%s4964_s1 + $0x470] sm:$0xff]  ;;  %v176_v23 = vld [vmem:[%s4964_s1 + $0x428] sm:$0xff] }
  0x57   :  { %3159 = vmatprep.subr.mxu0 %v3603_v0  ;;  %3178 = vmatprep.subr.mxu1 %v3603_v0 }
  0x58   :  { %3160 = vmatpush3.msra.mxu0 %v107_v24  ;;  %3161 = vmatprep.mubr.msk.f32.mxu0 %vm3604_vm1, %v3603_v0  ;;  %v184_v24 = vld [vmem:[%s4964_s1 + $0x468] sm:$0xff] }
  0x59   :  { %3179 = vmatpush3.msra.mxu1 %v115_v25  ;;  %3180 = vmatprep.mubr.msk.f32.mxu1 %vm3604_vm1, %v3603_v0  ;;  %v175_v25 = vld [vmem:[%s4964_s1 + $0x420] sm:$0xff] }
  0x5a   :  { %3162 = vmatmul.mubr.msk.f32.vlgmr.msra.gmra.mxu0 %vm299_vm0, %v19_v26  ;;  %3181 = vmatmul.mubr.msk.f32.vlgmr.msra.gmra.mxu1 %vm299_vm0, %v20_v27  ;;  %v183_v26 = vld [vmem:[%s4964_s1 + $0x460] sm:$0xff]  ;;  %v174_v27 = vld [vmem:[%s4964_s1 + $0x418] sm:$0xff] }
  0x5b   :  { %3183 = vmatprep.subr.mxu0 %v3603_v0  ;;  %3202 = vmatprep.subr.mxu1 %v3603_v0 }
  0x5c   :  { %3184 = vmatpush3.msra.mxu0 %v130_v28  ;;  %3203 = vmatpush3.msra.mxu1 %v138_v29  ;;  %v182_v28 = vld [vmem:[%s4964_s1 + $0x458] sm:$0xff]  ;;  %v173_v29 = vld [vmem:[%s4964_s1 + $0x410] sm:$0xff] }
  0x5d   :  { %3185 = vmatprep.subr.mxu0 %v3603_v0  ;;  %3204 = vmatprep.subr.mxu1 %v3603_v0 }
  0x5e   :  { %3186 = vmatpush3.msra.mxu0 %v129_v30  ;;  %3205 = vmatpush3.msra.mxu1 %v137_v31  ;;  %v181_v30 = vld [vmem:[%s4964_s1 + $0x450] sm:$0xff]  ;;  %v172_v31 = vld [vmem:[%s4964_s1 + $0x408] sm:$0xff] }
  0x5f   :  { %3187 = vmatprep.subr.mxu0 %v3603_v0  ;;  %3206 = vmatprep.subr.mxu1 %v3603_v0 }
  0x60   :  { %3188 = vmatpush3.msra.mxu0 %v128_v32  ;;  %3207 = vmatpush3.msra.mxu1 %v136_v33  ;;  %v180_v32 = vld [vmem:[%s4964_s1 + $0x448] sm:$0xff]  ;;  %v171_v33 = vld [vmem:[%s4964_s1 + $0x400] sm:$0xff] }
  0x61   :  { %3189 = vmatprep.subr.mxu0 %v3603_v0  ;;  %3208 = vmatprep.subr.mxu1 %v3603_v0 }
  0x62   :  { %3190 = vmatpush3.msra.mxu0 %v127_v34  ;;  %3209 = vmatpush3.msra.mxu1 %v135_v35  ;;  %v179_v34 = vld [vmem:[%s4964_s1 + $0x440] sm:$0xff] }
  0x63   :  { %3191 = vmatprep.subr.mxu0 %v3603_v0  ;;  %3210 = vmatprep.subr.mxu1 %v3603_v0  ;;  %v27_v35 = vld [vmem:[%s4965_s0 + $0x20] sm:$0x3] }
  0x64   :  { %3192 = vmatpush3.msra.mxu0 %v126_v36  ;;  %3211 = vmatpush3.msra.mxu1 %v134_v37  ;;  %v28_v36 = vld [vmem:[%s4965_s0 + $0x22] sm:$0x3]  ;;  %v194_v37 = vld [vmem:[%s4964_s1 + $0x4b8] sm:$0xff] }
  0x65   :  { %3193 = vmatprep.subr.mxu0 %v3603_v0  ;;  %3212 = vmatprep.subr.mxu1 %v3603_v0 }
  0x66   :  { %3194 = vmatpush3.msra.mxu0 %v125_v38  ;;  %3213 = vmatpush3.msra.mxu1 %v133_v39  ;;  %v202_v38 = vld [vmem:[%s4964_s1 + $0x4f8] sm:$0xff]  ;;  %v193_v39 = vld [vmem:[%s4964_s1 + $0x4b0] sm:$0xff] }
  0x67   :  { %3195 = vmatprep.subr.mxu0 %v3603_v0  ;;  %3214 = vmatprep.subr.mxu1 %v3603_v0 }
  0x68   :  { %3196 = vmatpush3.msra.mxu0 %v124_v40  ;;  %3215 = vmatpush3.msra.mxu1 %v132_v41  ;;  %v201_v40 = vld [vmem:[%s4964_s1 + $0x4f0] sm:$0xff]  ;;  %v192_v41 = vld [vmem:[%s4964_s1 + $0x4a8] sm:$0xff] }
  0x69   :  { %3197 = vmatprep.subr.mxu0 %v3603_v0  ;;  %3216 = vmatprep.subr.mxu1 %v3603_v0 }
  0x6a   :  { %3198 = vmatpush3.msra.mxu0 %v123_v42  ;;  %3199 = vmatprep.mubr.msk.f32.mxu0 %vm3604_vm1, %v3603_v0  ;;  %v200_v42 = vld [vmem:[%s4964_s1 + $0x4e8] sm:$0xff] }
  0x6b   :  { %3217 = vmatpush3.msra.mxu1 %v131_v43  ;;  %3218 = vmatprep.mubr.msk.f32.mxu1 %vm3604_vm1, %v3603_v0  ;;  %v191_v43 = vld [vmem:[%s4964_s1 + $0x4a0] sm:$0xff] }
  0x6c   :  { %3200 = vmatmul.mubr.msk.f32.vlgmr.msra.gmra.mxu0 %vm299_vm0, %v21_v44  ;;  %3219 = vmatmul.mubr.msk.f32.vlgmr.msra.gmra.mxu1 %vm299_vm0, %v22_v45  ;;  %v199_v44 = vld [vmem:[%s4964_s1 + $0x4e0] sm:$0xff]  ;;  %v190_v45 = vld [vmem:[%s4964_s1 + $0x498] sm:$0xff] }
  0x6d   :  { %3221 = vmatprep.subr.mxu0 %v3603_v0  ;;  %3240 = vmatprep.subr.mxu1 %v3603_v0 }
  0x6e   :  { %3222 = vmatpush3.msra.mxu0 %v146_v46  ;;  %3241 = vmatpush3.msra.mxu1 %v154_v47  ;;  %v198_v46 = vld [vmem:[%s4964_s1 + $0x4d8] sm:$0xff]  ;;  %v189_v47 = vld [vmem:[%s4964_s1 + $0x490] sm:$0xff] }
  0x6f   :  { %3223 = vmatprep.subr.mxu0 %v3603_v0  ;;  %3242 = vmatprep.subr.mxu1 %v3603_v0 }
  0x70   :  { %3224 = vmatpush3.msra.mxu0 %v145_v48  ;;  %3243 = vmatpush3.msra.mxu1 %v153_v49  ;;  %v197_v48 = vld [vmem:[%s4964_s1 + $0x4d0] sm:$0xff]  ;;  %v188_v49 = vld [vmem:[%s4964_s1 + $0x488] sm:$0xff] }
  0x71   :  { %3225 = vmatprep.subr.mxu0 %v3603_v0  ;;  %3244 = vmatprep.subr.mxu1 %v3603_v0 }
  0x72   :  { %3226 = vmatpush3.msra.mxu0 %v144_v50  ;;  %3245 = vmatpush3.msra.mxu1 %v152_v51  ;;  %v196_v50 = vld [vmem:[%s4964_s1 + $0x4c8] sm:$0xff]  ;;  %v187_v51 = vld [vmem:[%s4964_s1 + $0x480] sm:$0xff] }
  0x73   :  { %3227 = vmatprep.subr.mxu0 %v3603_v0  ;;  %3246 = vmatprep.subr.mxu1 %v3603_v0 }
  0x74   :  { %3228 = vmatpush3.msra.mxu0 %v143_v52  ;;  %3247 = vmatpush3.msra.mxu1 %v151_v53  ;;  %v195_v52 = vld [vmem:[%s4964_s1 + $0x4c0] sm:$0xff] }
  0x75   :  { %3229 = vmatprep.subr.mxu0 %v3603_v0  ;;  %3248 = vmatprep.subr.mxu1 %v3603_v0  ;;  %v29_v53 = vld [vmem:[%s4965_s0 + $0x24] sm:$0x3] }
  0x76   :  { %3230 = vmatpush3.msra.mxu0 %v142_v54  ;;  %3249 = vmatpush3.msra.mxu1 %v150_v55  ;;  %v30_v54 = vld [vmem:[%s4965_s0 + $0x26] sm:$0x3]  ;;  %v210_v55 = vld [vmem:[%s4964_s1 + $0x538] sm:$0xff] }
  0x77   :  { %3231 = vmatprep.subr.mxu0 %v3603_v0  ;;  %3250 = vmatprep.subr.mxu1 %v3603_v0 }
  0x78   :  { %3232 = vmatpush3.msra.mxu0 %v141_v56  ;;  %3251 = vmatpush3.msra.mxu1 %v149_v57  ;;  %v218_v56 = vld [vmem:[%s4964_s1 + $0x578] sm:$0xff]  ;;  %v209_v57 = vld [vmem:[%s4964_s1 + $0x530] sm:$0xff] }
  0x79   :  { %3233 = vmatprep.subr.mxu0 %v3603_v0  ;;  %3252 = vmatprep.subr.mxu1 %v3603_v0 }
  0x7a   :  { %3234 = vmatpush3.msra.mxu0 %v140_v58  ;;  %3253 = vmatpush3.msra.mxu1 %v148_v59  ;;  %v217_v58 = vld [vmem:[%s4964_s1 + $0x570] sm:$0xff]  ;;  %v208_v59 = vld [vmem:[%s4964_s1 + $0x528] sm:$0xff] }
  0x7b   :  { %3235 = vmatprep.subr.mxu0 %v3603_v0  ;;  %3254 = vmatprep.subr.mxu1 %v3603_v0 }
  0x7c   :  { %3236 = vmatpush3.msra.mxu0 %v139_v60  ;;  %3237 = vmatprep.mubr.msk.f32.mxu0 %vm3604_vm1, %v3603_v0  ;;  %v216_v60 = vld [vmem:[%s4964_s1 + $0x568] sm:$0xff] }
  0x7d   :  { %3255 = vmatpush3.msra.mxu1 %v147_v61  ;;  %3256 = vmatprep.mubr.msk.f32.mxu1 %vm3604_vm1, %v3603_v0  ;;  %v207_v61 = vld [vmem:[%s4964_s1 + $0x520] sm:$0xff] }
  0x7e   :  { %3238 = vmatmul.mubr.msk.f32.vlgmr.msra.gmra.mxu0 %vm299_vm0, %v23_v62  ;;  %3257 = vmatmul.mubr.msk.f32.vlgmr.msra.gmra.mxu1 %vm299_vm0, %v24_v63  ;;  %v215_v62 = vld [vmem:[%s4964_s1 + $0x560] sm:$0xff]  ;;  %v206_v63 = vld [vmem:[%s4964_s1 + $0x518] sm:$0xff] }
  0x7f   :  { %3259 = vmatprep.subr.mxu0 %v3603_v0  ;;  %3278 = vmatprep.subr.mxu1 %v3603_v0 }
  0x80   :  { %3260 = vmatpush3.msra.mxu0 %v162_v1  ;;  %3279 = vmatpush3.msra.mxu1 %v170_v2  ;;  %v214_v1 = vld [vmem:[%s4964_s1 + $0x558] sm:$0xff]  ;;  %v205_v2 = vld [vmem:[%s4964_s1 + $0x510] sm:$0xff] }
  0x81   :  { %3261 = vmatprep.subr.mxu0 %v3603_v0  ;;  %3280 = vmatprep.subr.mxu1 %v3603_v0 }
  0x82   :  { %3262 = vmatpush3.msra.mxu0 %v161_v3  ;;  %3281 = vmatpush3.msra.mxu1 %v169_v4  ;;  %v213_v3 = vld [vmem:[%s4964_s1 + $0x550] sm:$0xff]  ;;  %v204_v4 = vld [vmem:[%s4964_s1 + $0x508] sm:$0xff] }
  0x83   :  { %3263 = vmatprep.subr.mxu0 %v3603_v0  ;;  %3282 = vmatprep.subr.mxu1 %v3603_v0 }
  0x84   :  { %3264 = vmatpush3.msra.mxu0 %v160_v5  ;;  %3283 = vmatpush3.msra.mxu1 %v168_v6  ;;  %v212_v5 = vld [vmem:[%s4964_s1 + $0x548] sm:$0xff]  ;;  %v203_v6 = vld [vmem:[%s4964_s1 + $0x500] sm:$0xff] }
  0x85   :  { %3265 = vmatprep.subr.mxu0 %v3603_v0  ;;  %3284 = vmatprep.subr.mxu1 %v3603_v0 }
  0x86   :  { %3266 = vmatpush3.msra.mxu0 %v159_v7  ;;  %3285 = vmatpush3.msra.mxu1 %v167_v8  ;;  %v211_v7 = vld [vmem:[%s4964_s1 + $0x540] sm:$0xff]  ;;  %v31_v8 = vld [vmem:[%s4965_s0 + $0x28] sm:$0x3] }
  0x87   :  { %3267 = vmatprep.subr.mxu0 %v3603_v0  ;;  %3286 = vmatprep.subr.mxu1 %v3603_v0 }
  0x88   :  { %3268 = vmatpush3.msra.mxu0 %v158_v9  ;;  %3287 = vmatpush3.msra.mxu1 %v166_v10  ;;  %v32_v9 = vld [vmem:[%s4965_s0 + $0x2a] sm:$0x3]  ;;  %v226_v10 = vld [vmem:[%s4964_s1 + $0x5b8] sm:$0xff] }
  0x89   :  { %3269 = vmatprep.subr.mxu0 %v3603_v0  ;;  %3288 = vmatprep.subr.mxu1 %v3603_v0 }
  0x8a   :  { %3270 = vmatpush3.msra.mxu0 %v157_v11  ;;  %3289 = vmatpush3.msra.mxu1 %v165_v12  ;;  %v234_v11 = vld [vmem:[%s4964_s1 + $0x5f8] sm:$0xff]  ;;  %v225_v12 = vld [vmem:[%s4964_s1 + $0x5b0] sm:$0xff] }
  0x8b   :  { %3271 = vmatprep.subr.mxu0 %v3603_v0  ;;  %3290 = vmatprep.subr.mxu1 %v3603_v0 }
  0x8c   :  { %3272 = vmatpush3.msra.mxu0 %v156_v13  ;;  %3291 = vmatpush3.msra.mxu1 %v164_v14  ;;  %v233_v13 = vld [vmem:[%s4964_s1 + $0x5f0] sm:$0xff]  ;;  %v224_v14 = vld [vmem:[%s4964_s1 + $0x5a8] sm:$0xff] }
  0x8d   :  { %3273 = vmatprep.subr.mxu0 %v3603_v0  ;;  %3292 = vmatprep.subr.mxu1 %v3603_v0 }
  0x8e   :  { %3274 = vmatpush3.msra.mxu0 %v155_v15  ;;  %3275 = vmatprep.mubr.msk.f32.mxu0 %vm3604_vm1, %v3603_v0  ;;  %v232_v15 = vld [vmem:[%s4964_s1 + $0x5e8] sm:$0xff] }
  0x8f   :  { %3293 = vmatpush3.msra.mxu1 %v163_v16  ;;  %3294 = vmatprep.mubr.msk.f32.mxu1 %vm3604_vm1, %v3603_v0  ;;  %v223_v16 = vld [vmem:[%s4964_s1 + $0x5a0] sm:$0xff] }
  0x90   :  { %3276 = vmatmul.mubr.msk.f32.vlgmr.msra.gmra.mxu0 %vm299_vm0, %v25_v17  ;;  %3295 = vmatmul.mubr.msk.f32.vlgmr.msra.gmra.mxu1 %vm299_vm0, %v26_v18  ;;  %v231_v17 = vld [vmem:[%s4964_s1 + $0x5e0] sm:$0xff]  ;;  %v222_v18 = vld [vmem:[%s4964_s1 + $0x598] sm:$0xff] }
  0x91   :  { %3297 = vmatprep.subr.mxu0 %v3603_v0  ;;  %3316 = vmatprep.subr.mxu1 %v3603_v0 }
  0x92   :  { %3298 = vmatpush3.msra.mxu0 %v178_v19  ;;  %3317 = vmatpush3.msra.mxu1 %v186_v20  ;;  %v230_v19 = vld [vmem:[%s4964_s1 + $0x5d8] sm:$0xff]  ;;  %v221_v20 = vld [vmem:[%s4964_s1 + $0x590] sm:$0xff] }
  0x93   :  { %3299 = vmatprep.subr.mxu0 %v3603_v0  ;;  %3318 = vmatprep.subr.mxu1 %v3603_v0 }
  0x94   :  { %3300 = vmatpush3.msra.mxu0 %v177_v21  ;;  %3319 = vmatpush3.msra.mxu1 %v185_v22  ;;  %v229_v21 = vld [vmem:[%s4964_s1 + $0x5d0] sm:$0xff]  ;;  %v220_v22 = vld [vmem:[%s4964_s1 + $0x588] sm:$0xff] }
  0x95   :  { %3301 = vmatprep.subr.mxu0 %v3603_v0  ;;  %3320 = vmatprep.subr.mxu1 %v3603_v0 }
  0x96   :  { %3302 = vmatpush3.msra.mxu0 %v176_v23  ;;  %3321 = vmatpush3.msra.mxu1 %v184_v24  ;;  %v228_v23 = vld [vmem:[%s4964_s1 + $0x5c8] sm:$0xff] }
  0x97   :  { %3303 = vmatprep.subr.mxu0 %v3603_v0  ;;  %3322 = vmatprep.subr.mxu1 %v3603_v0 }
  0x98   :  { %3304 = vmatpush3.msra.mxu0 %v175_v25  ;;  %3323 = vmatpush3.msra.mxu1 %v183_v26  ;;  %v219_v26 = vld [vmem:[%s4964_s1 + $0x580] sm:$0xff] }
  0x99   :  { %3305 = vmatprep.subr.mxu0 %v3603_v0  ;;  %3324 = vmatprep.subr.mxu1 %v3603_v0 }
  0x9a   :  { %3306 = vmatpush3.msra.mxu0 %v174_v27  ;;  %3325 = vmatpush3.msra.mxu1 %v182_v28  ;;  %v227_v27 = vld [vmem:[%s4964_s1 + $0x5c0] sm:$0xff] }
  0x9b   :  { %3307 = vmatprep.subr.mxu0 %v3603_v0  ;;  %3326 = vmatprep.subr.mxu1 %v3603_v0 }
  0x9c   :  { %3308 = vmatpush3.msra.mxu0 %v173_v29  ;;  %3327 = vmatpush3.msra.mxu1 %v181_v30  ;;  %v33_v30 = vld [vmem:[%s4965_s0 + $0x2c] sm:$0x3] }
  0x9d   :  { %3309 = vmatprep.subr.mxu0 %v3603_v0  ;;  %3328 = vmatprep.subr.mxu1 %v3603_v0 }
  0x9e   :  { %3310 = vmatpush3.msra.mxu0 %v172_v31  ;;  %3329 = vmatpush3.msra.mxu1 %v180_v32  ;;  %v34_v31 = vld [vmem:[%s4965_s0 + $0x2e] sm:$0x3]  ;;  %v242_v32 = vld [vmem:[%s4964_s1 + $0x638] sm:$0xff] }
  0x9f   :  { %3311 = vmatprep.subr.mxu0 %v3603_v0  ;;  %3330 = vmatprep.subr.mxu1 %v3603_v0 }
  0xa0   :  { %3312 = vmatpush3.msra.mxu0 %v171_v33  ;;  %3313 = vmatprep.mubr.msk.f32.mxu0 %vm3604_vm1, %v3603_v0  ;;  %v250_v33 = vld [vmem:[%s4964_s1 + $0x678] sm:$0xff] }
  0xa1   :  { %3331 = vmatpush3.msra.mxu1 %v179_v34  ;;  %3332 = vmatprep.mubr.msk.f32.mxu1 %vm3604_vm1, %v3603_v0  ;;  %v241_v34 = vld [vmem:[%s4964_s1 + $0x630] sm:$0xff] }
  0xa2   :  { %3314 = vmatmul.mubr.msk.f32.vlgmr.msra.gmra.mxu0 %vm299_vm0, %v27_v35  ;;  %3333 = vmatmul.mubr.msk.f32.vlgmr.msra.gmra.mxu1 %vm299_vm0, %v28_v36  ;;  %v249_v35 = vld [vmem:[%s4964_s1 + $0x670] sm:$0xff]  ;;  %v240_v36 = vld [vmem:[%s4964_s1 + $0x628] sm:$0xff] }
  0xa3   :  { %3335 = vmatprep.subr.mxu0 %v3603_v0  ;;  %3354 = vmatprep.subr.mxu1 %v3603_v0 }
  0xa4   :  { %3336 = vmatpush3.msra.mxu0 %v194_v37  ;;  %3355 = vmatpush3.msra.mxu1 %v202_v38  ;;  %v248_v37 = vld [vmem:[%s4964_s1 + $0x668] sm:$0xff]  ;;  %v239_v38 = vld [vmem:[%s4964_s1 + $0x620] sm:$0xff] }
  0xa5   :  { %3337 = vmatprep.subr.mxu0 %v3603_v0  ;;  %3356 = vmatprep.subr.mxu1 %v3603_v0 }
  0xa6   :  { %3338 = vmatpush3.msra.mxu0 %v193_v39  ;;  %3357 = vmatpush3.msra.mxu1 %v201_v40  ;;  %v247_v39 = vld [vmem:[%s4964_s1 + $0x660] sm:$0xff]  ;;  %v238_v40 = vld [vmem:[%s4964_s1 + $0x618] sm:$0xff] }
  0xa7   :  { %3339 = vmatprep.subr.mxu0 %v3603_v0  ;;  %3358 = vmatprep.subr.mxu1 %v3603_v0 }
  0xa8   :  { %3340 = vmatpush3.msra.mxu0 %v192_v41  ;;  %3359 = vmatpush3.msra.mxu1 %v200_v42  ;;  %v246_v41 = vld [vmem:[%s4964_s1 + $0x658] sm:$0xff]  ;;  %v237_v42 = vld [vmem:[%s4964_s1 + $0x610] sm:$0xff] }
  0xa9   :  { %3341 = vmatprep.subr.mxu0 %v3603_v0  ;;  %3360 = vmatprep.subr.mxu1 %v3603_v0 }
  0xaa   :  { %3342 = vmatpush3.msra.mxu0 %v191_v43  ;;  %3361 = vmatpush3.msra.mxu1 %v199_v44  ;;  %v245_v43 = vld [vmem:[%s4964_s1 + $0x650] sm:$0xff]  ;;  %v236_v44 = vld [vmem:[%s4964_s1 + $0x608] sm:$0xff] }
  0xab   :  { %3343 = vmatprep.subr.mxu0 %v3603_v0  ;;  %3362 = vmatprep.subr.mxu1 %v3603_v0 }
  0xac   :  { %3344 = vmatpush3.msra.mxu0 %v190_v45  ;;  %3363 = vmatpush3.msra.mxu1 %v198_v46  ;;  %v244_v45 = vld [vmem:[%s4964_s1 + $0x648] sm:$0xff] }
  0xad   :  { %3345 = vmatprep.subr.mxu0 %v3603_v0  ;;  %3364 = vmatprep.subr.mxu1 %v3603_v0 }
  0xae   :  { %3346 = vmatpush3.msra.mxu0 %v189_v47  ;;  %3365 = vmatpush3.msra.mxu1 %v197_v48  ;;  %v235_v48 = vld [vmem:[%s4964_s1 + $0x600] sm:$0xff] }
  0xaf   :  { %3347 = vmatprep.subr.mxu0 %v3603_v0  ;;  %3366 = vmatprep.subr.mxu1 %v3603_v0 }
  0xb0   :  { %3348 = vmatpush3.msra.mxu0 %v188_v49  ;;  %3367 = vmatpush3.msra.mxu1 %v196_v50  ;;  %v243_v49 = vld [vmem:[%s4964_s1 + $0x640] sm:$0xff] }
  0xb1   :  { %3349 = vmatprep.subr.mxu0 %v3603_v0  ;;  %3368 = vmatprep.subr.mxu1 %v3603_v0 }
  0xb2   :  { %3350 = vmatpush3.msra.mxu0 %v187_v51  ;;  %3351 = vmatprep.mubr.msk.f32.mxu0 %vm3604_vm1, %v3603_v0 }
  0xb3   :  { %3369 = vmatpush3.msra.mxu1 %v195_v52  ;;  %3370 = vmatprep.mubr.msk.f32.mxu1 %vm3604_vm1, %v3603_v0  ;;  %v35_v52 = vld [vmem:[%s4965_s0 + $0x30] sm:$0x3] }
  0xb4   :  { %3352 = vmatmul.mubr.msk.f32.vlgmr.msra.gmra.mxu0 %vm299_vm0, %v29_v53  ;;  %3371 = vmatmul.mubr.msk.f32.vlgmr.msra.gmra.mxu1 %vm299_vm0, %v30_v54  ;;  %v36_v53 = vld [vmem:[%s4965_s0 + $0x32] sm:$0x3]  ;;  %v258_v54 = vld [vmem:[%s4964_s1 + $0x6b8] sm:$0xff] }
  0xb5   :  { %3373 = vmatprep.subr.mxu0 %v3603_v0  ;;  %3392 = vmatprep.subr.mxu1 %v3603_v0 }
  0xb6   :  { %3374 = vmatpush3.msra.mxu0 %v210_v55  ;;  %3393 = vmatpush3.msra.mxu1 %v218_v56  ;;  %v266_v55 = vld [vmem:[%s4964_s1 + $0x6f8] sm:$0xff]  ;;  %v257_v56 = vld [vmem:[%s4964_s1 + $0x6b0] sm:$0xff] }
  0xb7   :  { %3375 = vmatprep.subr.mxu0 %v3603_v0  ;;  %3394 = vmatprep.subr.mxu1 %v3603_v0 }
  0xb8   :  { %3376 = vmatpush3.msra.mxu0 %v209_v57  ;;  %3395 = vmatpush3.msra.mxu1 %v217_v58  ;;  %v265_v57 = vld [vmem:[%s4964_s1 + $0x6f0] sm:$0xff]  ;;  %v256_v58 = vld [vmem:[%s4964_s1 + $0x6a8] sm:$0xff] }
  0xb9   :  { %3377 = vmatprep.subr.mxu0 %v3603_v0  ;;  %3396 = vmatprep.subr.mxu1 %v3603_v0 }
  0xba   :  { %3378 = vmatpush3.msra.mxu0 %v208_v59  ;;  %3397 = vmatpush3.msra.mxu1 %v216_v60  ;;  %v264_v59 = vld [vmem:[%s4964_s1 + $0x6e8] sm:$0xff]  ;;  %v255_v60 = vld [vmem:[%s4964_s1 + $0x6a0] sm:$0xff] }
  0xbb   :  { %3379 = vmatprep.subr.mxu0 %v3603_v0  ;;  %3398 = vmatprep.subr.mxu1 %v3603_v0 }
  0xbc   :  { %3380 = vmatpush3.msra.mxu0 %v207_v61  ;;  %3399 = vmatpush3.msra.mxu1 %v215_v62  ;;  %v263_v61 = vld [vmem:[%s4964_s1 + $0x6e0] sm:$0xff]  ;;  %v254_v62 = vld [vmem:[%s4964_s1 + $0x698] sm:$0xff] }
  0xbd   :  { %3381 = vmatprep.subr.mxu0 %v3603_v0  ;;  %3400 = vmatprep.subr.mxu1 %v3603_v0 }
  0xbe   :  { %3382 = vmatpush3.msra.mxu0 %v206_v63  ;;  %3401 = vmatpush3.msra.mxu1 %v214_v1  ;;  %v262_v63 = vld [vmem:[%s4964_s1 + $0x6d8] sm:$0xff]  ;;  %v253_v1 = vld [vmem:[%s4964_s1 + $0x690] sm:$0xff] }
  0xbf   :  { %3383 = vmatprep.subr.mxu0 %v3603_v0  ;;  %3402 = vmatprep.subr.mxu1 %v3603_v0 }
  0xc0   :  { %3384 = vmatpush3.msra.mxu0 %v205_v2  ;;  %3403 = vmatpush3.msra.mxu1 %v213_v3  ;;  %v261_v2 = vld [vmem:[%s4964_s1 + $0x6d0] sm:$0xff]  ;;  %v252_v3 = vld [vmem:[%s4964_s1 + $0x688] sm:$0xff] }
  0xc1   :  { %3385 = vmatprep.subr.mxu0 %v3603_v0  ;;  %3404 = vmatprep.subr.mxu1 %v3603_v0 }
  0xc2   :  { %3386 = vmatpush3.msra.mxu0 %v204_v4  ;;  %3405 = vmatpush3.msra.mxu1 %v212_v5  ;;  %v260_v4 = vld [vmem:[%s4964_s1 + $0x6c8] sm:$0xff] }
  0xc3   :  { %3387 = vmatprep.subr.mxu0 %v3603_v0  ;;  %3406 = vmatprep.subr.mxu1 %v3603_v0 }
  0xc4   :  { %3388 = vmatpush3.msra.mxu0 %v203_v6  ;;  %3389 = vmatprep.mubr.msk.f32.mxu0 %vm3604_vm1, %v3603_v0 }
  0xc5   :  { %3407 = vmatpush3.msra.mxu1 %v211_v7  ;;  %3408 = vmatprep.mubr.msk.f32.mxu1 %vm3604_vm1, %v3603_v0  ;;  %v251_v7 = vld [vmem:[%s4964_s1 + $0x680] sm:$0xff] }
  0xc6   :  { %3390 = vmatmul.mubr.msk.f32.vlgmr.msra.gmra.mxu0 %vm299_vm0, %v31_v8  ;;  %3409 = vmatmul.mubr.msk.f32.vlgmr.msra.gmra.mxu1 %vm299_vm0, %v32_v9  ;;  %v259_v8 = vld [vmem:[%s4964_s1 + $0x6c0] sm:$0xff] }
  0xc7   :  { %3411 = vmatprep.subr.mxu0 %v3603_v0  ;;  %3430 = vmatprep.subr.mxu1 %v3603_v0 }
  0xc8   :  { %3412 = vmatpush3.msra.mxu0 %v226_v10  ;;  %3431 = vmatpush3.msra.mxu1 %v234_v11  ;;  %v37_v11 = vld [vmem:[%s4965_s0 + $0x34] sm:$0x3] }
  0xc9   :  { %3413 = vmatprep.subr.mxu0 %v3603_v0  ;;  %3432 = vmatprep.subr.mxu1 %v3603_v0 }
  0xca   :  { %3414 = vmatpush3.msra.mxu0 %v225_v12  ;;  %3433 = vmatpush3.msra.mxu1 %v233_v13  ;;  %v38_v12 = vld [vmem:[%s4965_s0 + $0x36] sm:$0x3]  ;;  %v274_v13 = vld [vmem:[%s4964_s1 + $0x738] sm:$0xff] }
  0xcb   :  { %3415 = vmatprep.subr.mxu0 %v3603_v0  ;;  %3434 = vmatprep.subr.mxu1 %v3603_v0 }
  0xcc   :  { %3416 = vmatpush3.msra.mxu0 %v224_v14  ;;  %3435 = vmatpush3.msra.mxu1 %v232_v15  ;;  %v282_v14 = vld [vmem:[%s4964_s1 + $0x778] sm:$0xff]  ;;  %v273_v15 = vld [vmem:[%s4964_s1 + $0x730] sm:$0xff] }
  0xcd   :  { %3417 = vmatprep.subr.mxu0 %v3603_v0  ;;  %3436 = vmatprep.subr.mxu1 %v3603_v0 }
  0xce   :  { %3418 = vmatpush3.msra.mxu0 %v223_v16  ;;  %3437 = vmatpush3.msra.mxu1 %v231_v17  ;;  %v281_v16 = vld [vmem:[%s4964_s1 + $0x770] sm:$0xff]  ;;  %v272_v17 = vld [vmem:[%s4964_s1 + $0x728] sm:$0xff] }
  0xcf   :  { %3419 = vmatprep.subr.mxu0 %v3603_v0  ;;  %3438 = vmatprep.subr.mxu1 %v3603_v0 }
  0xd0   :  { %3420 = vmatpush3.msra.mxu0 %v222_v18  ;;  %3439 = vmatpush3.msra.mxu1 %v230_v19  ;;  %v280_v18 = vld [vmem:[%s4964_s1 + $0x768] sm:$0xff]  ;;  %v271_v19 = vld [vmem:[%s4964_s1 + $0x720] sm:$0xff] }
  0xd1   :  { %3421 = vmatprep.subr.mxu0 %v3603_v0  ;;  %3440 = vmatprep.subr.mxu1 %v3603_v0 }
  0xd2   :  { %3422 = vmatpush3.msra.mxu0 %v221_v20  ;;  %3441 = vmatpush3.msra.mxu1 %v229_v21  ;;  %v369_v24 = vpop.f32.mrf.mxu0  ;;  %v442_v25 = vpop.f32.mrf.mxu1  ;;  %v279_v20 = vld [vmem:[%s4964_s1 + $0x760] sm:$0xff]  ;;  %v270_v21 = vld [vmem:[%s4964_s1 + $0x718] sm:$0xff] }
  0xd3   :  { %3423 = vmatprep.subr.mxu0 %v3603_v0  ;;  %3442 = vmatprep.subr.mxu1 %v3603_v0  ;;  %2637 = vst.msk [vmem:[%s4966_s2] sm:$0x3] %vm2636_vm2, %v369_v24  ;;  %2638 = vst.msk [vmem:[%s4966_s2 + $0x2] sm:$0x3] %vm2636_vm2, %v442_v25  ;;  %v277_v24 = vld [vmem:[%s4964_s1 + $0x750] sm:$0xff]  ;;  %v268_v25 = vld [vmem:[%s4964_s1 + $0x708] sm:$0xff] }
  0xd4   :  { %3424 = vmatpush3.msra.mxu0 %v220_v22  ;;  %3443 = vmatpush3.msra.mxu1 %v228_v23  ;;  %v3011_v28 = vpop.f32.mrf.mxu0  ;;  %v3030_v29 = vpop.f32.mrf.mxu1  ;;  %v278_v22 = vld [vmem:[%s4964_s1 + $0x758] sm:$0xff]  ;;  %v269_v23 = vld [vmem:[%s4964_s1 + $0x710] sm:$0xff] }
  0xd5   :  { %3425 = vmatprep.subr.mxu0 %v3603_v0  ;;  %3444 = vmatprep.subr.mxu1 %v3603_v0  ;;  %v267_v29 = vld [vmem:[%s4964_s1 + $0x700] sm:$0xff] }
  0xd6   :  { %3426 = vmatpush3.msra.mxu0 %v219_v26  ;;  %3427 = vmatprep.mubr.msk.f32.mxu0 %vm3604_vm1, %v3603_v0  ;;  %v276_v26 = vld [vmem:[%s4964_s1 + $0x748] sm:$0xff] }
  0xd7   :  { %3445 = vmatpush3.msra.mxu1 %v227_v27  ;;  %3446 = vmatprep.mubr.msk.f32.mxu1 %vm3604_vm1, %v3603_v0 }
  0xd8   :  { %3428 = vmatmul.mubr.msk.f32.vlgmr.msra.gmra.mxu0 %vm299_vm0, %v33_v30  ;;  %3447 = vmatmul.mubr.msk.f32.vlgmr.msra.gmra.mxu1 %vm299_vm0, %v34_v31  ;;  %v275_v30 = vld [vmem:[%s4964_s1 + $0x740] sm:$0xff] }
  0xd9   :  { %3449 = vmatprep.subr.mxu0 %v3603_v0  ;;  %3468 = vmatprep.subr.mxu1 %v3603_v0 }
  0xda   :  { %3450 = vmatpush3.msra.mxu0 %v242_v32  ;;  %3469 = vmatpush3.msra.mxu1 %v250_v33  ;;  %v39_v33 = vld [vmem:[%s4965_s0 + $0x38] sm:$0x3] }
  0xdb   :  { %3451 = vmatprep.subr.mxu0 %v3603_v0  ;;  %3470 = vmatprep.subr.mxu1 %v3603_v0 }
  0xdc   :  { %3452 = vmatpush3.msra.mxu0 %v241_v34  ;;  %3471 = vmatpush3.msra.mxu1 %v249_v35  ;;  %v40_v34 = vld [vmem:[%s4965_s0 + $0x3a] sm:$0x3] }
  0xdd   :  { %3453 = vmatprep.subr.mxu0 %v3603_v0  ;;  %3472 = vmatprep.subr.mxu1 %v3603_v0  ;;  %v290_v35 = vld [vmem:[%s4964_s1 + $0x7b8] sm:$0xff] }
  0xde   :  { %3454 = vmatpush3.msra.mxu0 %v240_v36  ;;  %3473 = vmatpush3.msra.mxu1 %v248_v37  ;;  %v298_v36 = vld [vmem:[%s4964_s1 + $0x7f8] sm:$0xff]  ;;  %v289_v37 = vld [vmem:[%s4964_s1 + $0x7b0] sm:$0xff] }
  0xdf   :  { %3455 = vmatprep.subr.mxu0 %v3603_v0  ;;  %3474 = vmatprep.subr.mxu1 %v3603_v0 }
  0xe0   :  { %3456 = vmatpush3.msra.mxu0 %v239_v38  ;;  %3475 = vmatpush3.msra.mxu1 %v247_v39  ;;  %v297_v38 = vld [vmem:[%s4964_s1 + $0x7f0] sm:$0xff]  ;;  %v288_v39 = vld [vmem:[%s4964_s1 + $0x7a8] sm:$0xff] }
  0xe1   :  { %3457 = vmatprep.subr.mxu0 %v3603_v0  ;;  %3476 = vmatprep.subr.mxu1 %v3603_v0 }
  0xe2   :  { %3458 = vmatpush3.msra.mxu0 %v238_v40  ;;  %3477 = vmatpush3.msra.mxu1 %v246_v41  ;;  %v296_v40 = vld [vmem:[%s4964_s1 + $0x7e8] sm:$0xff]  ;;  %v287_v41 = vld [vmem:[%s4964_s1 + $0x7a0] sm:$0xff] }
  0xe3   :  { %3459 = vmatprep.subr.mxu0 %v3603_v0  ;;  %3478 = vmatprep.subr.mxu1 %v3603_v0 }
  0xe4   :  { %3460 = vmatpush3.msra.mxu0 %v237_v42  ;;  %3479 = vmatpush3.msra.mxu1 %v245_v43  ;;  %v515_v46 = vpop.f32.mrf.mxu0  ;;  %v588_v47 = vpop.f32.mrf.mxu1  ;;  %v295_v42 = vld [vmem:[%s4964_s1 + $0x7e0] sm:$0xff]  ;;  %v286_v43 = vld [vmem:[%s4964_s1 + $0x798] sm:$0xff] }
  0xe5   :  { %3461 = vmatprep.subr.mxu0 %v3603_v0  ;;  %3480 = vmatprep.subr.mxu1 %v3603_v0  ;;  %2639 = vst.msk [vmem:[%s4966_s2 + $0x4] sm:$0x3] %vm2636_vm2, %v515_v46  ;;  %2640 = vst.msk [vmem:[%s4966_s2 + $0x6] sm:$0x3] %vm2636_vm2, %v588_v47  ;;  %v293_v46 = vld [vmem:[%s4964_s1 + $0x7d0] sm:$0xff]  ;;  %v284_v47 = vld [vmem:[%s4964_s1 + $0x788] sm:$0xff] }
  0xe6   :  { %3462 = vmatpush3.msra.mxu0 %v236_v44  ;;  %3481 = vmatpush3.msra.mxu1 %v244_v45  ;;  %v3049_v50 = vpop.f32.mrf.mxu0  ;;  %v3068_v51 = vpop.f32.mrf.mxu1  ;;  %v294_v44 = vld [vmem:[%s4964_s1 + $0x7d8] sm:$0xff]  ;;  %v285_v45 = vld [vmem:[%s4964_s1 + $0x790] sm:$0xff] }
  0xe7   :  { %3463 = vmatprep.subr.mxu0 %v3603_v0  ;;  %3482 = vmatprep.subr.mxu1 %v3603_v0  ;;  %v283_v51 = vld [vmem:[%s4964_s1 + $0x780] sm:$0xff] }
  0xe8   :  { %3464 = vmatpush3.msra.mxu0 %v235_v48  ;;  %3465 = vmatprep.mubr.msk.f32.mxu0 %vm3604_vm1, %v3603_v0  ;;  %v292_v48 = vld [vmem:[%s4964_s1 + $0x7c8] sm:$0xff] }
  0xe9   :  { %3483 = vmatpush3.msra.mxu1 %v243_v49  ;;  %3484 = vmatprep.mubr.msk.f32.mxu1 %vm3604_vm1, %v3603_v0 }
  0xea   :  { %3466 = vmatmul.mubr.msk.f32.vlgmr.msra.gmra.mxu0 %vm299_vm0, %v35_v52  ;;  %3485 = vmatmul.mubr.msk.f32.vlgmr.msra.gmra.mxu1 %vm299_vm0, %v36_v53  ;;  %v291_v52 = vld [vmem:[%s4964_s1 + $0x7c0] sm:$0xff] }
  0xeb   :  { %3487 = vmatprep.subr.mxu0 %v3603_v0  ;;  %3506 = vmatprep.subr.mxu1 %v3603_v0 }
  0xec   :  { %3488 = vmatpush3.msra.mxu0 %v258_v54  ;;  %3507 = vmatpush3.msra.mxu1 %v266_v55  ;;  %v41_v55 = vld [vmem:[%s4965_s0 + $0x3c] sm:$0x3] }
  0xed   :  { %3489 = vmatprep.subr.mxu0 %v3603_v0  ;;  %3508 = vmatprep.subr.mxu1 %v3603_v0 }
  0xee   :  { %3490 = vmatpush3.msra.mxu0 %v257_v56  ;;  %3509 = vmatpush3.msra.mxu1 %v265_v57  ;;  %v42_v56 = vld [vmem:[%s4965_s0 + $0x3e] sm:$0x3] }
  0xef   :  { %3491 = vmatprep.subr.mxu0 %v3603_v0  ;;  %3510 = vmatprep.subr.mxu1 %v3603_v0 }
  0xf0   :  { %3492 = vmatpush3.msra.mxu0 %v256_v58  ;;  %3511 = vmatpush3.msra.mxu1 %v264_v59 }
  0xf1   :  { %3493 = vmatprep.subr.mxu0 %v3603_v0  ;;  %3512 = vmatprep.subr.mxu1 %v3603_v0 }
  0xf2   :  { %3494 = vmatpush3.msra.mxu0 %v255_v60  ;;  %3513 = vmatpush3.msra.mxu1 %v263_v61 }
  0xf3   :  { %3495 = vmatprep.subr.mxu0 %v3603_v0  ;;  %3514 = vmatprep.subr.mxu1 %v3603_v0 }
  0xf4   :  { %3496 = vmatpush3.msra.mxu0 %v254_v62  ;;  %3515 = vmatpush3.msra.mxu1 %v262_v63 }
  0xf5   :  { %3497 = vmatprep.subr.mxu0 %v3603_v0  ;;  %3516 = vmatprep.subr.mxu1 %v3603_v0 }
  0xf6   :  { %3498 = vmatpush3.msra.mxu0 %v253_v1  ;;  %3517 = vmatpush3.msra.mxu1 %v261_v2  ;;  %v661_v5 = vpop.f32.mrf.mxu0  ;;  %v734_v6 = vpop.f32.mrf.mxu1 }
  0xf7   :  { %3499 = vmatprep.subr.mxu0 %v3603_v0  ;;  %3518 = vmatprep.subr.mxu1 %v3603_v0  ;;  %2641 = vst.msk [vmem:[%s4966_s2 + $0x8] sm:$0x3] %vm2636_vm2, %v661_v5  ;;  %2642 = vst.msk [vmem:[%s4966_s2 + $0xa] sm:$0x3] %vm2636_vm2, %v734_v6 }
  0xf8   :  { %3500 = vmatpush3.msra.mxu0 %v252_v3  ;;  %3519 = vmatpush3.msra.mxu1 %v260_v4  ;;  %v3087_v9 = vpop.f32.mrf.mxu0  ;;  %v3106_v10 = vpop.f32.mrf.mxu1 }
  0xf9   :  { %3501 = vmatprep.subr.mxu0 %v3603_v0  ;;  %3520 = vmatprep.subr.mxu1 %v3603_v0 }
  0xfa   :  { %3502 = vmatpush3.msra.mxu0 %v251_v7  ;;  %3503 = vmatprep.mubr.msk.f32.mxu0 %vm3604_vm1, %v3603_v0 }
  0xfb   :  { %3521 = vmatpush3.msra.mxu1 %v259_v8  ;;  %3522 = vmatprep.mubr.msk.f32.mxu1 %vm3604_vm1, %v3603_v0 }
  0xfc   :  { %3504 = vmatmul.mubr.msk.f32.vlgmr.msra.gmra.mxu0 %vm299_vm0, %v37_v11  ;;  %3523 = vmatmul.mubr.msk.f32.vlgmr.msra.gmra.mxu1 %vm299_vm0, %v38_v12 }
  0xfd   :  { %3525 = vmatprep.subr.mxu0 %v3603_v0  ;;  %3544 = vmatprep.subr.mxu1 %v3603_v0 }
  0xfe   :  { %3526 = vmatpush3.msra.mxu0 %v274_v13  ;;  %3545 = vmatpush3.msra.mxu1 %v282_v14 }
  0xff   :  { %3527 = vmatprep.subr.mxu0 %v3603_v0  ;;  %3546 = vmatprep.subr.mxu1 %v3603_v0 }
 0x100   :  { %3528 = vmatpush3.msra.mxu0 %v273_v15  ;;  %3547 = vmatpush3.msra.mxu1 %v281_v16 }
 0x101   :  { %3529 = vmatprep.subr.mxu0 %v3603_v0  ;;  %3548 = vmatprep.subr.mxu1 %v3603_v0 }
 0x102   :  { %3530 = vmatpush3.msra.mxu0 %v272_v17  ;;  %3549 = vmatpush3.msra.mxu1 %v280_v18 }
 0x103   :  { %3531 = vmatprep.subr.mxu0 %v3603_v0  ;;  %3550 = vmatprep.subr.mxu1 %v3603_v0 }
 0x104   :  { %3532 = vmatpush3.msra.mxu0 %v271_v19  ;;  %3551 = vmatpush3.msra.mxu1 %v279_v20 }
 0x105   :  { %3533 = vmatprep.subr.mxu0 %v3603_v0  ;;  %3552 = vmatprep.subr.mxu1 %v3603_v0 }
 0x106   :  { %3534 = vmatpush3.msra.mxu0 %v270_v21  ;;  %3553 = vmatpush3.msra.mxu1 %v278_v22 }
 0x107   :  { %3535 = vmatprep.subr.mxu0 %v3603_v0  ;;  %3554 = vmatprep.subr.mxu1 %v3603_v0 }
 0x108   :  { %3536 = vmatpush3.msra.mxu0 %v269_v23  ;;  %3555 = vmatpush3.msra.mxu1 %v277_v24  ;;  %v807_v27 = vpop.f32.mrf.mxu0  ;;  %v880_v28 = vpop.f32.mrf.mxu1 }
 0x109   :  { %3537 = vmatprep.subr.mxu0 %v3603_v0  ;;  %3556 = vmatprep.subr.mxu1 %v3603_v0  ;;  %2643 = vst.msk [vmem:[%s4966_s2 + $0xc] sm:$0x3] %vm2636_vm2, %v807_v27  ;;  %2644 = vst.msk [vmem:[%s4966_s2 + $0xe] sm:$0x3] %vm2636_vm2, %v880_v28 }
 0x10a   :  { %3538 = vmatpush3.msra.mxu0 %v268_v25  ;;  %3557 = vmatpush3.msra.mxu1 %v276_v26  ;;  %v3125_v31 = vpop.f32.mrf.mxu0  ;;  %v3144_v32 = vpop.f32.mrf.mxu1 }
 0x10b   :  { %3539 = vmatprep.subr.mxu0 %v3603_v0  ;;  %3558 = vmatprep.subr.mxu1 %v3603_v0 }
 0x10c   :  { %3540 = vmatpush3.msra.mxu0 %v267_v29  ;;  %3541 = vmatprep.mubr.msk.f32.mxu0 %vm3604_vm1, %v3603_v0 }
 0x10d   :  { %3559 = vmatpush3.msra.mxu1 %v275_v30  ;;  %3560 = vmatprep.mubr.msk.f32.mxu1 %vm3604_vm1, %v3603_v0 }
 0x10e   :  { %3542 = vmatmul.mubr.msk.f32.vlgmr.msra.gmra.mxu0 %vm299_vm0, %v39_v33  ;;  %3561 = vmatmul.mubr.msk.f32.vlgmr.msra.gmra.mxu1 %vm299_vm0, %v40_v34 }
 0x10f   :  { %3563 = vmatprep.subr.mxu0 %v3603_v0  ;;  %3582 = vmatprep.subr.mxu1 %v3603_v0 }
 0x110   :  { %3564 = vmatpush3.msra.mxu0 %v290_v35  ;;  %3583 = vmatpush3.msra.mxu1 %v298_v36 }
 0x111   :  { %3565 = vmatprep.subr.mxu0 %v3603_v0  ;;  %3584 = vmatprep.subr.mxu1 %v3603_v0 }
 0x112   :  { %3566 = vmatpush3.msra.mxu0 %v289_v37  ;;  %3585 = vmatpush3.msra.mxu1 %v297_v38 }
 0x113   :  { %3567 = vmatprep.subr.mxu0 %v3603_v0  ;;  %3586 = vmatprep.subr.mxu1 %v3603_v0 }
 0x114   :  { %3568 = vmatpush3.msra.mxu0 %v288_v39  ;;  %3587 = vmatpush3.msra.mxu1 %v296_v40 }
 0x115   :  { %3569 = vmatprep.subr.mxu0 %v3603_v0  ;;  %3588 = vmatprep.subr.mxu1 %v3603_v0 }
 0x116   :  { %3570 = vmatpush3.msra.mxu0 %v287_v41  ;;  %3589 = vmatpush3.msra.mxu1 %v295_v42 }
 0x117   :  { %3571 = vmatprep.subr.mxu0 %v3603_v0  ;;  %3590 = vmatprep.subr.mxu1 %v3603_v0 }
 0x118   :  { %3572 = vmatpush3.msra.mxu0 %v286_v43  ;;  %3591 = vmatpush3.msra.mxu1 %v294_v44 }
 0x119   :  { %3573 = vmatprep.subr.mxu0 %v3603_v0  ;;  %3592 = vmatprep.subr.mxu1 %v3603_v0 }
 0x11a   :  { %3574 = vmatpush3.msra.mxu0 %v285_v45  ;;  %3593 = vmatpush3.msra.mxu1 %v293_v46  ;;  %v953_v49 = vpop.f32.mrf.mxu0  ;;  %v1026_v50 = vpop.f32.mrf.mxu1 }
 0x11b   :  { %3575 = vmatprep.subr.mxu0 %v3603_v0  ;;  %3594 = vmatprep.subr.mxu1 %v3603_v0  ;;  %2645 = vst.msk [vmem:[%s4966_s2 + $0x10] sm:$0x3] %vm2636_vm2, %v953_v49  ;;  %2646 = vst.msk [vmem:[%s4966_s2 + $0x12] sm:$0x3] %vm2636_vm2, %v1026_v50 }
 0x11c   :  { %3576 = vmatpush3.msra.mxu0 %v284_v47  ;;  %3595 = vmatpush3.msra.mxu1 %v292_v48  ;;  %v3163_v53 = vpop.f32.mrf.mxu0  ;;  %v3182_v54 = vpop.f32.mrf.mxu1 }
 0x11d   :  { %3577 = vmatprep.subr.mxu0 %v3603_v0  ;;  %3596 = vmatprep.subr.mxu1 %v3603_v0 }
 0x11e   :  { %3578 = vmatpush3.msra.mxu0 %v283_v51  ;;  %3579 = vmatprep.mubr.msk.f32.mxu0 %vm3604_vm1, %v3603_v0 }
 0x11f   :  { %3597 = vmatpush3.msra.mxu1 %v291_v52  ;;  %3598 = vmatprep.mubr.msk.f32.mxu1 %vm3604_vm1, %v3603_v0 }
 0x120   :  { %3580 = vmatmul.mubr.msk.f32.vlgmr.msra.gmra.mxu0 %vm299_vm0, %v41_v55  ;;  %3599 = vmatmul.mubr.msk.f32.vlgmr.msra.gmra.mxu1 %vm299_vm0, %v42_v56 }
 0x12c   :  { %v1099_v57 = vpop.f32.mrf.mxu0  ;;  %v1172_v58 = vpop.f32.mrf.mxu1 }
 0x12d   :  { %2647 = vst.msk [vmem:[%s4966_s2 + $0x14] sm:$0x3] %vm2636_vm2, %v1099_v57  ;;  %2648 = vst.msk [vmem:[%s4966_s2 + $0x16] sm:$0x3] %vm2636_vm2, %v1172_v58 }
 0x12e   :  { %v3201_v59 = vpop.f32.mrf.mxu0  ;;  %v3220_v60 = vpop.f32.mrf.mxu1 }
 0x13e   :  { %v1245_v61 = vpop.f32.mrf.mxu0  ;;  %v1318_v0 = vpop.f32.mrf.mxu1 }
 0x13f   :  { %2649 = vst.msk [vmem:[%s4966_s2 + $0x18] sm:$0x3] %vm2636_vm2, %v1245_v61  ;;  %2650 = vst.msk [vmem:[%s4966_s2 + $0x1a] sm:$0x3] %vm2636_vm2, %v1318_v0 }
 0x140   :  { %v3239_v62 = vpop.f32.mrf.mxu0  ;;  %v3258_v63 = vpop.f32.mrf.mxu1 }
 0x150   :  { %v1391_v1 = vpop.f32.mrf.mxu0  ;;  %v1464_v2 = vpop.f32.mrf.mxu1 }
 0x151   :  { %2651 = vst.msk [vmem:[%s4966_s2 + $0x1c] sm:$0x3] %vm2636_vm2, %v1391_v1  ;;  %2652 = vst.msk [vmem:[%s4966_s2 + $0x1e] sm:$0x3] %vm2636_vm2, %v1464_v2 }
 0x152   :  { %v3277_v3 = vpop.f32.mrf.mxu0  ;;  %v3296_v4 = vpop.f32.mrf.mxu1 }
 0x162   :  { %v1537_v5 = vpop.f32.mrf.mxu0  ;;  %v1610_v6 = vpop.f32.mrf.mxu1 }
 0x163   :  { %2653 = vst.msk [vmem:[%s4966_s2 + $0x20] sm:$0x3] %vm2636_vm2, %v1537_v5  ;;  %2654 = vst.msk [vmem:[%s4966_s2 + $0x22] sm:$0x3] %vm2636_vm2, %v1610_v6 }
 0x164   :  { %v3315_v7 = vpop.f32.mrf.mxu0  ;;  %v3334_v8 = vpop.f32.mrf.mxu1 }
 0x174   :  { %v1683_v9 = vpop.f32.mrf.mxu0  ;;  %v1756_v10 = vpop.f32.mrf.mxu1 }
 0x175   :  { %2655 = vst.msk [vmem:[%s4966_s2 + $0x24] sm:$0x3] %vm2636_vm2, %v1683_v9  ;;  %2656 = vst.msk [vmem:[%s4966_s2 + $0x26] sm:$0x3] %vm2636_vm2, %v1756_v10 }
 0x176   :  { %v3353_v11 = vpop.f32.mrf.mxu0  ;;  %v3372_v12 = vpop.f32.mrf.mxu1 }
 0x186   :  { %v1829_v13 = vpop.f32.mrf.mxu0  ;;  %v1902_v14 = vpop.f32.mrf.mxu1 }
 0x187   :  { %2657 = vst.msk [vmem:[%s4966_s2 + $0x28] sm:$0x3] %vm2636_vm2, %v1829_v13  ;;  %2658 = vst.msk [vmem:[%s4966_s2 + $0x2a] sm:$0x3] %vm2636_vm2, %v1902_v14 }
 0x188   :  { %v3391_v15 = vpop.f32.mrf.mxu0  ;;  %v3410_v16 = vpop.f32.mrf.mxu1 }
 0x198   :  { %v1975_v17 = vpop.f32.mrf.mxu0  ;;  %v2048_v18 = vpop.f32.mrf.mxu1 }
 0x199   :  { %2659 = vst.msk [vmem:[%s4966_s2 + $0x2c] sm:$0x3] %vm2636_vm2, %v1975_v17  ;;  %2660 = vst.msk [vmem:[%s4966_s2 + $0x2e] sm:$0x3] %vm2636_vm2, %v2048_v18 }
 0x19a   :  { %v3429_v19 = vpop.f32.mrf.mxu0  ;;  %v3448_v20 = vpop.f32.mrf.mxu1 }
 0x1aa   :  { %v2121_v21 = vpop.f32.mrf.mxu0  ;;  %v2194_v22 = vpop.f32.mrf.mxu1 }
 0x1ab   :  { %2661 = vst.msk [vmem:[%s4966_s2 + $0x30] sm:$0x3] %vm2636_vm2, %v2121_v21  ;;  %2662 = vst.msk [vmem:[%s4966_s2 + $0x32] sm:$0x3] %vm2636_vm2, %v2194_v22 }
 0x1ac   :  { %v3467_v23 = vpop.f32.mrf.mxu0  ;;  %v3486_v24 = vpop.f32.mrf.mxu1 }
 0x1bc   :  { %v2267_v25 = vpop.f32.mrf.mxu0  ;;  %v2340_v26 = vpop.f32.mrf.mxu1 }
 0x1bd   :  { %2663 = vst.msk [vmem:[%s4966_s2 + $0x34] sm:$0x3] %vm2636_vm2, %v2267_v25  ;;  %2664 = vst.msk [vmem:[%s4966_s2 + $0x36] sm:$0x3] %vm2636_vm2, %v2340_v26 }
 0x1be   :  { %v3505_v27 = vpop.f32.mrf.mxu0  ;;  %v3524_v28 = vpop.f32.mrf.mxu1 }
 0x1ce   :  { %v2413_v29 = vpop.f32.mrf.mxu0  ;;  %v2486_v30 = vpop.f32.mrf.mxu1 }
 0x1cf   :  { %2665 = vst.msk [vmem:[%s4966_s2 + $0x38] sm:$0x3] %vm2636_vm2, %v2413_v29  ;;  %2666 = vst.msk [vmem:[%s4966_s2 + $0x3a] sm:$0x3] %vm2636_vm2, %v2486_v30 }
 0x1d0   :  { %v3543_v31 = vpop.f32.mrf.mxu0  ;;  %v3562_v32 = vpop.f32.mrf.mxu1 }
 0x1e0   :  { %v2559_v33 = vpop.f32.mrf.mxu0  ;;  %v2632_v34 = vpop.f32.mrf.mxu1 }
 0x1e1   :  { %2667 = vst.msk [vmem:[%s4966_s2 + $0x3c] sm:$0x3] %vm2636_vm2, %v2559_v33  ;;  %2668 = vst.msk [vmem:[%s4966_s2 + $0x3e] sm:$0x3] %vm2636_vm2, %v2632_v34 }
 0x1e2   :  { %v3581_v35 = vpop.f32.mrf.mxu0  ;;  %v3600_v36 = vpop.f32.mrf.mxu1 }

// kernel: reverse.12
= control target key start
LH: loop header
LB: loop body
LE: loop exit
PB: predicated region body
PF: predicated region fallthrough
CT: control target
= control target key end

     0   :  { %s344_s0 = inlined_call_operand.vmem [shape: f32[2,32,16,7], index: 0, kind: input, shape index: {}]   ;;  %s345_s1 = inlined_call_operand.vmem [shape: f32[2,32,16,7], index: 1, kind: output, shape index: {}]  }
   0x1   :  { %v112_v0 = vld [vmem:[%s344_s0 + $0x60] sm:$0xff]  ;;  %v113_v1 = vld [vmem:[%s344_s0 + $0xd0] sm:$0xff]  ;;  %v138_v14 = vld [vmem:[%s344_s0 + $0x68] sm:$0xff] }
   0x2   :  { %v115_v2 = vld [vmem:[%s344_s0 + $0x50] sm:$0xff]  ;;  %4 = vst [vmem:[%s345_s1] sm:$0xff] %v112_v0  ;;  %114 = vst [vmem:[%s345_s1 + $0x70] sm:$0xff] %v113_v1  ;;  %v117_v3 = vld [vmem:[%s344_s0 + $0xc0] sm:$0xff] }
   0x3   :  { %116 = vst [vmem:[%s345_s1 + $0x10] sm:$0xff] %v115_v2  ;;  %v119_v4 = vld [vmem:[%s344_s0 + $0x40] sm:$0xff]  ;;  %v121_v5 = vld [vmem:[%s344_s0 + $0xb0] sm:$0xff]  ;;  %118 = vst [vmem:[%s345_s1 + $0x80] sm:$0xff] %v117_v3 }
   0x4   :  { %120 = vst [vmem:[%s345_s1 + $0x20] sm:$0xff] %v119_v4  ;;  %122 = vst [vmem:[%s345_s1 + $0x90] sm:$0xff] %v121_v5  ;;  %v123_v6 = vld [vmem:[%s344_s0 + $0x30] sm:$0xff]  ;;  %v125_v7 = vld [vmem:[%s344_s0 + $0xa0] sm:$0xff] }
   0x5   :  { %v127_v8 = vld [vmem:[%s344_s0 + $0x20] sm:$0xff]  ;;  %124 = vst [vmem:[%s345_s1 + $0x30] sm:$0xff] %v123_v6  ;;  %126 = vst [vmem:[%s345_s1 + $0xa0] sm:$0xff] %v125_v7  ;;  %v129_v9 = vld [vmem:[%s344_s0 + $0x90] sm:$0xff] }
   0x6   :  { %128 = vst [vmem:[%s345_s1 + $0x40] sm:$0xff] %v127_v8  ;;  %v131_v10 = vld [vmem:[%s344_s0 + $0x10] sm:$0xff]  ;;  %v133_v11 = vld [vmem:[%s344_s0 + $0x80] sm:$0xff]  ;;  %130 = vst [vmem:[%s345_s1 + $0xb0] sm:$0xff] %v129_v9 }
   0x7   :  { %132 = vst [vmem:[%s345_s1 + $0x50] sm:$0xff] %v131_v10  ;;  %134 = vst [vmem:[%s345_s1 + $0xc0] sm:$0xff] %v133_v11  ;;  %v49_v12 = vld [vmem:[%s344_s0] sm:$0xff]  ;;  %v136_v13 = vld [vmem:[%s344_s0 + $0x70] sm:$0xff] }
   0x8   :  { %135 = vst [vmem:[%s345_s1 + $0x60] sm:$0xff] %v49_v12  ;;  %137 = vst [vmem:[%s345_s1 + $0xd0] sm:$0xff] %v136_v13  ;;  %v140_v15 = vld [vmem:[%s344_s0 + $0xd8] sm:$0xff]  ;;  %v144_v17 = vld [vmem:[%s344_s0 + $0xc8] sm:$0xff] }
   0x9   :  { %139 = vst [vmem:[%s345_s1 + $0x8] sm:$0xff] %v138_v14  ;;  %v142_v16 = vld [vmem:[%s344_s0 + $0x58] sm:$0xff]  ;;  %141 = vst [vmem:[%s345_s1 + $0x78] sm:$0xff] %v140_v15  ;;  %v146_v18 = vld [vmem:[%s344_s0 + $0x48] sm:$0xff] }
   0xa   :  { %143 = vst [vmem:[%s345_s1 + $0x18] sm:$0xff] %v142_v16  ;;  %145 = vst [vmem:[%s345_s1 + $0x88] sm:$0xff] %v144_v17  ;;  %v148_v19 = vld [vmem:[%s344_s0 + $0xb8] sm:$0xff]  ;;  %v152_v21 = vld [vmem:[%s344_s0 + $0xa8] sm:$0xff] }
   0xb   :  { %v150_v20 = vld [vmem:[%s344_s0 + $0x38] sm:$0xff]  ;;  %147 = vst [vmem:[%s345_s1 + $0x28] sm:$0xff] %v146_v18  ;;  %149 = vst [vmem:[%s345_s1 + $0x98] sm:$0xff] %v148_v19  ;;  %v154_v22 = vld [vmem:[%s344_s0 + $0x28] sm:$0xff] }
   0xc   :  { %151 = vst [vmem:[%s345_s1 + $0x38] sm:$0xff] %v150_v20  ;;  %v156_v23 = vld [vmem:[%s344_s0 + $0x98] sm:$0xff]  ;;  %153 = vst [vmem:[%s345_s1 + $0xa8] sm:$0xff] %v152_v21  ;;  %v160_v25 = vld [vmem:[%s344_s0 + $0x88] sm:$0xff] }
   0xd   :  { %155 = vst [vmem:[%s345_s1 + $0x48] sm:$0xff] %v154_v22  ;;  %157 = vst [vmem:[%s345_s1 + $0xb8] sm:$0xff] %v156_v23  ;;  %v158_v24 = vld [vmem:[%s344_s0 + $0x18] sm:$0xff]  ;;  %v162_v26 = vld [vmem:[%s344_s0 + $0x8] sm:$0xff] }
   0xe   :  { %159 = vst [vmem:[%s345_s1 + $0x58] sm:$0xff] %v158_v24  ;;  %161 = vst [vmem:[%s345_s1 + $0xc8] sm:$0xff] %v160_v25  ;;  %v164_v27 = vld [vmem:[%s344_s0 + $0x78] sm:$0xff] }
   0xf   :  { %163 = vst [vmem:[%s345_s1 + $0x68] sm:$0xff] %v162_v26  ;;  %165 = vst [vmem:[%s345_s1 + $0xd8] sm:$0xff] %v164_v27 }

// kernel: fnn2d_mae_forward.16
= control target key start
LH: loop header
LB: loop body
LE: loop exit
PB: predicated region body
PF: predicated region fallthrough
CT: control target
= control target key end

     0   :  { %s660_s1 = inlined_call_operand.vmem [shape: f32[128,128], index: 1, kind: input, shape index: {}]   ;;  %s661_s0 = inlined_call_operand.vmem [shape: f32[128,128], index: 0, kind: input, shape index: {}]   ;;  %s662_s2 = inlined_call_operand.vmem [shape: f32[1,128], index: 2, kind: input, shape index: {}]   ;;  %s663_s3 = inlined_call_operand.vmem [shape: f32[128,128], index: 3, kind: input, shape index: {}]   ;;  %s664_s4 = inlined_call_operand.vmem [shape: f32[128,128], index: 4, kind: output, shape index: {}]  }
   0x1   :  { %v48_v0 = vld [vmem:[%s660_s1 + $0x78] sm:$0xff]  ;;  %v47_v1 = vld [vmem:[%s660_s1 + $0x70] sm:$0xff]  ;;  %v46_v2 = vld [vmem:[%s660_s1 + $0x68] sm:$0xff] }
   0x2   :  { %302 = vmatprep.subr.mxu0 %v48_v0  ;;  %358 = vmatprep.subr.mxu1 %v48_v0  ;;  %v45_v3 = vld [vmem:[%s660_s1 + $0x60] sm:$0xff]  ;;  %v44_v4 = vld [vmem:[%s660_s1 + $0x58] sm:$0xff]  ;;  %v43_v5 = vld [vmem:[%s660_s1 + $0x50] sm:$0xff] }
   0x3   :  { %303 = vmatpush3.msra.mxu0 %v48_v0  ;;  %374 = vmatpush3.msra.mxu1 %v48_v0  ;;  %v42_v6 = vld [vmem:[%s660_s1 + $0x48] sm:$0xff]  ;;  %v41_v7 = vld [vmem:[%s660_s1 + $0x40] sm:$0xff]  ;;  %v40_v8 = vld [vmem:[%s660_s1 + $0x38] sm:$0xff] }
   0x4   :  { %304 = vmatprep.subr.mxu0 %v47_v1  ;;  %359 = vmatprep.subr.mxu1 %v47_v1  ;;  %v39_v9 = vld [vmem:[%s660_s1 + $0x30] sm:$0xff]  ;;  %v38_v10 = vld [vmem:[%s660_s1 + $0x28] sm:$0xff]  ;;  %v37_v11 = vld [vmem:[%s660_s1 + $0x20] sm:$0xff] }
   0x5   :  { %305 = vmatpush3.msra.mxu0 %v47_v1  ;;  %375 = vmatpush3.msra.mxu1 %v47_v1  ;;  %v36_v12 = vld [vmem:[%s660_s1 + $0x18] sm:$0xff]  ;;  %v35_v13 = vld [vmem:[%s660_s1 + $0x10] sm:$0xff]  ;;  %v34_v14 = vld [vmem:[%s660_s1 + $0x8] sm:$0xff] }
   0x6   :  { %306 = vmatprep.subr.mxu0 %v46_v2  ;;  %360 = vmatprep.subr.mxu1 %v46_v2  ;;  %v33_v15 = vld [vmem:[%s660_s1] sm:$0xff]  ;;  %v18_v18 = vld [vmem:[%s661_s0 + $0x8] sm:$0xff]  ;;  %v19_v20 = vld [vmem:[%s661_s0 + $0x10] sm:$0xff] }
   0x7   :  { %307 = vmatpush3.msra.mxu0 %v46_v2  ;;  %376 = vmatpush3.msra.mxu1 %v46_v2  ;;  %v17_v16 = vld [vmem:[%s661_s0] sm:$0xff]  ;;  %v26_v19 = vld [vmem:[%s661_s0 + $0x48] sm:$0xff]  ;;  %v27_v21 = vld [vmem:[%s661_s0 + $0x50] sm:$0xff] }
   0x8   :  { %308 = vmatprep.subr.mxu0 %v45_v3  ;;  %361 = vmatprep.subr.mxu1 %v45_v3  ;;  %v25_v17 = vld [vmem:[%s661_s0 + $0x40] sm:$0xff]  ;;  %v20_v22 = vld [vmem:[%s661_s0 + $0x18] sm:$0xff]  ;;  %v22_v26 = vld [vmem:[%s661_s0 + $0x28] sm:$0xff] }
   0x9   :  { %309 = vmatpush3.msra.mxu0 %v45_v3  ;;  %377 = vmatpush3.msra.mxu1 %v45_v3  ;;  %v28_v23 = vld [vmem:[%s661_s0 + $0x58] sm:$0xff]  ;;  %v21_v24 = vld [vmem:[%s661_s0 + $0x20] sm:$0xff]  ;;  %v30_v27 = vld [vmem:[%s661_s0 + $0x68] sm:$0xff] }
   0xa   :  { %310 = vmatprep.subr.mxu0 %v44_v4  ;;  %362 = vmatprep.subr.mxu1 %v44_v4  ;;  %v29_v25 = vld [vmem:[%s661_s0 + $0x60] sm:$0xff]  ;;  %v23_v28 = vld [vmem:[%s661_s0 + $0x30] sm:$0xff]  ;;  %v24_v30 = vld [vmem:[%s661_s0 + $0x38] sm:$0xff] }
   0xb   :  { %311 = vmatpush3.msra.mxu0 %v44_v4  ;;  %378 = vmatpush3.msra.mxu1 %v44_v4  ;;  %v31_v29 = vld [vmem:[%s661_s0 + $0x70] sm:$0xff]  ;;  %v32_v31 = vld [vmem:[%s661_s0 + $0x78] sm:$0xff]  ;;  %v546_v32 = vld [vmem:[%s662_s2] ss:$0 sm:$0xff] }
   0xc   :  { %312 = vmatprep.subr.mxu0 %v43_v5  ;;  %363 = vmatprep.subr.mxu1 %v43_v5  ;;  %v202_v34 = vld [vmem:[%s663_s3 + $0x8] sm:$0xff]  ;;  %v201_v40 = vld [vmem:[%s663_s3] sm:$0xff]  ;;  %v204_v48 = vld [vmem:[%s663_s3 + $0x18] sm:$0xff] }
   0xd   :  { %313 = vmatpush3.msra.mxu0 %v43_v5  ;;  %379 = vmatpush3.msra.mxu1 %v43_v5  ;;  %v210_v36 = vld [vmem:[%s663_s3 + $0x48] sm:$0xff]  ;;  %v209_v42 = vld [vmem:[%s663_s3 + $0x40] sm:$0xff]  ;;  %v212_v53 = vld [vmem:[%s663_s3 + $0x58] sm:$0xff] }
   0xe   :  { %314 = vmatprep.subr.mxu0 %v42_v6  ;;  %364 = vmatprep.subr.mxu1 %v42_v6  ;;  %v203_v56 = vld [vmem:[%s663_s3 + $0x10] sm:$0xff]  ;;  %v206_v0 = vld [vmem:[%s663_s3 + $0x28] sm:$0xff] }
   0xf   :  { %315 = vmatpush3.msra.mxu0 %v42_v6  ;;  %380 = vmatpush3.msra.mxu1 %v42_v6  ;;  %v211_v58 = vld [vmem:[%s663_s3 + $0x50] sm:$0xff]  ;;  %v214_v5 = vld [vmem:[%s663_s3 + $0x68] sm:$0xff] }
  0x10   :  { %316 = vmatprep.subr.mxu0 %v41_v7  ;;  %365 = vmatprep.subr.mxu1 %v41_v7 }
  0x11   :  { %317 = vmatpush3.msra.mxu0 %v41_v7  ;;  %381 = vmatpush3.msra.mxu1 %v41_v7 }
  0x12   :  { %318 = vmatprep.subr.mxu0 %v40_v8  ;;  %366 = vmatprep.subr.mxu1 %v40_v8 }
  0x13   :  { %319 = vmatpush3.msra.mxu0 %v40_v8  ;;  %382 = vmatpush3.msra.mxu1 %v40_v8  ;;  %v205_v8 = vld [vmem:[%s663_s3 + $0x20] sm:$0xff] }
  0x14   :  { %320 = vmatprep.subr.mxu0 %v39_v9  ;;  %367 = vmatprep.subr.mxu1 %v39_v9 }
  0x15   :  { %321 = vmatpush3.msra.mxu0 %v39_v9  ;;  %383 = vmatpush3.msra.mxu1 %v39_v9 }
  0x16   :  { %322 = vmatprep.subr.mxu0 %v38_v10  ;;  %368 = vmatprep.subr.mxu1 %v38_v10 }
  0x17   :  { %323 = vmatpush3.msra.mxu0 %v38_v10  ;;  %384 = vmatpush3.msra.mxu1 %v38_v10  ;;  %v213_v10 = vld [vmem:[%s663_s3 + $0x60] sm:$0xff] }
  0x18   :  { %324 = vmatprep.subr.mxu0 %v37_v11  ;;  %369 = vmatprep.subr.mxu1 %v37_v11 }
  0x19   :  { %325 = vmatpush3.msra.mxu0 %v37_v11  ;;  %385 = vmatpush3.msra.mxu1 %v37_v11 }
  0x1a   :  { %326 = vmatprep.subr.mxu0 %v36_v12  ;;  %370 = vmatprep.subr.mxu1 %v36_v12 }
  0x1b   :  { %327 = vmatpush3.msra.mxu0 %v36_v12  ;;  %386 = vmatpush3.msra.mxu1 %v36_v12 }
  0x1c   :  { %328 = vmatprep.subr.mxu0 %v35_v13  ;;  %371 = vmatprep.subr.mxu1 %v35_v13 }
  0x1d   :  { %329 = vmatpush3.msra.mxu0 %v35_v13  ;;  %387 = vmatpush3.msra.mxu1 %v35_v13 }
  0x1e   :  { %330 = vmatprep.subr.mxu0 %v34_v14  ;;  %372 = vmatprep.subr.mxu1 %v34_v14 }
  0x1f   :  { %331 = vmatpush3.msra.mxu0 %v34_v14  ;;  %388 = vmatpush3.msra.mxu1 %v34_v14 }
  0x20   :  { %332 = vmatprep.subr.mxu0 %v33_v15  ;;  %373 = vmatprep.subr.mxu1 %v33_v15 }
  0x21   :  { %333 = vmatpush3.msra.mxu0 %v33_v15  ;;  %389 = vmatpush3.msra.mxu1 %v33_v15 }
  0x22   :  { %334 = vmatprep.mubr.f32.mxu0 %v17_v16  ;;  %346 = vmatprep.mubr.f32.mxu1 %v25_v17  ;;  %v208_v16 = vld [vmem:[%s663_s3 + $0x38] sm:$0xff] }
  0x23   :  { %335 = vmatmul.mubr.f32.vlgmr.msra.gmra.mxu0 %v18_v18  ;;  %347 = vmatmul.mubr.f32.vlgmr.msra.gmra.mxu1 %v26_v19 }
  0x24   :  { %337 = vmatprep.mubr.f32.mxu0 %v19_v20  ;;  %349 = vmatprep.mubr.f32.mxu1 %v27_v21  ;;  %v216_v21 = vld [vmem:[%s663_s3 + $0x78] sm:$0xff] }
  0x27   :  { %338 = vmatmul.mubr.f32.gmra.mxu0 %v20_v22  ;;  %350 = vmatmul.mubr.f32.gmra.mxu1 %v28_v23 }
  0x28   :  { %340 = vmatprep.mubr.f32.mxu0 %v21_v24  ;;  %352 = vmatprep.mubr.f32.mxu1 %v29_v25  ;;  %v207_v24 = vld [vmem:[%s663_s3 + $0x30] sm:$0xff] }
  0x2b   :  { %341 = vmatmul.mubr.f32.gmra.mxu0 %v22_v26  ;;  %353 = vmatmul.mubr.f32.gmra.mxu1 %v30_v27  ;;  %v215_v26 = vld [vmem:[%s663_s3 + $0x70] sm:$0xff] }
  0x2c   :  { %343 = vmatprep.mubr.f32.mxu0 %v23_v28  ;;  %355 = vmatprep.mubr.f32.mxu1 %v31_v29 }
  0x2f   :  { %344 = vmatmul.mubr.f32.gmra.mxu0 %v24_v30  ;;  %356 = vmatmul.mubr.f32.gmra.mxu1 %v32_v31 }
  0xe3   :  { %v336_v33 = vpop.f32.mrf.mxu0  ;;  %v348_v35 = vpop.f32.mrf.mxu1 }
  0xe4   :  { %v128_v37 = vadd.f32 %v336_v33, %v546_v32  ;;  %v168_v38 = vadd.f32 %v348_v35, %v546_v32 }
  0xe5   :  { %v122_v39 = vpop.f32.mrf.mxu0  ;;  %v162_v41 = vpop.f32.mrf.mxu1 }
  0xe6   :  { %v218_v43 = vadd.f32 %v202_v34, %v128_v37  ;;  %v226_v44 = vadd.f32 %v210_v36, %v168_v38  ;;  %v123_v45 = vadd.f32 %v546_v32, %v122_v39  ;;  %v163_v46 = vadd.f32 %v546_v32, %v162_v41 }
  0xe7   :  { %v339_v47 = vpop.f32.mrf.mxu0  ;;  %v351_v49 = vpop.f32.mrf.mxu1 }
  0xe8   :  { %390 = vtanh.f32 %v218_v43  ;;  %v217_v50 = vadd.f32 %v201_v40, %v123_v45  ;;  %v225_v51 = vadd.f32 %v209_v42, %v163_v46  ;;  %v138_v52 = vadd.f32 %v339_v47, %v546_v32 }
  0xe9   :  { %392 = vtanh.f32 %v226_v44  ;;  %v178_v54 = vadd.f32 %v351_v49, %v546_v32  ;;  %v132_v55 = vpop.f32.mrf.mxu0  ;;  %v172_v57 = vpop.f32.mrf.mxu1 }
  0xea   :  { %394 = vtanh.f32 %v217_v50  ;;  %v220_v59 = vadd.f32 %v204_v48, %v138_v52  ;;  %v133_v60 = vadd.f32 %v546_v32, %v132_v55  ;;  %v173_v61 = vadd.f32 %v546_v32, %v172_v57 }
  0xeb   :  { %396 = vtanh.f32 %v225_v51  ;;  %v228_v62 = vadd.f32 %v212_v53, %v178_v54  ;;  %v342_v63 = vpop.f32.mrf.mxu0  ;;  %v354_v1 = vpop.f32.mrf.mxu1 }
  0xec   :  { %398 = vtanh.f32 %v220_v59  ;;  %v219_v2 = vadd.f32 %v203_v56, %v133_v60  ;;  %v227_v3 = vadd.f32 %v211_v58, %v173_v61  ;;  %v148_v4 = vadd.f32 %v342_v63, %v546_v32 }
  0xed   :  { %400 = vtanh.f32 %v228_v62  ;;  %v188_v6 = vadd.f32 %v354_v1, %v546_v32  ;;  %v142_v7 = vpop.f32.mrf.mxu0  ;;  %v182_v9 = vpop.f32.mrf.mxu1 }
  0xee   :  { %402 = vtanh.f32 %v219_v2  ;;  %v222_v11 = vadd.f32 %v206_v0, %v148_v4  ;;  %v143_v12 = vadd.f32 %v546_v32, %v142_v7  ;;  %v183_v13 = vadd.f32 %v546_v32, %v182_v9 }
  0xef   :  { %404 = vtanh.f32 %v227_v3  ;;  %v230_v14 = vadd.f32 %v214_v5, %v188_v6  ;;  %v345_v15 = vpop.f32.mrf.mxu0  ;;  %v357_v17 = vpop.f32.mrf.mxu1 }
  0xf0   :  { %406 = vtanh.f32 %v222_v11  ;;  %v221_v18 = vadd.f32 %v205_v8, %v143_v12  ;;  %v229_v19 = vadd.f32 %v213_v10, %v183_v13  ;;  %v158_v20 = vadd.f32 %v345_v15, %v546_v32 }
  0xf1   :  { %408 = vtanh.f32 %v230_v14  ;;  %v198_v22 = vadd.f32 %v357_v17, %v546_v32  ;;  %v152_v23 = vpop.f32.mrf.mxu0  ;;  %v192_v25 = vpop.f32.mrf.mxu1 }
  0xf2   :  { %410 = vtanh.f32 %v221_v18  ;;  %v224_v27 = vadd.f32 %v208_v16, %v158_v20  ;;  %v153_v28 = vadd.f32 %v546_v32, %v152_v23  ;;  %v193_v29 = vadd.f32 %v546_v32, %v192_v25 }
  0xf3   :  { %412 = vtanh.f32 %v229_v19  ;;  %v232_v30 = vadd.f32 %v216_v21, %v198_v22 }
  0xf4   :  { %414 = vtanh.f32 %v224_v27  ;;  %v223_v31 = vadd.f32 %v207_v24, %v153_v28  ;;  %v231_v33 = vadd.f32 %v215_v26, %v193_v29 }
  0xf5   :  { %v391_v34 = vpop.eup %390  ;;  %416 = vtanh.f32 %v232_v30 }
  0xf6   :  { %v393_v35 = vpop.eup %392  ;;  %250 = vst [vmem:[%s664_s4 + $0x8] sm:$0xff] %v391_v34  ;;  %418 = vtanh.f32 %v223_v31 }
  0xf7   :  { %v395_v36 = vpop.eup %394  ;;  %258 = vst [vmem:[%s664_s4 + $0x48] sm:$0xff] %v393_v35  ;;  %420 = vtanh.f32 %v231_v33 }
  0xf8   :  { %v397_v32 = vpop.eup %396  ;;  %249 = vst [vmem:[%s664_s4] sm:$0xff] %v395_v36 }
  0xf9   :  { %v399_v37 = vpop.eup %398  ;;  %257 = vst [vmem:[%s664_s4 + $0x40] sm:$0xff] %v397_v32 }
  0xfa   :  { %v401_v38 = vpop.eup %400  ;;  %252 = vst [vmem:[%s664_s4 + $0x18] sm:$0xff] %v399_v37 }
  0xfb   :  { %v403_v39 = vpop.eup %402  ;;  %260 = vst [vmem:[%s664_s4 + $0x58] sm:$0xff] %v401_v38 }
  0xfc   :  { %v405_v40 = vpop.eup %404  ;;  %251 = vst [vmem:[%s664_s4 + $0x10] sm:$0xff] %v403_v39 }
  0xfd   :  { %v407_v41 = vpop.eup %406  ;;  %259 = vst [vmem:[%s664_s4 + $0x50] sm:$0xff] %v405_v40 }
  0xfe   :  { %v409_v42 = vpop.eup %408  ;;  %254 = vst [vmem:[%s664_s4 + $0x28] sm:$0xff] %v407_v41 }
  0xff   :  { %v411_v43 = vpop.eup %410  ;;  %262 = vst [vmem:[%s664_s4 + $0x68] sm:$0xff] %v409_v42 }
 0x100   :  { %v413_v44 = vpop.eup %412  ;;  %253 = vst [vmem:[%s664_s4 + $0x20] sm:$0xff] %v411_v43 }
 0x101   :  { %v415_v45 = vpop.eup %414  ;;  %261 = vst [vmem:[%s664_s4 + $0x60] sm:$0xff] %v413_v44 }
 0x102   :  { %v417_v46 = vpop.eup %416  ;;  %256 = vst [vmem:[%s664_s4 + $0x38] sm:$0xff] %v415_v45 }
 0x103   :  { %v419_v47 = vpop.eup %418  ;;  %264 = vst [vmem:[%s664_s4 + $0x78] sm:$0xff] %v417_v46 }
 0x104   :  { %v421_v48 = vpop.eup %420  ;;  %255 = vst [vmem:[%s664_s4 + $0x30] sm:$0xff] %v419_v47 }
 0x105   :  { %263 = vst [vmem:[%s664_s4 + $0x70] sm:$0xff] %v421_v48 }

// kernel: fnn2d_mae_forward.20
= control target key start
LH: loop header
LB: loop body
LE: loop exit
PB: predicated region body
PF: predicated region fallthrough
CT: control target
= control target key end

     0   :  { %s904_s1 = inlined_call_operand.vmem [shape: f32[128,128], index: 1, kind: input, shape index: {}]   ;;  %s905_s0 = inlined_call_operand.vmem [shape: f32[128,128], index: 0, kind: input, shape index: {}]   ;;  %s906_s4 = inlined_call_operand.vmem [shape: f32[128,128], index: 4, kind: input, shape index: {}]   ;;  %s907_s2 = inlined_call_operand.vmem [shape: f32[1,128], index: 2, kind: input, shape index: {}]   ;;  %s908_s3 = inlined_call_operand.vmem [shape: f32[128,128], index: 3, kind: input, shape index: {}]   ;;  %s909_s5 = inlined_call_operand.vmem [shape: f32[1,128], index: 5, kind: input, shape index: {}]   ;;  %s910_s6 = inlined_call_operand.vmem [shape: f32[128,128], index: 6, kind: output, shape index: {}]  }
   0x1   :  { %v54_v0 = vld [vmem:[%s904_s1 + $0x78] sm:$0xff]  ;;  %v53_v1 = vld [vmem:[%s904_s1 + $0x70] sm:$0xff]  ;;  %v52_v2 = vld [vmem:[%s904_s1 + $0x68] sm:$0xff] }
   0x2   :  { %493 = vmatprep.subr.mxu0 %v54_v0  ;;  %v51_v3 = vld [vmem:[%s904_s1 + $0x60] sm:$0xff]  ;;  %v50_v5 = vld [vmem:[%s904_s1 + $0x58] sm:$0xff]  ;;  %v49_v6 = vld [vmem:[%s904_s1 + $0x50] sm:$0xff] }
   0x3   :  { %494 = vmatpush3.msra.mxu0 %v54_v0  ;;  %v23_v4 = vld [vmem:[%s905_s0] sm:$0xff]  ;;  %v48_v7 = vld [vmem:[%s904_s1 + $0x48] sm:$0xff]  ;;  %v254_v8 = vld [vmem:[%s906_s4 + $0x78] sm:$0xff] }
   0x4   :  { %495 = vmatprep.subr.mxu0 %v53_v1  ;;  %525 = vmatprep.mubr.f32.mxu0 %v23_v4  ;;  %v253_v9 = vld [vmem:[%s906_s4 + $0x70] sm:$0xff]  ;;  %v47_v10 = vld [vmem:[%s904_s1 + $0x40] sm:$0xff]  ;;  %v252_v11 = vld [vmem:[%s906_s4 + $0x68] sm:$0xff] }
   0x5   :  { %496 = vmatpush3.msra.mxu0 %v53_v1  ;;  %549 = vmatprep.subr.mxu1 %v254_v8  ;;  %v46_v12 = vld [vmem:[%s904_s1 + $0x38] sm:$0xff]  ;;  %v251_v13 = vld [vmem:[%s906_s4 + $0x60] sm:$0xff]  ;;  %v45_v14 = vld [vmem:[%s904_s1 + $0x30] sm:$0xff] }
   0x6   :  { %497 = vmatprep.subr.mxu0 %v52_v2  ;;  %550 = vmatpush3.msra.mxu1 %v254_v8  ;;  %v250_v15 = vld [vmem:[%s906_s4 + $0x58] sm:$0xff]  ;;  %v44_v16 = vld [vmem:[%s904_s1 + $0x28] sm:$0xff]  ;;  %v249_v17 = vld [vmem:[%s906_s4 + $0x50] sm:$0xff] }
   0x7   :  { %498 = vmatpush3.msra.mxu0 %v52_v2  ;;  %551 = vmatprep.subr.mxu1 %v253_v9  ;;  %v43_v18 = vld [vmem:[%s904_s1 + $0x20] sm:$0xff]  ;;  %v248_v19 = vld [vmem:[%s906_s4 + $0x48] sm:$0xff]  ;;  %v42_v20 = vld [vmem:[%s904_s1 + $0x18] sm:$0xff] }
   0x8   :  { %499 = vmatprep.subr.mxu0 %v51_v3  ;;  %552 = vmatpush3.msra.mxu1 %v253_v9  ;;  %v247_v21 = vld [vmem:[%s906_s4 + $0x40] sm:$0xff]  ;;  %v41_v22 = vld [vmem:[%s904_s1 + $0x10] sm:$0xff]  ;;  %v246_v23 = vld [vmem:[%s906_s4 + $0x38] sm:$0xff] }
   0x9   :  { %500 = vmatpush3.msra.mxu0 %v51_v3  ;;  %553 = vmatprep.subr.mxu1 %v252_v11  ;;  %v40_v24 = vld [vmem:[%s904_s1 + $0x8] sm:$0xff]  ;;  %v245_v25 = vld [vmem:[%s906_s4 + $0x30] sm:$0xff]  ;;  %v39_v26 = vld [vmem:[%s904_s1] sm:$0xff] }
   0xa   :  { %501 = vmatprep.subr.mxu0 %v50_v5  ;;  %554 = vmatpush3.msra.mxu1 %v252_v11  ;;  %v244_v27 = vld [vmem:[%s906_s4 + $0x28] sm:$0xff]  ;;  %v243_v29 = vld [vmem:[%s906_s4 + $0x20] sm:$0xff]  ;;  %v25_v30 = vld [vmem:[%s905_s0 + $0x10] sm:$0xff] }
   0xb   :  { %502 = vmatpush3.msra.mxu0 %v50_v5  ;;  %555 = vmatprep.subr.mxu1 %v251_v13  ;;  %v24_v28 = vld [vmem:[%s905_s0 + $0x8] sm:$0xff]  ;;  %v26_v31 = vld [vmem:[%s905_s0 + $0x18] sm:$0xff]  ;;  %v27_v32 = vld [vmem:[%s905_s0 + $0x20] sm:$0xff] }
   0xc   :  { %503 = vmatprep.subr.mxu0 %v49_v6  ;;  %556 = vmatpush3.msra.mxu1 %v251_v13  ;;  %v28_v33 = vld [vmem:[%s905_s0 + $0x28] sm:$0xff]  ;;  %v29_v34 = vld [vmem:[%s905_s0 + $0x30] sm:$0xff]  ;;  %v30_v35 = vld [vmem:[%s905_s0 + $0x38] sm:$0xff] }
   0xd   :  { %504 = vmatpush3.msra.mxu0 %v49_v6  ;;  %557 = vmatprep.subr.mxu1 %v250_v15  ;;  %v31_v36 = vld [vmem:[%s905_s0 + $0x40] sm:$0xff]  ;;  %v32_v37 = vld [vmem:[%s905_s0 + $0x48] sm:$0xff]  ;;  %v33_v38 = vld [vmem:[%s905_s0 + $0x50] sm:$0xff] }
   0xe   :  { %505 = vmatprep.subr.mxu0 %v48_v7  ;;  %558 = vmatpush3.msra.mxu1 %v250_v15  ;;  %v34_v39 = vld [vmem:[%s905_s0 + $0x58] sm:$0xff]  ;;  %v35_v40 = vld [vmem:[%s905_s0 + $0x60] sm:$0xff]  ;;  %v36_v41 = vld [vmem:[%s905_s0 + $0x68] sm:$0xff] }
   0xf   :  { %506 = vmatpush3.msra.mxu0 %v48_v7  ;;  %559 = vmatprep.subr.mxu1 %v249_v17  ;;  %v37_v42 = vld [vmem:[%s905_s0 + $0x70] sm:$0xff]  ;;  %v38_v43 = vld [vmem:[%s905_s0 + $0x78] sm:$0xff]  ;;  %v240_v46 = vld [vmem:[%s906_s4 + $0x8] sm:$0xff] }
  0x10   :  { %507 = vmatprep.subr.mxu0 %v47_v10  ;;  %560 = vmatpush3.msra.mxu1 %v249_v17  ;;  %v242_v44 = vld [vmem:[%s906_s4 + $0x18] sm:$0xff]  ;;  %v241_v45 = vld [vmem:[%s906_s4 + $0x10] sm:$0xff]  ;;  %v239_v47 = vld [vmem:[%s906_s4] sm:$0xff] }
  0x11   :  { %508 = vmatpush3.msra.mxu0 %v47_v10  ;;  %561 = vmatprep.subr.mxu1 %v248_v19  ;;  %v787_v48 = vld [vmem:[%s907_s2] ss:$0 sm:$0xff]  ;;  %v208_v53 = vld [vmem:[%s908_s3 + $0x8] sm:$0xff]  ;;  %v209_v60 = vld [vmem:[%s908_s3 + $0x10] sm:$0xff] }
  0x12   :  { %509 = vmatprep.subr.mxu0 %v46_v12  ;;  %562 = vmatpush3.msra.mxu1 %v248_v19  ;;  %v207_v52 = vld [vmem:[%s908_s3] sm:$0xff]  ;;  %v210_v61 = vld [vmem:[%s908_s3 + $0x18] sm:$0xff]  ;;  %v212_v5 = vld [vmem:[%s908_s3 + $0x28] sm:$0xff] }
  0x13   :  { %510 = vmatpush3.msra.mxu0 %v46_v12  ;;  %563 = vmatprep.subr.mxu1 %v247_v21  ;;  %v211_v4 = vld [vmem:[%s908_s3 + $0x20] sm:$0xff]  ;;  %v213_v12 = vld [vmem:[%s908_s3 + $0x30] sm:$0xff]  ;;  %v214_v13 = vld [vmem:[%s908_s3 + $0x38] sm:$0xff] }
  0x14   :  { %511 = vmatprep.subr.mxu0 %v45_v14  ;;  %564 = vmatpush3.msra.mxu1 %v247_v21  ;;  %v216_v21 = vld [vmem:[%s908_s3 + $0x48] sm:$0xff] }
  0x15   :  { %512 = vmatpush3.msra.mxu0 %v45_v14  ;;  %565 = vmatprep.subr.mxu1 %v246_v23 }
  0x16   :  { %513 = vmatprep.subr.mxu0 %v44_v16  ;;  %566 = vmatpush3.msra.mxu1 %v246_v23 }
  0x17   :  { %514 = vmatpush3.msra.mxu0 %v44_v16  ;;  %567 = vmatprep.subr.mxu1 %v245_v25 }
  0x18   :  { %515 = vmatprep.subr.mxu0 %v43_v18  ;;  %568 = vmatpush3.msra.mxu1 %v245_v25 }
  0x19   :  { %516 = vmatpush3.msra.mxu0 %v43_v18  ;;  %569 = vmatprep.subr.mxu1 %v244_v27 }
  0x1a   :  { %517 = vmatprep.subr.mxu0 %v42_v20  ;;  %570 = vmatpush3.msra.mxu1 %v244_v27 }
  0x1b   :  { %518 = vmatpush3.msra.mxu0 %v42_v20  ;;  %571 = vmatprep.subr.mxu1 %v243_v29  ;;  %v215_v20 = vld [vmem:[%s908_s3 + $0x40] sm:$0xff] }
  0x1c   :  { %519 = vmatprep.subr.mxu0 %v41_v22  ;;  %572 = vmatpush3.msra.mxu1 %v243_v29  ;;  %v218_v29 = vld [vmem:[%s908_s3 + $0x58] sm:$0xff] }
  0x1d   :  { %520 = vmatpush3.msra.mxu0 %v41_v22  ;;  %573 = vmatprep.subr.mxu1 %v242_v44 }
  0x1e   :  { %521 = vmatprep.subr.mxu0 %v40_v24  ;;  %574 = vmatpush3.msra.mxu1 %v242_v44  ;;  %v221_v44 = vld [vmem:[%s908_s3 + $0x70] sm:$0xff] }
  0x1f   :  { %522 = vmatpush3.msra.mxu0 %v40_v24  ;;  %575 = vmatprep.subr.mxu1 %v241_v45 }
  0x20   :  { %523 = vmatprep.subr.mxu0 %v39_v26  ;;  %576 = vmatpush3.msra.mxu1 %v241_v45  ;;  %v222_v45 = vld [vmem:[%s908_s3 + $0x78] sm:$0xff] }
  0x21   :  { %524 = vmatpush3.msra.mxu0 %v39_v26  ;;  %577 = vmatprep.subr.mxu1 %v240_v46 }
  0x22   :  { %526 = vmatmul.mubr.f32.vlgmr.msra.gmra.mxu0 %v24_v28  ;;  %578 = vmatpush3.msra.mxu1 %v240_v46  ;;  %v217_v28 = vld [vmem:[%s908_s3 + $0x50] sm:$0xff] }
  0x23   :  { %528 = vmatprep.mubr.f32.mxu0 %v25_v30  ;;  %579 = vmatprep.subr.mxu1 %v239_v47 }
  0x24   :  { %580 = vmatpush3.msra.mxu1 %v239_v47 }
  0x26   :  { %529 = vmatmul.mubr.f32.gmra.mxu0 %v26_v31 }
  0x27   :  { %531 = vmatprep.mubr.f32.mxu0 %v27_v32 }
  0x2a   :  { %532 = vmatmul.mubr.f32.gmra.mxu0 %v28_v33 }
  0x2b   :  { %534 = vmatprep.mubr.f32.mxu0 %v29_v34 }
  0x2e   :  { %535 = vmatmul.mubr.f32.gmra.mxu0 %v30_v35 }
  0x2f   :  { %537 = vmatprep.mubr.f32.mxu0 %v31_v36  ;;  %v219_v36 = vld [vmem:[%s908_s3 + $0x60] sm:$0xff] }
  0x32   :  { %538 = vmatmul.mubr.f32.gmra.mxu0 %v32_v37  ;;  %v220_v37 = vld [vmem:[%s908_s3 + $0x68] sm:$0xff] }
  0x33   :  { %540 = vmatprep.mubr.f32.mxu0 %v33_v38 }
  0x36   :  { %541 = vmatmul.mubr.f32.gmra.mxu0 %v34_v39 }
  0x37   :  { %543 = vmatprep.mubr.f32.mxu0 %v35_v40 }
  0x3a   :  { %544 = vmatmul.mubr.f32.gmra.mxu0 %v36_v41 }
  0x3b   :  { %546 = vmatprep.mubr.f32.mxu0 %v37_v42 }
  0x3e   :  { %547 = vmatmul.mubr.f32.gmra.mxu0 %v38_v43 }
  0xe2   :  { %v527_v49 = vpop.f32.mrf.mxu0 }
  0xe3   :  { %v134_v50 = vadd.f32 %v527_v49, %v787_v48 }
  0xe4   :  { %v128_v51 = vpop.f32.mrf.mxu0 }
  0xe5   :  { %v129_v54 = vadd.f32 %v787_v48, %v128_v51  ;;  %v224_v57 = vadd.f32 %v208_v53, %v134_v50  ;;  %v428_v50 = vld [vmem:[%s909_s5] ss:$0 sm:$0xff] }
  0xe6   :  { %v530_v55 = vpop.f32.mrf.mxu0 }
  0xe7   :  { %v223_v56 = vadd.f32 %v207_v52, %v129_v54  ;;  %v144_v58 = vadd.f32 %v530_v55, %v787_v48 }
  0xe8   :  { %v138_v59 = vpop.f32.mrf.mxu0 }
  0xe9   :  { %v139_v62 = vadd.f32 %v787_v48, %v138_v59  ;;  %581 = vmatprep.mubr.f32.mxu1 %v223_v56  ;;  %v226_v1 = vadd.f32 %v210_v61, %v144_v58 }
  0xea   :  { %v533_v63 = vpop.f32.mrf.mxu0  ;;  %582 = vmatmul.mubr.f32.vlgmr.msra.gmra.mxu1 %v224_v57 }
  0xeb   :  { %v225_v0 = vadd.f32 %v209_v60, %v139_v62  ;;  %v154_v2 = vadd.f32 %v533_v63, %v787_v48 }
  0xec   :  { %v148_v3 = vpop.f32.mrf.mxu0 }
  0xed   :  { %v149_v6 = vadd.f32 %v787_v48, %v148_v3  ;;  %584 = vmatprep.mubr.f32.mxu1 %v225_v0  ;;  %v228_v9 = vadd.f32 %v212_v5, %v154_v2 }
  0xee   :  { %v536_v7 = vpop.f32.mrf.mxu0  ;;  %585 = vmatmul.mubr.f32.gmra.mxu1 %v226_v1 }
  0xef   :  { %v227_v8 = vadd.f32 %v211_v4, %v149_v6  ;;  %v164_v10 = vadd.f32 %v536_v7, %v787_v48 }
  0xf0   :  { %v158_v11 = vpop.f32.mrf.mxu0 }
  0xf1   :  { %v159_v14 = vadd.f32 %v787_v48, %v158_v11  ;;  %587 = vmatprep.mubr.f32.mxu1 %v227_v8  ;;  %v230_v17 = vadd.f32 %v214_v13, %v164_v10 }
  0xf2   :  { %v539_v15 = vpop.f32.mrf.mxu0  ;;  %588 = vmatmul.mubr.f32.gmra.mxu1 %v228_v9 }
  0xf3   :  { %v229_v16 = vadd.f32 %v213_v12, %v159_v14  ;;  %v174_v18 = vadd.f32 %v539_v15, %v787_v48 }
  0xf4   :  { %v168_v19 = vpop.f32.mrf.mxu0 }
  0xf5   :  { %v169_v22 = vadd.f32 %v787_v48, %v168_v19  ;;  %590 = vmatprep.mubr.f32.mxu1 %v229_v16  ;;  %v232_v25 = vadd.f32 %v216_v21, %v174_v18 }
  0xf6   :  { %v542_v23 = vpop.f32.mrf.mxu0  ;;  %591 = vmatmul.mubr.f32.gmra.mxu1 %v230_v17 }
  0xf7   :  { %v231_v24 = vadd.f32 %v215_v20, %v169_v22  ;;  %v184_v26 = vadd.f32 %v542_v23, %v787_v48 }
  0xf8   :  { %v178_v27 = vpop.f32.mrf.mxu0 }
  0xf9   :  { %v179_v30 = vadd.f32 %v787_v48, %v178_v27  ;;  %593 = vmatprep.mubr.f32.mxu1 %v231_v24  ;;  %v234_v33 = vadd.f32 %v218_v29, %v184_v26 }
  0xfa   :  { %v545_v31 = vpop.f32.mrf.mxu0  ;;  %594 = vmatmul.mubr.f32.gmra.mxu1 %v232_v25 }
  0xfb   :  { %v233_v32 = vadd.f32 %v217_v28, %v179_v30  ;;  %v194_v34 = vadd.f32 %v545_v31, %v787_v48 }
  0xfc   :  { %v188_v35 = vpop.f32.mrf.mxu0 }
  0xfd   :  { %v189_v38 = vadd.f32 %v787_v48, %v188_v35  ;;  %596 = vmatprep.mubr.f32.mxu1 %v233_v32  ;;  %v236_v41 = vadd.f32 %v220_v37, %v194_v34 }
  0xfe   :  { %v548_v39 = vpop.f32.mrf.mxu0  ;;  %597 = vmatmul.mubr.f32.gmra.mxu1 %v234_v33 }
  0xff   :  { %v235_v40 = vadd.f32 %v219_v36, %v189_v38  ;;  %v204_v42 = vadd.f32 %v548_v39, %v787_v48 }
 0x100   :  { %v198_v43 = vpop.f32.mrf.mxu0 }
 0x101   :  { %v199_v46 = vadd.f32 %v787_v48, %v198_v43  ;;  %599 = vmatprep.mubr.f32.mxu1 %v235_v40  ;;  %v238_v49 = vadd.f32 %v222_v45, %v204_v42 }
 0x102   :  { %600 = vmatmul.mubr.f32.gmra.mxu1 %v236_v41 }
 0x103   :  { %v237_v47 = vadd.f32 %v221_v44, %v199_v46 }
 0x105   :  { %602 = vmatprep.mubr.f32.mxu1 %v237_v47 }
 0x106   :  { %603 = vmatmul.mubr.f32.gmra.mxu1 %v238_v49 }
 0x1aa   :  { %v583_v51 = vpop.f32.mrf.mxu1 }
 0x1ab   :  { %v334_v52 = vadd.f32 %v583_v51, %v428_v50 }
 0x1ac   :  { %v328_v53 = vpop.f32.mrf.mxu1 }
 0x1ad   :  { %408 = vst [vmem:[%s910_s6 + $0x8] sm:$0xff] %v334_v52  ;;  %v329_v54 = vadd.f32 %v428_v50, %v328_v53 }
 0x1ae   :  { %v586_v55 = vpop.f32.mrf.mxu1 }
 0x1af   :  { %407 = vst [vmem:[%s910_s6] sm:$0xff] %v329_v54  ;;  %v344_v48 = vadd.f32 %v586_v55, %v428_v50 }
 0x1b0   :  { %v338_v56 = vpop.f32.mrf.mxu1 }
 0x1b1   :  { %410 = vst [vmem:[%s910_s6 + $0x18] sm:$0xff] %v344_v48  ;;  %v339_v57 = vadd.f32 %v428_v50, %v338_v56 }
 0x1b2   :  { %v589_v58 = vpop.f32.mrf.mxu1 }
 0x1b3   :  { %409 = vst [vmem:[%s910_s6 + $0x10] sm:$0xff] %v339_v57  ;;  %v354_v59 = vadd.f32 %v589_v58, %v428_v50 }
 0x1b4   :  { %v348_v60 = vpop.f32.mrf.mxu1 }
 0x1b5   :  { %412 = vst [vmem:[%s910_s6 + $0x28] sm:$0xff] %v354_v59  ;;  %v349_v61 = vadd.f32 %v428_v50, %v348_v60 }
 0x1b6   :  { %v592_v62 = vpop.f32.mrf.mxu1 }
 0x1b7   :  { %411 = vst [vmem:[%s910_s6 + $0x20] sm:$0xff] %v349_v61  ;;  %v364_v63 = vadd.f32 %v592_v62, %v428_v50 }
 0x1b8   :  { %v358_v0 = vpop.f32.mrf.mxu1 }
 0x1b9   :  { %414 = vst [vmem:[%s910_s6 + $0x38] sm:$0xff] %v364_v63  ;;  %v359_v1 = vadd.f32 %v428_v50, %v358_v0 }
 0x1ba   :  { %v595_v2 = vpop.f32.mrf.mxu1 }
 0x1bb   :  { %413 = vst [vmem:[%s910_s6 + $0x30] sm:$0xff] %v359_v1  ;;  %v374_v3 = vadd.f32 %v595_v2, %v428_v50 }
 0x1bc   :  { %v368_v4 = vpop.f32.mrf.mxu1 }
 0x1bd   :  { %416 = vst [vmem:[%s910_s6 + $0x48] sm:$0xff] %v374_v3  ;;  %v369_v5 = vadd.f32 %v428_v50, %v368_v4 }
 0x1be   :  { %v598_v6 = vpop.f32.mrf.mxu1 }
 0x1bf   :  { %415 = vst [vmem:[%s910_s6 + $0x40] sm:$0xff] %v369_v5  ;;  %v384_v7 = vadd.f32 %v598_v6, %v428_v50 }
 0x1c0   :  { %v378_v8 = vpop.f32.mrf.mxu1 }
 0x1c1   :  { %418 = vst [vmem:[%s910_s6 + $0x58] sm:$0xff] %v384_v7  ;;  %v379_v9 = vadd.f32 %v428_v50, %v378_v8 }
 0x1c2   :  { %v601_v10 = vpop.f32.mrf.mxu1 }
 0x1c3   :  { %417 = vst [vmem:[%s910_s6 + $0x50] sm:$0xff] %v379_v9  ;;  %v394_v11 = vadd.f32 %v601_v10, %v428_v50 }
 0x1c4   :  { %v388_v12 = vpop.f32.mrf.mxu1 }
 0x1c5   :  { %420 = vst [vmem:[%s910_s6 + $0x68] sm:$0xff] %v394_v11  ;;  %v389_v13 = vadd.f32 %v428_v50, %v388_v12 }
 0x1c6   :  { %v604_v14 = vpop.f32.mrf.mxu1 }
 0x1c7   :  { %419 = vst [vmem:[%s910_s6 + $0x60] sm:$0xff] %v389_v13  ;;  %v404_v15 = vadd.f32 %v604_v14, %v428_v50 }
 0x1c8   :  { %v398_v16 = vpop.f32.mrf.mxu1 }
 0x1c9   :  { %422 = vst [vmem:[%s910_s6 + $0x78] sm:$0xff] %v404_v15  ;;  %v399_v17 = vadd.f32 %v428_v50, %v398_v16 }
 0x1cb   :  { %421 = vst [vmem:[%s910_s6 + $0x70] sm:$0xff] %v399_v17 }

// kernel: fnn2d_mae_forward.21
= control target key start
LH: loop header
LB: loop body
LE: loop exit
PB: predicated region body
PF: predicated region fallthrough
CT: control target
= control target key end

     0   :  { %s506_s1 = inlined_call_operand.vmem [shape: f32[128,128], index: 1, kind: input, shape index: {}]   ;;  %s507_s0 = inlined_call_operand.vmem [shape: f32[128,128], index: 0, kind: input, shape index: {}]   ;;  %s508_s2 = inlined_call_operand.vmem [shape: f32[1,128], index: 2, kind: input, shape index: {}]   ;;  %s509_s3 = inlined_call_operand.vmem [shape: f32[128,128], index: 3, kind: output, shape index: {}]  }
   0x1   :  { %v45_v0 = vld [vmem:[%s506_s1 + $0x78] sm:$0xff]  ;;  %v44_v1 = vld [vmem:[%s506_s1 + $0x70] sm:$0xff]  ;;  %v43_v2 = vld [vmem:[%s506_s1 + $0x68] sm:$0xff] }
   0x2   :  { %251 = vmatprep.subr.mxu0 %v45_v0  ;;  %307 = vmatprep.subr.mxu1 %v45_v0  ;;  %v42_v3 = vld [vmem:[%s506_s1 + $0x60] sm:$0xff]  ;;  %v41_v4 = vld [vmem:[%s506_s1 + $0x58] sm:$0xff]  ;;  %v40_v5 = vld [vmem:[%s506_s1 + $0x50] sm:$0xff] }
   0x3   :  { %252 = vmatpush3.msra.mxu0 %v45_v0  ;;  %323 = vmatpush3.msra.mxu1 %v45_v0  ;;  %v39_v6 = vld [vmem:[%s506_s1 + $0x48] sm:$0xff]  ;;  %v38_v7 = vld [vmem:[%s506_s1 + $0x40] sm:$0xff]  ;;  %v37_v8 = vld [vmem:[%s506_s1 + $0x38] sm:$0xff] }
   0x4   :  { %253 = vmatprep.subr.mxu0 %v44_v1  ;;  %308 = vmatprep.subr.mxu1 %v44_v1  ;;  %v36_v9 = vld [vmem:[%s506_s1 + $0x30] sm:$0xff]  ;;  %v35_v10 = vld [vmem:[%s506_s1 + $0x28] sm:$0xff]  ;;  %v34_v11 = vld [vmem:[%s506_s1 + $0x20] sm:$0xff] }
   0x5   :  { %254 = vmatpush3.msra.mxu0 %v44_v1  ;;  %324 = vmatpush3.msra.mxu1 %v44_v1  ;;  %v33_v12 = vld [vmem:[%s506_s1 + $0x18] sm:$0xff]  ;;  %v32_v13 = vld [vmem:[%s506_s1 + $0x10] sm:$0xff]  ;;  %v31_v14 = vld [vmem:[%s506_s1 + $0x8] sm:$0xff] }
   0x6   :  { %255 = vmatprep.subr.mxu0 %v43_v2  ;;  %309 = vmatprep.subr.mxu1 %v43_v2  ;;  %v30_v15 = vld [vmem:[%s506_s1] sm:$0xff]  ;;  %v15_v18 = vld [vmem:[%s507_s0 + $0x8] sm:$0xff]  ;;  %v16_v20 = vld [vmem:[%s507_s0 + $0x10] sm:$0xff] }
   0x7   :  { %256 = vmatpush3.msra.mxu0 %v43_v2  ;;  %325 = vmatpush3.msra.mxu1 %v43_v2  ;;  %v14_v16 = vld [vmem:[%s507_s0] sm:$0xff]  ;;  %v23_v19 = vld [vmem:[%s507_s0 + $0x48] sm:$0xff]  ;;  %v24_v21 = vld [vmem:[%s507_s0 + $0x50] sm:$0xff] }
   0x8   :  { %257 = vmatprep.subr.mxu0 %v42_v3  ;;  %310 = vmatprep.subr.mxu1 %v42_v3  ;;  %v22_v17 = vld [vmem:[%s507_s0 + $0x40] sm:$0xff]  ;;  %v17_v22 = vld [vmem:[%s507_s0 + $0x18] sm:$0xff]  ;;  %v19_v26 = vld [vmem:[%s507_s0 + $0x28] sm:$0xff] }
   0x9   :  { %258 = vmatpush3.msra.mxu0 %v42_v3  ;;  %326 = vmatpush3.msra.mxu1 %v42_v3  ;;  %v25_v23 = vld [vmem:[%s507_s0 + $0x58] sm:$0xff]  ;;  %v18_v24 = vld [vmem:[%s507_s0 + $0x20] sm:$0xff]  ;;  %v27_v27 = vld [vmem:[%s507_s0 + $0x68] sm:$0xff] }
   0xa   :  { %259 = vmatprep.subr.mxu0 %v41_v4  ;;  %311 = vmatprep.subr.mxu1 %v41_v4  ;;  %v26_v25 = vld [vmem:[%s507_s0 + $0x60] sm:$0xff]  ;;  %v20_v28 = vld [vmem:[%s507_s0 + $0x30] sm:$0xff]  ;;  %v21_v30 = vld [vmem:[%s507_s0 + $0x38] sm:$0xff] }
   0xb   :  { %260 = vmatpush3.msra.mxu0 %v41_v4  ;;  %327 = vmatpush3.msra.mxu1 %v41_v4  ;;  %v28_v29 = vld [vmem:[%s507_s0 + $0x70] sm:$0xff]  ;;  %v29_v31 = vld [vmem:[%s507_s0 + $0x78] sm:$0xff]  ;;  %v218_v32 = vld [vmem:[%s508_s2] ss:$0 sm:$0xff] }
   0xc   :  { %261 = vmatprep.subr.mxu0 %v40_v5  ;;  %312 = vmatprep.subr.mxu1 %v40_v5 }
   0xd   :  { %262 = vmatpush3.msra.mxu0 %v40_v5  ;;  %328 = vmatpush3.msra.mxu1 %v40_v5 }
   0xe   :  { %263 = vmatprep.subr.mxu0 %v39_v6  ;;  %313 = vmatprep.subr.mxu1 %v39_v6 }
   0xf   :  { %264 = vmatpush3.msra.mxu0 %v39_v6  ;;  %329 = vmatpush3.msra.mxu1 %v39_v6 }
  0x10   :  { %265 = vmatprep.subr.mxu0 %v38_v7  ;;  %314 = vmatprep.subr.mxu1 %v38_v7 }
  0x11   :  { %266 = vmatpush3.msra.mxu0 %v38_v7  ;;  %330 = vmatpush3.msra.mxu1 %v38_v7 }
  0x12   :  { %267 = vmatprep.subr.mxu0 %v37_v8  ;;  %315 = vmatprep.subr.mxu1 %v37_v8 }
  0x13   :  { %268 = vmatpush3.msra.mxu0 %v37_v8  ;;  %331 = vmatpush3.msra.mxu1 %v37_v8 }
  0x14   :  { %269 = vmatprep.subr.mxu0 %v36_v9  ;;  %316 = vmatprep.subr.mxu1 %v36_v9 }
  0x15   :  { %270 = vmatpush3.msra.mxu0 %v36_v9  ;;  %332 = vmatpush3.msra.mxu1 %v36_v9 }
  0x16   :  { %271 = vmatprep.subr.mxu0 %v35_v10  ;;  %317 = vmatprep.subr.mxu1 %v35_v10 }
  0x17   :  { %272 = vmatpush3.msra.mxu0 %v35_v10  ;;  %333 = vmatpush3.msra.mxu1 %v35_v10 }
  0x18   :  { %273 = vmatprep.subr.mxu0 %v34_v11  ;;  %318 = vmatprep.subr.mxu1 %v34_v11 }
  0x19   :  { %274 = vmatpush3.msra.mxu0 %v34_v11  ;;  %334 = vmatpush3.msra.mxu1 %v34_v11 }
  0x1a   :  { %275 = vmatprep.subr.mxu0 %v33_v12  ;;  %319 = vmatprep.subr.mxu1 %v33_v12 }
  0x1b   :  { %276 = vmatpush3.msra.mxu0 %v33_v12  ;;  %335 = vmatpush3.msra.mxu1 %v33_v12 }
  0x1c   :  { %277 = vmatprep.subr.mxu0 %v32_v13  ;;  %320 = vmatprep.subr.mxu1 %v32_v13 }
  0x1d   :  { %278 = vmatpush3.msra.mxu0 %v32_v13  ;;  %336 = vmatpush3.msra.mxu1 %v32_v13 }
  0x1e   :  { %279 = vmatprep.subr.mxu0 %v31_v14  ;;  %321 = vmatprep.subr.mxu1 %v31_v14 }
  0x1f   :  { %280 = vmatpush3.msra.mxu0 %v31_v14  ;;  %337 = vmatpush3.msra.mxu1 %v31_v14 }
  0x20   :  { %281 = vmatprep.subr.mxu0 %v30_v15  ;;  %322 = vmatprep.subr.mxu1 %v30_v15 }
  0x21   :  { %282 = vmatpush3.msra.mxu0 %v30_v15  ;;  %338 = vmatpush3.msra.mxu1 %v30_v15 }
  0x22   :  { %283 = vmatprep.mubr.f32.mxu0 %v14_v16  ;;  %295 = vmatprep.mubr.f32.mxu1 %v22_v17 }
  0x23   :  { %284 = vmatmul.mubr.f32.vlgmr.msra.gmra.mxu0 %v15_v18  ;;  %296 = vmatmul.mubr.f32.vlgmr.msra.gmra.mxu1 %v23_v19 }
  0x24   :  { %286 = vmatprep.mubr.f32.mxu0 %v16_v20  ;;  %298 = vmatprep.mubr.f32.mxu1 %v24_v21 }
  0x27   :  { %287 = vmatmul.mubr.f32.gmra.mxu0 %v17_v22  ;;  %299 = vmatmul.mubr.f32.gmra.mxu1 %v25_v23 }
  0x28   :  { %289 = vmatprep.mubr.f32.mxu0 %v18_v24  ;;  %301 = vmatprep.mubr.f32.mxu1 %v26_v25 }
  0x2b   :  { %290 = vmatmul.mubr.f32.gmra.mxu0 %v19_v26  ;;  %302 = vmatmul.mubr.f32.gmra.mxu1 %v27_v27 }
  0x2c   :  { %292 = vmatprep.mubr.f32.mxu0 %v20_v28  ;;  %304 = vmatprep.mubr.f32.mxu1 %v28_v29 }
  0x2f   :  { %293 = vmatmul.mubr.f32.gmra.mxu0 %v21_v30  ;;  %305 = vmatmul.mubr.f32.gmra.mxu1 %v29_v31 }
  0xe3   :  { %v285_v33 = vpop.f32.mrf.mxu0  ;;  %v297_v34 = vpop.f32.mrf.mxu1 }
  0xe4   :  { %v125_v35 = vadd.f32 %v285_v33, %v218_v32  ;;  %v165_v36 = vadd.f32 %v297_v34, %v218_v32 }
  0xe5   :  { %v119_v37 = vpop.f32.mrf.mxu0  ;;  %v159_v38 = vpop.f32.mrf.mxu1 }
  0xe6   :  { %199 = vst [vmem:[%s509_s3 + $0x8] sm:$0xff] %v125_v35  ;;  %207 = vst [vmem:[%s509_s3 + $0x48] sm:$0xff] %v165_v36  ;;  %v120_v39 = vadd.f32 %v218_v32, %v119_v37  ;;  %v160_v40 = vadd.f32 %v218_v32, %v159_v38 }
  0xe7   :  { %v288_v41 = vpop.f32.mrf.mxu0  ;;  %v300_v42 = vpop.f32.mrf.mxu1 }
  0xe8   :  { %198 = vst [vmem:[%s509_s3] sm:$0xff] %v120_v39  ;;  %206 = vst [vmem:[%s509_s3 + $0x40] sm:$0xff] %v160_v40  ;;  %v135_v43 = vadd.f32 %v288_v41, %v218_v32  ;;  %v175_v44 = vadd.f32 %v300_v42, %v218_v32 }
  0xe9   :  { %v129_v45 = vpop.f32.mrf.mxu0  ;;  %v169_v46 = vpop.f32.mrf.mxu1 }
  0xea   :  { %201 = vst [vmem:[%s509_s3 + $0x18] sm:$0xff] %v135_v43  ;;  %209 = vst [vmem:[%s509_s3 + $0x58] sm:$0xff] %v175_v44  ;;  %v130_v47 = vadd.f32 %v218_v32, %v129_v45  ;;  %v170_v48 = vadd.f32 %v218_v32, %v169_v46 }
  0xeb   :  { %v291_v49 = vpop.f32.mrf.mxu0  ;;  %v303_v50 = vpop.f32.mrf.mxu1 }
  0xec   :  { %200 = vst [vmem:[%s509_s3 + $0x10] sm:$0xff] %v130_v47  ;;  %208 = vst [vmem:[%s509_s3 + $0x50] sm:$0xff] %v170_v48  ;;  %v145_v51 = vadd.f32 %v291_v49, %v218_v32  ;;  %v185_v52 = vadd.f32 %v303_v50, %v218_v32 }
  0xed   :  { %v139_v53 = vpop.f32.mrf.mxu0  ;;  %v179_v54 = vpop.f32.mrf.mxu1 }
  0xee   :  { %203 = vst [vmem:[%s509_s3 + $0x28] sm:$0xff] %v145_v51  ;;  %211 = vst [vmem:[%s509_s3 + $0x68] sm:$0xff] %v185_v52  ;;  %v140_v55 = vadd.f32 %v218_v32, %v139_v53  ;;  %v180_v56 = vadd.f32 %v218_v32, %v179_v54 }
  0xef   :  { %v294_v57 = vpop.f32.mrf.mxu0  ;;  %v306_v58 = vpop.f32.mrf.mxu1 }
  0xf0   :  { %202 = vst [vmem:[%s509_s3 + $0x20] sm:$0xff] %v140_v55  ;;  %210 = vst [vmem:[%s509_s3 + $0x60] sm:$0xff] %v180_v56  ;;  %v155_v59 = vadd.f32 %v294_v57, %v218_v32  ;;  %v195_v60 = vadd.f32 %v306_v58, %v218_v32 }
  0xf1   :  { %v149_v61 = vpop.f32.mrf.mxu0  ;;  %v189_v62 = vpop.f32.mrf.mxu1 }
  0xf2   :  { %205 = vst [vmem:[%s509_s3 + $0x38] sm:$0xff] %v155_v59  ;;  %213 = vst [vmem:[%s509_s3 + $0x78] sm:$0xff] %v195_v60  ;;  %v150_v63 = vadd.f32 %v218_v32, %v149_v61  ;;  %v190_v0 = vadd.f32 %v218_v32, %v189_v62 }
  0xf4   :  { %204 = vst [vmem:[%s509_s3 + $0x30] sm:$0xff] %v150_v63  ;;  %212 = vst [vmem:[%s509_s3 + $0x70] sm:$0xff] %v190_v0 }

// kernel: reverse.3
= control target key start
LH: loop header
LB: loop body
LE: loop exit
PB: predicated region body
PF: predicated region fallthrough
CT: control target
= control target key end

     0   :  { %v72_v3 = vlaneseq  ;;  %v65_v9 = vld [vmem:[#allocation0 + $0x7] ss:$-1 sm:$0xff]  ;;  %v79_v12 = vld [vmem:[#allocation0 + $0x17] ss:$-1 sm:$0xff]  ;;  %s331_s0 = inlined_call_operand.vmem [shape: f32[2,4,16,7], index: 0, kind: input, shape index: {}]   ;;  %s332_s1 = inlined_call_operand.vmem [shape: f32[2,4,16,7], index: 1, kind: output, shape index: {}]  }
   0x1   :  { %v45_v0 = vld [vmem:[%s331_s0] sm:$0xff]  ;;  %v47_v1 = vld [vmem:[%s331_s0 + $0x8] sm:$0xff]  ;;  %v49_v2 = vld [vmem:[%s331_s0 + $0x10] sm:$0xff]  ;;  %v66_v10 = vrot.slane %v65_v9, 1  ;;  %v80_v14 = vrot.slane %v79_v12, 1 }
   0x2   :  { %46 = vst [vmem:[#allocation0 + $0x8] sm:$0xff] %v45_v0  ;;  %48 = vst [vmem:[#allocation0 + $0x18] sm:$0xff] %v47_v1  ;;  %v51_v4 = vld [vmem:[%s331_s0 + $0x18] sm:$0xff]  ;;  %v53_v5 = vld [vmem:[%s331_s0 + $0x20] sm:$0xff]  ;;  %v73_v11 = vshrl.u32 %v72_v3, 7 }
   0x3   :  { %50 = vst [vmem:[#allocation0 + $0x28] sm:$0xff] %v49_v2  ;;  %v55_v6 = vld [vmem:[%s331_s0 + $0x28] sm:$0xff]  ;;  %52 = vst [vmem:[#allocation0 + $0x38] sm:$0xff] %v51_v4  ;;  %v57_v7 = vld [vmem:[%s331_s0 + $0x30] sm:$0xff] }
   0x4   :  { %54 = vst [vmem:[#allocation0 + $0x48] sm:$0xff] %v53_v5  ;;  %56 = vst [vmem:[#allocation0 + $0x58] sm:$0xff] %v55_v6  ;;  %v59_v8 = vld [vmem:[%s331_s0 + $0x38] sm:$0xff]  ;;  %v93_v13 = vld [vmem:[#allocation0 + $0x27] ss:$-1 sm:$0xff]  ;;  %vm74_vm0 = vcmp.lt.s32.totalorder %v73_v11, 7 }
   0x5   :  { %58 = vst [vmem:[#allocation0 + $0x68] sm:$0xff] %v57_v7  ;;  %60 = vst [vmem:[#allocation0 + $0x78] sm:$0xff] %v59_v8  ;;  %v94_v15 = vrot.slane %v93_v13, 1  ;;  %v107_v16 = vld [vmem:[#allocation0 + $0x37] ss:$-1 sm:$0xff] }
   0x6   :  { %67 = vst [vmem:[#allocation1] sm:$0xff] %v66_v10  ;;  %v108_v17 = vrot.slane %v107_v16, 1  ;;  %v121_v18 = vld [vmem:[#allocation0 + $0x47] ss:$-1 sm:$0xff]  ;;  %v135_v19 = vld [vmem:[#allocation0 + $0x57] ss:$-1 sm:$0xff] }
   0x7   :  { %81 = vst [vmem:[#allocation1 + $0x8] sm:$0xff] %v80_v14  ;;  %95 = vst [vmem:[#allocation1 + $0x10] sm:$0xff] %v94_v15  ;;  %v122_v20 = vrot.slane %v121_v18, 1  ;;  %v136_v21 = vrot.slane %v135_v19, 1  ;;  %v149_v22 = vld [vmem:[#allocation0 + $0x67] ss:$-1 sm:$0xff] }
   0x8   :  { %v163_v23 = vld [vmem:[#allocation0 + $0x77] ss:$-1 sm:$0xff]  ;;  %109 = vst [vmem:[#allocation1 + $0x18] sm:$0xff] %v108_v17  ;;  %v150_v24 = vrot.slane %v149_v22, 1 }
   0x9   :  { %v164_v25 = vrot.slane %v163_v23, 1  ;;  %v70_v26 = vld [vmem:[#allocation0 + $0xf] ss:$-1 sm:$0xff]  ;;  %v84_v27 = vld [vmem:[#allocation0 + $0x1f] ss:$-1 sm:$0xff]  ;;  %123 = vst [vmem:[#allocation1 + $0x20] sm:$0xff] %v122_v20 }
   0xa   :  { %v98_v28 = vld [vmem:[#allocation0 + $0x2f] ss:$-1 sm:$0xff]  ;;  %137 = vst [vmem:[#allocation1 + $0x28] sm:$0xff] %v136_v21  ;;  %v71_v29 = vrot.slane %v70_v26, 1  ;;  %v85_v30 = vrot.slane %v84_v27, 1  ;;  %151 = vst [vmem:[#allocation1 + $0x30] sm:$0xff] %v150_v24 }
   0xb   :  { %v99_v31 = vrot.slane %v98_v28, 1  ;;  %v112_v32 = vld [vmem:[#allocation0 + $0x3f] ss:$-1 sm:$0xff]  ;;  %165 = vst [vmem:[#allocation1 + $0x38] sm:$0xff] %v164_v25  ;;  %v126_v34 = vld [vmem:[#allocation0 + $0x4f] ss:$-1 sm:$0xff] }
   0xc   :  { %v113_v33 = vrot.slane %v112_v32, 1  ;;  %v140_v35 = vld [vmem:[#allocation0 + $0x5f] ss:$-1 sm:$0xff]  ;;  %75 = vst.msk [vmem:[#allocation1] sm:$0xff] %vm74_vm0, %v71_v29  ;;  %89 = vst.msk [vmem:[#allocation1 + $0x8] sm:$0xff] %vm74_vm0, %v85_v30  ;;  %v127_v36 = vrot.slane %v126_v34, 1 }
   0xd   :  { %103 = vst.msk [vmem:[#allocation1 + $0x10] sm:$0xff] %vm74_vm0, %v99_v31  ;;  %v141_v37 = vrot.slane %v140_v35, 1  ;;  %v154_v38 = vld [vmem:[#allocation0 + $0x6f] ss:$-1 sm:$0xff]  ;;  %v168_v39 = vld [vmem:[#allocation0 + $0x7f] ss:$-1 sm:$0xff] }
   0xe   :  { %117 = vst.msk [vmem:[#allocation1 + $0x18] sm:$0xff] %vm74_vm0, %v113_v33  ;;  %v155_v40 = vrot.slane %v154_v38, 1  ;;  %v169_v41 = vrot.slane %v168_v39, 1  ;;  %131 = vst.msk [vmem:[#allocation1 + $0x20] sm:$0xff] %vm74_vm0, %v127_v36 }
   0xf   :  { %145 = vst.msk [vmem:[#allocation1 + $0x28] sm:$0xff] %vm74_vm0, %v141_v37 }
  0x10   :  { %159 = vst.msk [vmem:[#allocation1 + $0x30] sm:$0xff] %vm74_vm0, %v155_v40  ;;  %173 = vst.msk [vmem:[#allocation1 + $0x38] sm:$0xff] %vm74_vm0, %v169_v41 }
  0x13   :  { %v216_v42 = vld [vmem:[#allocation1] sm:$0xff]  ;;  %v218_v43 = vld [vmem:[#allocation1 + $0x8] sm:$0xff] }
  0x14   :  { %v220_v44 = vld [vmem:[#allocation1 + $0x10] sm:$0xff]  ;;  %217 = vst [vmem:[%s332_s1] sm:$0xff] %v216_v42  ;;  %219 = vst [vmem:[%s332_s1 + $0x8] sm:$0xff] %v218_v43 }
  0x15   :  { %221 = vst [vmem:[%s332_s1 + $0x10] sm:$0xff] %v220_v44  ;;  %v222_v45 = vld [vmem:[#allocation1 + $0x18] sm:$0xff]  ;;  %v224_v46 = vld [vmem:[#allocation1 + $0x20] sm:$0xff] }
  0x16   :  { %223 = vst [vmem:[%s332_s1 + $0x18] sm:$0xff] %v222_v45  ;;  %v226_v47 = vld [vmem:[#allocation1 + $0x28] sm:$0xff]  ;;  %225 = vst [vmem:[%s332_s1 + $0x20] sm:$0xff] %v224_v46 }
  0x17   :  { %227 = vst [vmem:[%s332_s1 + $0x28] sm:$0xff] %v226_v47  ;;  %v228_v48 = vld [vmem:[#allocation1 + $0x30] sm:$0xff]  ;;  %v230_v49 = vld [vmem:[#allocation1 + $0x38] sm:$0xff] }
  0x18   :  { %229 = vst [vmem:[%s332_s1 + $0x30] sm:$0xff] %v228_v48  ;;  %231 = vst [vmem:[%s332_s1 + $0x38] sm:$0xff] %v230_v49 }

// kernel: fnn2d_mae_forward.26
= control target key start
LH: loop header
LB: loop body
LE: loop exit
PB: predicated region body
PF: predicated region fallthrough
CT: control target
= control target key end

     0   :  { %v3603_v0 = vmov 0.0   ;;  %vm299_vm0 = vcmask 523264   ;;  %vm3604_vm1 = vmmov 0   ;;  %vm2636_vm2 = vcmask 58368   ;;  %s4964_s1 = inlined_call_operand.vmem [shape: f32[32,64,8], index: 1, kind: input, shape index: {}]   ;;  %s4965_s0 = inlined_call_operand.vmem [shape: f32[32,2,64], index: 0, kind: input, shape index: {}]   ;;  %s4966_s2 = inlined_call_operand.vmem [shape: f32[32,2,8], index: 2, kind: output, shape index: {}]  }
   0x1   :  { %2993 = vmatprep.subr.mxu0 %v3603_v0  ;;  %3012 = vmatprep.subr.mxu1 %v3603_v0  ;;  %v50_v1 = vld [vmem:[%s4964_s1 + $0x38] sm:$0xff]  ;;  %v49_v3 = vld [vmem:[%s4964_s1 + $0x30] sm:$0xff]  ;;  %v48_v5 = vld [vmem:[%s4964_s1 + $0x28] sm:$0xff] }
   0x2   :  { %v58_v2 = vld [vmem:[%s4964_s1 + $0x78] sm:$0xff]  ;;  %2994 = vmatpush3.msra.mxu0 %v50_v1  ;;  %v57_v4 = vld [vmem:[%s4964_s1 + $0x70] sm:$0xff]  ;;  %v56_v6 = vld [vmem:[%s4964_s1 + $0x68] sm:$0xff]  ;;  %3009 = vmatprep.mubr.msk.f32.mxu0 %vm3604_vm1, %v3603_v0 }
   0x3   :  { %3013 = vmatpush3.msra.mxu1 %v58_v2  ;;  %2995 = vmatprep.subr.mxu0 %v3603_v0  ;;  %v47_v7 = vld [vmem:[%s4964_s1 + $0x20] sm:$0xff]  ;;  %v46_v9 = vld [vmem:[%s4964_s1 + $0x18] sm:$0xff]  ;;  %v45_v11 = vld [vmem:[%s4964_s1 + $0x10] sm:$0xff] }
   0x4   :  { %3014 = vmatprep.subr.mxu1 %v3603_v0  ;;  %2996 = vmatpush3.msra.mxu0 %v49_v3  ;;  %v55_v8 = vld [vmem:[%s4964_s1 + $0x60] sm:$0xff]  ;;  %v54_v10 = vld [vmem:[%s4964_s1 + $0x58] sm:$0xff]  ;;  %v53_v12 = vld [vmem:[%s4964_s1 + $0x50] sm:$0xff] }
   0x5   :  { %3015 = vmatpush3.msra.mxu1 %v57_v4  ;;  %2997 = vmatprep.subr.mxu0 %v3603_v0  ;;  %v44_v13 = vld [vmem:[%s4964_s1 + $0x8] sm:$0xff]  ;;  %v43_v15 = vld [vmem:[%s4964_s1] sm:$0xff]  ;;  %v66_v19 = vld [vmem:[%s4964_s1 + $0xb8] sm:$0xff] }
   0x6   :  { %3016 = vmatprep.subr.mxu1 %v3603_v0  ;;  %2998 = vmatpush3.msra.mxu0 %v48_v5  ;;  %v52_v14 = vld [vmem:[%s4964_s1 + $0x48] sm:$0xff]  ;;  %v51_v16 = vld [vmem:[%s4964_s1 + $0x40] sm:$0xff]  ;;  %v74_v20 = vld [vmem:[%s4964_s1 + $0xf8] sm:$0xff] }
   0x7   :  { %3017 = vmatpush3.msra.mxu1 %v56_v6  ;;  %2999 = vmatprep.subr.mxu0 %v3603_v0  ;;  %v11_v17 = vld [vmem:[%s4965_s0] sm:$0x3]  ;;  %v12_v18 = vld [vmem:[%s4965_s0 + $0x2] sm:$0x3]  ;;  %v65_v21 = vld [vmem:[%s4964_s1 + $0xb0] sm:$0xff] }
   0x8   :  { %3018 = vmatprep.subr.mxu1 %v3603_v0  ;;  %3000 = vmatpush3.msra.mxu0 %v47_v7  ;;  %v73_v22 = vld [vmem:[%s4964_s1 + $0xf0] sm:$0xff]  ;;  %v64_v23 = vld [vmem:[%s4964_s1 + $0xa8] sm:$0xff]  ;;  %v63_v25 = vld [vmem:[%s4964_s1 + $0xa0] sm:$0xff] }
   0x9   :  { %3019 = vmatpush3.msra.mxu1 %v55_v8  ;;  %3001 = vmatprep.subr.mxu0 %v3603_v0  ;;  %v72_v24 = vld [vmem:[%s4964_s1 + $0xe8] sm:$0xff]  ;;  %v71_v26 = vld [vmem:[%s4964_s1 + $0xe0] sm:$0xff]  ;;  %v62_v27 = vld [vmem:[%s4964_s1 + $0x98] sm:$0xff] }
   0xa   :  { %3020 = vmatprep.subr.mxu1 %v3603_v0  ;;  %3002 = vmatpush3.msra.mxu0 %v46_v9  ;;  %v70_v28 = vld [vmem:[%s4964_s1 + $0xd8] sm:$0xff]  ;;  %v61_v29 = vld [vmem:[%s4964_s1 + $0x90] sm:$0xff]  ;;  %v60_v31 = vld [vmem:[%s4964_s1 + $0x88] sm:$0xff] }
   0xb   :  { %3021 = vmatpush3.msra.mxu1 %v54_v10  ;;  %3003 = vmatprep.subr.mxu0 %v3603_v0  ;;  %v69_v30 = vld [vmem:[%s4964_s1 + $0xd0] sm:$0xff]  ;;  %v68_v32 = vld [vmem:[%s4964_s1 + $0xc8] sm:$0xff]  ;;  %v59_v33 = vld [vmem:[%s4964_s1 + $0x80] sm:$0xff] }
   0xc   :  { %3022 = vmatprep.subr.mxu1 %v3603_v0  ;;  %3004 = vmatpush3.msra.mxu0 %v45_v11  ;;  %v67_v34 = vld [vmem:[%s4964_s1 + $0xc0] sm:$0xff]  ;;  %v82_v37 = vld [vmem:[%s4964_s1 + $0x138] sm:$0xff]  ;;  %v81_v39 = vld [vmem:[%s4964_s1 + $0x130] sm:$0xff] }
   0xd   :  { %3023 = vmatpush3.msra.mxu1 %v53_v12  ;;  %3005 = vmatprep.subr.mxu0 %v3603_v0  ;;  %v13_v35 = vld [vmem:[%s4965_s0 + $0x4] sm:$0x3]  ;;  %v14_v36 = vld [vmem:[%s4965_s0 + $0x6] sm:$0x3]  ;;  %v90_v38 = vld [vmem:[%s4964_s1 + $0x178] sm:$0xff] }
   0xe   :  { %3024 = vmatprep.subr.mxu1 %v3603_v0  ;;  %3006 = vmatpush3.msra.mxu0 %v44_v13  ;;  %v89_v40 = vld [vmem:[%s4964_s1 + $0x170] sm:$0xff]  ;;  %v80_v41 = vld [vmem:[%s4964_s1 + $0x128] sm:$0xff]  ;;  %v79_v43 = vld [vmem:[%s4964_s1 + $0x120] sm:$0xff] }
   0xf   :  { %3025 = vmatpush3.msra.mxu1 %v52_v14  ;;  %3007 = vmatprep.subr.mxu0 %v3603_v0  ;;  %v88_v42 = vld [vmem:[%s4964_s1 + $0x168] sm:$0xff]  ;;  %v87_v44 = vld [vmem:[%s4964_s1 + $0x160] sm:$0xff]  ;;  %v78_v45 = vld [vmem:[%s4964_s1 + $0x118] sm:$0xff] }
  0x10   :  { %3026 = vmatprep.subr.mxu1 %v3603_v0  ;;  %3008 = vmatpush3.msra.mxu0 %v43_v15  ;;  %v86_v46 = vld [vmem:[%s4964_s1 + $0x158] sm:$0xff]  ;;  %v77_v47 = vld [vmem:[%s4964_s1 + $0x110] sm:$0xff]  ;;  %v76_v49 = vld [vmem:[%s4964_s1 + $0x108] sm:$0xff] }
  0x11   :  { %3027 = vmatpush3.msra.mxu1 %v51_v16  ;;  %3028 = vmatprep.mubr.msk.f32.mxu1 %vm3604_vm1, %v3603_v0  ;;  %v85_v48 = vld [vmem:[%s4964_s1 + $0x150] sm:$0xff]  ;;  %v84_v50 = vld [vmem:[%s4964_s1 + $0x148] sm:$0xff]  ;;  %v75_v51 = vld [vmem:[%s4964_s1 + $0x100] sm:$0xff] }
  0x12   :  { %3010 = vmatmul.mubr.msk.f32.vlgmr.msra.gmra.mxu0 %vm299_vm0, %v11_v17  ;;  %3029 = vmatmul.mubr.msk.f32.vlgmr.msra.gmra.mxu1 %vm299_vm0, %v12_v18  ;;  %v83_v52 = vld [vmem:[%s4964_s1 + $0x140] sm:$0xff]  ;;  %v15_v53 = vld [vmem:[%s4965_s0 + $0x8] sm:$0x3]  ;;  %v16_v54 = vld [vmem:[%s4965_s0 + $0xa] sm:$0x3] }
  0x13   :  { %3031 = vmatprep.subr.mxu0 %v3603_v0  ;;  %3050 = vmatprep.subr.mxu1 %v3603_v0  ;;  %v98_v55 = vld [vmem:[%s4964_s1 + $0x1b8] sm:$0xff]  ;;  %v97_v57 = vld [vmem:[%s4964_s1 + $0x1b0] sm:$0xff]  ;;  %v96_v59 = vld [vmem:[%s4964_s1 + $0x1a8] sm:$0xff] }
  0x14   :  { %3032 = vmatpush3.msra.mxu0 %v66_v19  ;;  %3051 = vmatpush3.msra.mxu1 %v74_v20  ;;  %v106_v56 = vld [vmem:[%s4964_s1 + $0x1f8] sm:$0xff]  ;;  %v105_v58 = vld [vmem:[%s4964_s1 + $0x1f0] sm:$0xff]  ;;  %v104_v60 = vld [vmem:[%s4964_s1 + $0x1e8] sm:$0xff] }
  0x15   :  { %3033 = vmatprep.subr.mxu0 %v3603_v0  ;;  %3052 = vmatprep.subr.mxu1 %v3603_v0  ;;  %v95_v61 = vld [vmem:[%s4964_s1 + $0x1a0] sm:$0xff]  ;;  %v94_v63 = vld [vmem:[%s4964_s1 + $0x198] sm:$0xff]  ;;  %v93_v2 = vld [vmem:[%s4964_s1 + $0x190] sm:$0xff] }
  0x16   :  { %3034 = vmatpush3.msra.mxu0 %v65_v21  ;;  %3053 = vmatpush3.msra.mxu1 %v73_v22  ;;  %v103_v62 = vld [vmem:[%s4964_s1 + $0x1e0] sm:$0xff]  ;;  %v102_v1 = vld [vmem:[%s4964_s1 + $0x1d8] sm:$0xff]  ;;  %v101_v3 = vld [vmem:[%s4964_s1 + $0x1d0] sm:$0xff] }
  0x17   :  { %3035 = vmatprep.subr.mxu0 %v3603_v0  ;;  %3054 = vmatprep.subr.mxu1 %v3603_v0  ;;  %v92_v4 = vld [vmem:[%s4964_s1 + $0x188] sm:$0xff]  ;;  %v91_v6 = vld [vmem:[%s4964_s1 + $0x180] sm:$0xff]  ;;  %v114_v10 = vld [vmem:[%s4964_s1 + $0x238] sm:$0xff] }
  0x18   :  { %3036 = vmatpush3.msra.mxu0 %v64_v23  ;;  %3055 = vmatpush3.msra.mxu1 %v72_v24  ;;  %v100_v5 = vld [vmem:[%s4964_s1 + $0x1c8] sm:$0xff]  ;;  %v99_v7 = vld [vmem:[%s4964_s1 + $0x1c0] sm:$0xff]  ;;  %v122_v11 = vld [vmem:[%s4964_s1 + $0x278] sm:$0xff] }
  0x19   :  { %3037 = vmatprep.subr.mxu0 %v3603_v0  ;;  %3056 = vmatprep.subr.mxu1 %v3603_v0  ;;  %v17_v8 = vld [vmem:[%s4965_s0 + $0xc] sm:$0x3]  ;;  %v18_v9 = vld [vmem:[%s4965_s0 + $0xe] sm:$0x3]  ;;  %v113_v12 = vld [vmem:[%s4964_s1 + $0x230] sm:$0xff] }
  0x1a   :  { %3038 = vmatpush3.msra.mxu0 %v63_v25  ;;  %3057 = vmatpush3.msra.mxu1 %v71_v26  ;;  %v121_v13 = vld [vmem:[%s4964_s1 + $0x270] sm:$0xff]  ;;  %v112_v14 = vld [vmem:[%s4964_s1 + $0x228] sm:$0xff]  ;;  %v111_v16 = vld [vmem:[%s4964_s1 + $0x220] sm:$0xff] }
  0x1b   :  { %3039 = vmatprep.subr.mxu0 %v3603_v0  ;;  %3058 = vmatprep.subr.mxu1 %v3603_v0  ;;  %v120_v15 = vld [vmem:[%s4964_s1 + $0x268] sm:$0xff]  ;;  %v119_v17 = vld [vmem:[%s4964_s1 + $0x260] sm:$0xff]  ;;  %v110_v18 = vld [vmem:[%s4964_s1 + $0x218] sm:$0xff] }
  0x1c   :  { %3040 = vmatpush3.msra.mxu0 %v62_v27  ;;  %3059 = vmatpush3.msra.mxu1 %v70_v28  ;;  %v118_v19 = vld [vmem:[%s4964_s1 + $0x258] sm:$0xff]  ;;  %v109_v20 = vld [vmem:[%s4964_s1 + $0x210] sm:$0xff]  ;;  %v108_v22 = vld [vmem:[%s4964_s1 + $0x208] sm:$0xff] }
  0x1d   :  { %3041 = vmatprep.subr.mxu0 %v3603_v0  ;;  %3060 = vmatprep.subr.mxu1 %v3603_v0  ;;  %v117_v21 = vld [vmem:[%s4964_s1 + $0x250] sm:$0xff]  ;;  %v116_v23 = vld [vmem:[%s4964_s1 + $0x248] sm:$0xff]  ;;  %v107_v24 = vld [vmem:[%s4964_s1 + $0x200] sm:$0xff] }
  0x1e   :  { %3042 = vmatpush3.msra.mxu0 %v61_v29  ;;  %3061 = vmatpush3.msra.mxu1 %v69_v30  ;;  %v115_v25 = vld [vmem:[%s4964_s1 + $0x240] sm:$0xff]  ;;  %v19_v26 = vld [vmem:[%s4965_s0 + $0x10] sm:$0x3]  ;;  %v20_v27 = vld [vmem:[%s4965_s0 + $0x12] sm:$0x3] }
  0x1f   :  { %3043 = vmatprep.subr.mxu0 %v3603_v0  ;;  %3062 = vmatprep.subr.mxu1 %v3603_v0  ;;  %v130_v28 = vld [vmem:[%s4964_s1 + $0x2b8] sm:$0xff]  ;;  %v129_v30 = vld [vmem:[%s4964_s1 + $0x2b0] sm:$0xff] }
  0x20   :  { %3044 = vmatpush3.msra.mxu0 %v60_v31  ;;  %3063 = vmatpush3.msra.mxu1 %v68_v32  ;;  %v138_v29 = vld [vmem:[%s4964_s1 + $0x2f8] sm:$0xff]  ;;  %v137_v31 = vld [vmem:[%s4964_s1 + $0x2f0] sm:$0xff]  ;;  %v128_v32 = vld [vmem:[%s4964_s1 + $0x2a8] sm:$0xff] }
  0x21   :  { %3045 = vmatprep.subr.mxu0 %v3603_v0  ;;  %3064 = vmatprep.subr.mxu1 %v3603_v0 }
  0x22   :  { %3046 = vmatpush3.msra.mxu0 %v59_v33  ;;  %3047 = vmatprep.mubr.msk.f32.mxu0 %vm3604_vm1, %v3603_v0  ;;  %v136_v33 = vld [vmem:[%s4964_s1 + $0x2e8] sm:$0xff] }
  0x23   :  { %3065 = vmatpush3.msra.mxu1 %v67_v34  ;;  %3066 = vmatprep.mubr.msk.f32.mxu1 %vm3604_vm1, %v3603_v0  ;;  %v127_v34 = vld [vmem:[%s4964_s1 + $0x2a0] sm:$0xff] }
  0x24   :  { %3048 = vmatmul.mubr.msk.f32.vlgmr.msra.gmra.mxu0 %vm299_vm0, %v13_v35  ;;  %3067 = vmatmul.mubr.msk.f32.vlgmr.msra.gmra.mxu1 %vm299_vm0, %v14_v36  ;;  %v135_v35 = vld [vmem:[%s4964_s1 + $0x2e0] sm:$0xff]  ;;  %v126_v36 = vld [vmem:[%s4964_s1 + $0x298] sm:$0xff] }
  0x25   :  { %3069 = vmatprep.subr.mxu0 %v3603_v0  ;;  %3088 = vmatprep.subr.mxu1 %v3603_v0 }
  0x26   :  { %3070 = vmatpush3.msra.mxu0 %v82_v37  ;;  %3089 = vmatpush3.msra.mxu1 %v90_v38  ;;  %v134_v37 = vld [vmem:[%s4964_s1 + $0x2d8] sm:$0xff]  ;;  %v125_v38 = vld [vmem:[%s4964_s1 + $0x290] sm:$0xff] }
  0x27   :  { %3071 = vmatprep.subr.mxu0 %v3603_v0  ;;  %3090 = vmatprep.subr.mxu1 %v3603_v0 }
  0x28   :  { %3072 = vmatpush3.msra.mxu0 %v81_v39  ;;  %3091 = vmatpush3.msra.mxu1 %v89_v40  ;;  %v133_v39 = vld [vmem:[%s4964_s1 + $0x2d0] sm:$0xff]  ;;  %v124_v40 = vld [vmem:[%s4964_s1 + $0x288] sm:$0xff] }
  0x29   :  { %3073 = vmatprep.subr.mxu0 %v3603_v0  ;;  %3092 = vmatprep.subr.mxu1 %v3603_v0 }
  0x2a   :  { %3074 = vmatpush3.msra.mxu0 %v80_v41  ;;  %3093 = vmatpush3.msra.mxu1 %v88_v42  ;;  %v132_v41 = vld [vmem:[%s4964_s1 + $0x2c8] sm:$0xff]  ;;  %v123_v42 = vld [vmem:[%s4964_s1 + $0x280] sm:$0xff] }
  0x2b   :  { %3075 = vmatprep.subr.mxu0 %v3603_v0  ;;  %3094 = vmatprep.subr.mxu1 %v3603_v0 }
  0x2c   :  { %3076 = vmatpush3.msra.mxu0 %v79_v43  ;;  %3095 = vmatpush3.msra.mxu1 %v87_v44  ;;  %v131_v43 = vld [vmem:[%s4964_s1 + $0x2c0] sm:$0xff]  ;;  %v21_v44 = vld [vmem:[%s4965_s0 + $0x14] sm:$0x3] }
  0x2d   :  { %3077 = vmatprep.subr.mxu0 %v3603_v0  ;;  %3096 = vmatprep.subr.mxu1 %v3603_v0 }
  0x2e   :  { %3078 = vmatpush3.msra.mxu0 %v78_v45  ;;  %3097 = vmatpush3.msra.mxu1 %v86_v46  ;;  %v22_v45 = vld [vmem:[%s4965_s0 + $0x16] sm:$0x3]  ;;  %v146_v46 = vld [vmem:[%s4964_s1 + $0x338] sm:$0xff] }
  0x2f   :  { %3079 = vmatprep.subr.mxu0 %v3603_v0  ;;  %3098 = vmatprep.subr.mxu1 %v3603_v0 }
  0x30   :  { %3080 = vmatpush3.msra.mxu0 %v77_v47  ;;  %3099 = vmatpush3.msra.mxu1 %v85_v48  ;;  %v154_v47 = vld [vmem:[%s4964_s1 + $0x378] sm:$0xff]  ;;  %v145_v48 = vld [vmem:[%s4964_s1 + $0x330] sm:$0xff] }
  0x31   :  { %3081 = vmatprep.subr.mxu0 %v3603_v0  ;;  %3100 = vmatprep.subr.mxu1 %v3603_v0 }
  0x32   :  { %3082 = vmatpush3.msra.mxu0 %v76_v49  ;;  %3101 = vmatpush3.msra.mxu1 %v84_v50  ;;  %v153_v49 = vld [vmem:[%s4964_s1 + $0x370] sm:$0xff]  ;;  %v144_v50 = vld [vmem:[%s4964_s1 + $0x328] sm:$0xff] }
  0x33   :  { %3083 = vmatprep.subr.mxu0 %v3603_v0  ;;  %3102 = vmatprep.subr.mxu1 %v3603_v0 }
  0x34   :  { %3084 = vmatpush3.msra.mxu0 %v75_v51  ;;  %3085 = vmatprep.mubr.msk.f32.mxu0 %vm3604_vm1, %v3603_v0  ;;  %v152_v51 = vld [vmem:[%s4964_s1 + $0x368] sm:$0xff] }
  0x35   :  { %3103 = vmatpush3.msra.mxu1 %v83_v52  ;;  %3104 = vmatprep.mubr.msk.f32.mxu1 %vm3604_vm1, %v3603_v0  ;;  %v143_v52 = vld [vmem:[%s4964_s1 + $0x320] sm:$0xff] }
  0x36   :  { %3086 = vmatmul.mubr.msk.f32.vlgmr.msra.gmra.mxu0 %vm299_vm0, %v15_v53  ;;  %3105 = vmatmul.mubr.msk.f32.vlgmr.msra.gmra.mxu1 %vm299_vm0, %v16_v54  ;;  %v151_v53 = vld [vmem:[%s4964_s1 + $0x360] sm:$0xff]  ;;  %v142_v54 = vld [vmem:[%s4964_s1 + $0x318] sm:$0xff] }
  0x37   :  { %3107 = vmatprep.subr.mxu0 %v3603_v0  ;;  %3126 = vmatprep.subr.mxu1 %v3603_v0 }
  0x38   :  { %3108 = vmatpush3.msra.mxu0 %v98_v55  ;;  %3127 = vmatpush3.msra.mxu1 %v106_v56  ;;  %v150_v55 = vld [vmem:[%s4964_s1 + $0x358] sm:$0xff]  ;;  %v141_v56 = vld [vmem:[%s4964_s1 + $0x310] sm:$0xff] }
  0x39   :  { %3109 = vmatprep.subr.mxu0 %v3603_v0  ;;  %3128 = vmatprep.subr.mxu1 %v3603_v0 }
  0x3a   :  { %3110 = vmatpush3.msra.mxu0 %v97_v57  ;;  %3129 = vmatpush3.msra.mxu1 %v105_v58  ;;  %v149_v57 = vld [vmem:[%s4964_s1 + $0x350] sm:$0xff]  ;;  %v140_v58 = vld [vmem:[%s4964_s1 + $0x308] sm:$0xff] }
  0x3b   :  { %3111 = vmatprep.subr.mxu0 %v3603_v0  ;;  %3130 = vmatprep.subr.mxu1 %v3603_v0 }
  0x3c   :  { %3112 = vmatpush3.msra.mxu0 %v96_v59  ;;  %3131 = vmatpush3.msra.mxu1 %v104_v60  ;;  %v148_v59 = vld [vmem:[%s4964_s1 + $0x348] sm:$0xff]  ;;  %v139_v60 = vld [vmem:[%s4964_s1 + $0x300] sm:$0xff] }
  0x3d   :  { %3113 = vmatprep.subr.mxu0 %v3603_v0  ;;  %3132 = vmatprep.subr.mxu1 %v3603_v0 }
  0x3e   :  { %3114 = vmatpush3.msra.mxu0 %v95_v61  ;;  %3133 = vmatpush3.msra.mxu1 %v103_v62  ;;  %v147_v61 = vld [vmem:[%s4964_s1 + $0x340] sm:$0xff]  ;;  %v23_v62 = vld [vmem:[%s4965_s0 + $0x18] sm:$0x3] }
  0x3f   :  { %3115 = vmatprep.subr.mxu0 %v3603_v0  ;;  %3134 = vmatprep.subr.mxu1 %v3603_v0 }
  0x40   :  { %3116 = vmatpush3.msra.mxu0 %v94_v63  ;;  %3135 = vmatpush3.msra.mxu1 %v102_v1  ;;  %v24_v63 = vld [vmem:[%s4965_s0 + $0x1a] sm:$0x3] }
  0x41   :  { %3117 = vmatprep.subr.mxu0 %v3603_v0  ;;  %3136 = vmatprep.subr.mxu1 %v3603_v0  ;;  %v162_v1 = vld [vmem:[%s4964_s1 + $0x3b8] sm:$0xff] }
  0x42   :  { %3118 = vmatpush3.msra.mxu0 %v93_v2  ;;  %3137 = vmatpush3.msra.mxu1 %v101_v3  ;;  %v170_v2 = vld [vmem:[%s4964_s1 + $0x3f8] sm:$0xff]  ;;  %v161_v3 = vld [vmem:[%s4964_s1 + $0x3b0] sm:$0xff] }
  0x43   :  { %3119 = vmatprep.subr.mxu0 %v3603_v0  ;;  %3138 = vmatprep.subr.mxu1 %v3603_v0 }
  0x44   :  { %3120 = vmatpush3.msra.mxu0 %v92_v4  ;;  %3139 = vmatpush3.msra.mxu1 %v100_v5  ;;  %v169_v4 = vld [vmem:[%s4964_s1 + $0x3f0] sm:$0xff]  ;;  %v160_v5 = vld [vmem:[%s4964_s1 + $0x3a8] sm:$0xff] }
  0x45   :  { %3121 = vmatprep.subr.mxu0 %v3603_v0  ;;  %3140 = vmatprep.subr.mxu1 %v3603_v0 }
  0x46   :  { %3122 = vmatpush3.msra.mxu0 %v91_v6  ;;  %3123 = vmatprep.mubr.msk.f32.mxu0 %vm3604_vm1, %v3603_v0  ;;  %v168_v6 = vld [vmem:[%s4964_s1 + $0x3e8] sm:$0xff] }
  0x47   :  { %3141 = vmatpush3.msra.mxu1 %v99_v7  ;;  %3142 = vmatprep.mubr.msk.f32.mxu1 %vm3604_vm1, %v3603_v0  ;;  %v159_v7 = vld [vmem:[%s4964_s1 + $0x3a0] sm:$0xff] }
  0x48   :  { %3124 = vmatmul.mubr.msk.f32.vlgmr.msra.gmra.mxu0 %vm299_vm0, %v17_v8  ;;  %3143 = vmatmul.mubr.msk.f32.vlgmr.msra.gmra.mxu1 %vm299_vm0, %v18_v9  ;;  %v167_v8 = vld [vmem:[%s4964_s1 + $0x3e0] sm:$0xff]  ;;  %v158_v9 = vld [vmem:[%s4964_s1 + $0x398] sm:$0xff] }
  0x49   :  { %3145 = vmatprep.subr.mxu0 %v3603_v0  ;;  %3164 = vmatprep.subr.mxu1 %v3603_v0 }
  0x4a   :  { %3146 = vmatpush3.msra.mxu0 %v114_v10  ;;  %3165 = vmatpush3.msra.mxu1 %v122_v11  ;;  %v166_v10 = vld [vmem:[%s4964_s1 + $0x3d8] sm:$0xff]  ;;  %v157_v11 = vld [vmem:[%s4964_s1 + $0x390] sm:$0xff] }
  0x4b   :  { %3147 = vmatprep.subr.mxu0 %v3603_v0  ;;  %3166 = vmatprep.subr.mxu1 %v3603_v0 }
  0x4c   :  { %3148 = vmatpush3.msra.mxu0 %v113_v12  ;;  %3167 = vmatpush3.msra.mxu1 %v121_v13  ;;  %v165_v12 = vld [vmem:[%s4964_s1 + $0x3d0] sm:$0xff]  ;;  %v156_v13 = vld [vmem:[%s4964_s1 + $0x388] sm:$0xff] }
  0x4d   :  { %3149 = vmatprep.subr.mxu0 %v3603_v0  ;;  %3168 = vmatprep.subr.mxu1 %v3603_v0 }
  0x4e   :  { %3150 = vmatpush3.msra.mxu0 %v112_v14  ;;  %3169 = vmatpush3.msra.mxu1 %v120_v15  ;;  %v164_v14 = vld [vmem:[%s4964_s1 + $0x3c8] sm:$0xff]  ;;  %v155_v15 = vld [vmem:[%s4964_s1 + $0x380] sm:$0xff] }
  0x4f   :  { %3151 = vmatprep.subr.mxu0 %v3603_v0  ;;  %3170 = vmatprep.subr.mxu1 %v3603_v0 }
  0x50   :  { %3152 = vmatpush3.msra.mxu0 %v111_v16  ;;  %3171 = vmatpush3.msra.mxu1 %v119_v17  ;;  %v163_v16 = vld [vmem:[%s4964_s1 + $0x3c0] sm:$0xff]  ;;  %v25_v17 = vld [vmem:[%s4965_s0 + $0x1c] sm:$0x3] }
  0x51   :  { %3153 = vmatprep.subr.mxu0 %v3603_v0  ;;  %3172 = vmatprep.subr.mxu1 %v3603_v0 }
  0x52   :  { %3154 = vmatpush3.msra.mxu0 %v110_v18  ;;  %3173 = vmatpush3.msra.mxu1 %v118_v19  ;;  %v26_v18 = vld [vmem:[%s4965_s0 + $0x1e] sm:$0x3] }
  0x53   :  { %3155 = vmatprep.subr.mxu0 %v3603_v0  ;;  %3174 = vmatprep.subr.mxu1 %v3603_v0  ;;  %v178_v19 = vld [vmem:[%s4964_s1 + $0x438] sm:$0xff] }
  0x54   :  { %3156 = vmatpush3.msra.mxu0 %v109_v20  ;;  %3175 = vmatpush3.msra.mxu1 %v117_v21  ;;  %v186_v20 = vld [vmem:[%s4964_s1 + $0x478] sm:$0xff]  ;;  %v177_v21 = vld [vmem:[%s4964_s1 + $0x430] sm:$0xff] }
  0x55   :  { %3157 = vmatprep.subr.mxu0 %v3603_v0  ;;  %3176 = vmatprep.subr.mxu1 %v3603_v0 }
  0x56   :  { %3158 = vmatpush3.msra.mxu0 %v108_v22  ;;  %3177 = vmatpush3.msra.mxu1 %v116_v23  ;;  %v185_v22 = vld [vmem:[%s4964_s1 + $0x470] sm:$0xff]  ;;  %v176_v23 = vld [vmem:[%s4964_s1 + $0x428] sm:$0xff] }
  0x57   :  { %3159 = vmatprep.subr.mxu0 %v3603_v0  ;;  %3178 = vmatprep.subr.mxu1 %v3603_v0 }
  0x58   :  { %3160 = vmatpush3.msra.mxu0 %v107_v24  ;;  %3161 = vmatprep.mubr.msk.f32.mxu0 %vm3604_vm1, %v3603_v0  ;;  %v184_v24 = vld [vmem:[%s4964_s1 + $0x468] sm:$0xff] }
  0x59   :  { %3179 = vmatpush3.msra.mxu1 %v115_v25  ;;  %3180 = vmatprep.mubr.msk.f32.mxu1 %vm3604_vm1, %v3603_v0  ;;  %v175_v25 = vld [vmem:[%s4964_s1 + $0x420] sm:$0xff] }
  0x5a   :  { %3162 = vmatmul.mubr.msk.f32.vlgmr.msra.gmra.mxu0 %vm299_vm0, %v19_v26  ;;  %3181 = vmatmul.mubr.msk.f32.vlgmr.msra.gmra.mxu1 %vm299_vm0, %v20_v27  ;;  %v183_v26 = vld [vmem:[%s4964_s1 + $0x460] sm:$0xff]  ;;  %v174_v27 = vld [vmem:[%s4964_s1 + $0x418] sm:$0xff] }
  0x5b   :  { %3183 = vmatprep.subr.mxu0 %v3603_v0  ;;  %3202 = vmatprep.subr.mxu1 %v3603_v0 }
  0x5c   :  { %3184 = vmatpush3.msra.mxu0 %v130_v28  ;;  %3203 = vmatpush3.msra.mxu1 %v138_v29  ;;  %v182_v28 = vld [vmem:[%s4964_s1 + $0x458] sm:$0xff]  ;;  %v173_v29 = vld [vmem:[%s4964_s1 + $0x410] sm:$0xff] }
  0x5d   :  { %3185 = vmatprep.subr.mxu0 %v3603_v0  ;;  %3204 = vmatprep.subr.mxu1 %v3603_v0 }
  0x5e   :  { %3186 = vmatpush3.msra.mxu0 %v129_v30  ;;  %3205 = vmatpush3.msra.mxu1 %v137_v31  ;;  %v181_v30 = vld [vmem:[%s4964_s1 + $0x450] sm:$0xff]  ;;  %v172_v31 = vld [vmem:[%s4964_s1 + $0x408] sm:$0xff] }
  0x5f   :  { %3187 = vmatprep.subr.mxu0 %v3603_v0  ;;  %3206 = vmatprep.subr.mxu1 %v3603_v0 }
  0x60   :  { %3188 = vmatpush3.msra.mxu0 %v128_v32  ;;  %3207 = vmatpush3.msra.mxu1 %v136_v33  ;;  %v180_v32 = vld [vmem:[%s4964_s1 + $0x448] sm:$0xff]  ;;  %v171_v33 = vld [vmem:[%s4964_s1 + $0x400] sm:$0xff] }
  0x61   :  { %3189 = vmatprep.subr.mxu0 %v3603_v0  ;;  %3208 = vmatprep.subr.mxu1 %v3603_v0 }
  0x62   :  { %3190 = vmatpush3.msra.mxu0 %v127_v34  ;;  %3209 = vmatpush3.msra.mxu1 %v135_v35  ;;  %v179_v34 = vld [vmem:[%s4964_s1 + $0x440] sm:$0xff] }
  0x63   :  { %3191 = vmatprep.subr.mxu0 %v3603_v0  ;;  %3210 = vmatprep.subr.mxu1 %v3603_v0  ;;  %v27_v35 = vld [vmem:[%s4965_s0 + $0x20] sm:$0x3] }
  0x64   :  { %3192 = vmatpush3.msra.mxu0 %v126_v36  ;;  %3211 = vmatpush3.msra.mxu1 %v134_v37  ;;  %v28_v36 = vld [vmem:[%s4965_s0 + $0x22] sm:$0x3]  ;;  %v194_v37 = vld [vmem:[%s4964_s1 + $0x4b8] sm:$0xff] }
  0x65   :  { %3193 = vmatprep.subr.mxu0 %v3603_v0  ;;  %3212 = vmatprep.subr.mxu1 %v3603_v0 }
  0x66   :  { %3194 = vmatpush3.msra.mxu0 %v125_v38  ;;  %3213 = vmatpush3.msra.mxu1 %v133_v39  ;;  %v202_v38 = vld [vmem:[%s4964_s1 + $0x4f8] sm:$0xff]  ;;  %v193_v39 = vld [vmem:[%s4964_s1 + $0x4b0] sm:$0xff] }
  0x67   :  { %3195 = vmatprep.subr.mxu0 %v3603_v0  ;;  %3214 = vmatprep.subr.mxu1 %v3603_v0 }
  0x68   :  { %3196 = vmatpush3.msra.mxu0 %v124_v40  ;;  %3215 = vmatpush3.msra.mxu1 %v132_v41  ;;  %v201_v40 = vld [vmem:[%s4964_s1 + $0x4f0] sm:$0xff]  ;;  %v192_v41 = vld [vmem:[%s4964_s1 + $0x4a8] sm:$0xff] }
  0x69   :  { %3197 = vmatprep.subr.mxu0 %v3603_v0  ;;  %3216 = vmatprep.subr.mxu1 %v3603_v0 }
  0x6a   :  { %3198 = vmatpush3.msra.mxu0 %v123_v42  ;;  %3199 = vmatprep.mubr.msk.f32.mxu0 %vm3604_vm1, %v3603_v0  ;;  %v200_v42 = vld [vmem:[%s4964_s1 + $0x4e8] sm:$0xff] }
  0x6b   :  { %3217 = vmatpush3.msra.mxu1 %v131_v43  ;;  %3218 = vmatprep.mubr.msk.f32.mxu1 %vm3604_vm1, %v3603_v0  ;;  %v191_v43 = vld [vmem:[%s4964_s1 + $0x4a0] sm:$0xff] }
  0x6c   :  { %3200 = vmatmul.mubr.msk.f32.vlgmr.msra.gmra.mxu0 %vm299_vm0, %v21_v44  ;;  %3219 = vmatmul.mubr.msk.f32.vlgmr.msra.gmra.mxu1 %vm299_vm0, %v22_v45  ;;  %v199_v44 = vld [vmem:[%s4964_s1 + $0x4e0] sm:$0xff]  ;;  %v190_v45 = vld [vmem:[%s4964_s1 + $0x498] sm:$0xff] }
  0x6d   :  { %3221 = vmatprep.subr.mxu0 %v3603_v0  ;;  %3240 = vmatprep.subr.mxu1 %v3603_v0 }
  0x6e   :  { %3222 = vmatpush3.msra.mxu0 %v146_v46  ;;  %3241 = vmatpush3.msra.mxu1 %v154_v47  ;;  %v198_v46 = vld [vmem:[%s4964_s1 + $0x4d8] sm:$0xff]  ;;  %v189_v47 = vld [vmem:[%s4964_s1 + $0x490] sm:$0xff] }
  0x6f   :  { %3223 = vmatprep.subr.mxu0 %v3603_v0  ;;  %3242 = vmatprep.subr.mxu1 %v3603_v0 }
  0x70   :  { %3224 = vmatpush3.msra.mxu0 %v145_v48  ;;  %3243 = vmatpush3.msra.mxu1 %v153_v49  ;;  %v197_v48 = vld [vmem:[%s4964_s1 + $0x4d0] sm:$0xff]  ;;  %v188_v49 = vld [vmem:[%s4964_s1 + $0x488] sm:$0xff] }
  0x71   :  { %3225 = vmatprep.subr.mxu0 %v3603_v0  ;;  %3244 = vmatprep.subr.mxu1 %v3603_v0 }
  0x72   :  { %3226 = vmatpush3.msra.mxu0 %v144_v50  ;;  %3245 = vmatpush3.msra.mxu1 %v152_v51  ;;  %v196_v50 = vld [vmem:[%s4964_s1 + $0x4c8] sm:$0xff]  ;;  %v187_v51 = vld [vmem:[%s4964_s1 + $0x480] sm:$0xff] }
  0x73   :  { %3227 = vmatprep.subr.mxu0 %v3603_v0  ;;  %3246 = vmatprep.subr.mxu1 %v3603_v0 }
  0x74   :  { %3228 = vmatpush3.msra.mxu0 %v143_v52  ;;  %3247 = vmatpush3.msra.mxu1 %v151_v53  ;;  %v195_v52 = vld [vmem:[%s4964_s1 + $0x4c0] sm:$0xff] }
  0x75   :  { %3229 = vmatprep.subr.mxu0 %v3603_v0  ;;  %3248 = vmatprep.subr.mxu1 %v3603_v0  ;;  %v29_v53 = vld [vmem:[%s4965_s0 + $0x24] sm:$0x3] }
  0x76   :  { %3230 = vmatpush3.msra.mxu0 %v142_v54  ;;  %3249 = vmatpush3.msra.mxu1 %v150_v55  ;;  %v30_v54 = vld [vmem:[%s4965_s0 + $0x26] sm:$0x3]  ;;  %v210_v55 = vld [vmem:[%s4964_s1 + $0x538] sm:$0xff] }
  0x77   :  { %3231 = vmatprep.subr.mxu0 %v3603_v0  ;;  %3250 = vmatprep.subr.mxu1 %v3603_v0 }
  0x78   :  { %3232 = vmatpush3.msra.mxu0 %v141_v56  ;;  %3251 = vmatpush3.msra.mxu1 %v149_v57  ;;  %v218_v56 = vld [vmem:[%s4964_s1 + $0x578] sm:$0xff]  ;;  %v209_v57 = vld [vmem:[%s4964_s1 + $0x530] sm:$0xff] }
  0x79   :  { %3233 = vmatprep.subr.mxu0 %v3603_v0  ;;  %3252 = vmatprep.subr.mxu1 %v3603_v0 }
  0x7a   :  { %3234 = vmatpush3.msra.mxu0 %v140_v58  ;;  %3253 = vmatpush3.msra.mxu1 %v148_v59  ;;  %v217_v58 = vld [vmem:[%s4964_s1 + $0x570] sm:$0xff]  ;;  %v208_v59 = vld [vmem:[%s4964_s1 + $0x528] sm:$0xff] }
  0x7b   :  { %3235 = vmatprep.subr.mxu0 %v3603_v0  ;;  %3254 = vmatprep.subr.mxu1 %v3603_v0 }
  0x7c   :  { %3236 = vmatpush3.msra.mxu0 %v139_v60  ;;  %3237 = vmatprep.mubr.msk.f32.mxu0 %vm3604_vm1, %v3603_v0  ;;  %v216_v60 = vld [vmem:[%s4964_s1 + $0x568] sm:$0xff] }
  0x7d   :  { %3255 = vmatpush3.msra.mxu1 %v147_v61  ;;  %3256 = vmatprep.mubr.msk.f32.mxu1 %vm3604_vm1, %v3603_v0  ;;  %v207_v61 = vld [vmem:[%s4964_s1 + $0x520] sm:$0xff] }
  0x7e   :  { %3238 = vmatmul.mubr.msk.f32.vlgmr.msra.gmra.mxu0 %vm299_vm0, %v23_v62  ;;  %3257 = vmatmul.mubr.msk.f32.vlgmr.msra.gmra.mxu1 %vm299_vm0, %v24_v63  ;;  %v215_v62 = vld [vmem:[%s4964_s1 + $0x560] sm:$0xff]  ;;  %v206_v63 = vld [vmem:[%s4964_s1 + $0x518] sm:$0xff] }
  0x7f   :  { %3259 = vmatprep.subr.mxu0 %v3603_v0  ;;  %3278 = vmatprep.subr.mxu1 %v3603_v0 }
  0x80   :  { %3260 = vmatpush3.msra.mxu0 %v162_v1  ;;  %3279 = vmatpush3.msra.mxu1 %v170_v2  ;;  %v214_v1 = vld [vmem:[%s4964_s1 + $0x558] sm:$0xff]  ;;  %v205_v2 = vld [vmem:[%s4964_s1 + $0x510] sm:$0xff] }
  0x81   :  { %3261 = vmatprep.subr.mxu0 %v3603_v0  ;;  %3280 = vmatprep.subr.mxu1 %v3603_v0 }
  0x82   :  { %3262 = vmatpush3.msra.mxu0 %v161_v3  ;;  %3281 = vmatpush3.msra.mxu1 %v169_v4  ;;  %v213_v3 = vld [vmem:[%s4964_s1 + $0x550] sm:$0xff]  ;;  %v204_v4 = vld [vmem:[%s4964_s1 + $0x508] sm:$0xff] }
  0x83   :  { %3263 = vmatprep.subr.mxu0 %v3603_v0  ;;  %3282 = vmatprep.subr.mxu1 %v3603_v0 }
  0x84   :  { %3264 = vmatpush3.msra.mxu0 %v160_v5  ;;  %3283 = vmatpush3.msra.mxu1 %v168_v6  ;;  %v212_v5 = vld [vmem:[%s4964_s1 + $0x548] sm:$0xff]  ;;  %v203_v6 = vld [vmem:[%s4964_s1 + $0x500] sm:$0xff] }
  0x85   :  { %3265 = vmatprep.subr.mxu0 %v3603_v0  ;;  %3284 = vmatprep.subr.mxu1 %v3603_v0 }
  0x86   :  { %3266 = vmatpush3.msra.mxu0 %v159_v7  ;;  %3285 = vmatpush3.msra.mxu1 %v167_v8  ;;  %v211_v7 = vld [vmem:[%s4964_s1 + $0x540] sm:$0xff]  ;;  %v31_v8 = vld [vmem:[%s4965_s0 + $0x28] sm:$0x3] }
  0x87   :  { %3267 = vmatprep.subr.mxu0 %v3603_v0  ;;  %3286 = vmatprep.subr.mxu1 %v3603_v0 }
  0x88   :  { %3268 = vmatpush3.msra.mxu0 %v158_v9  ;;  %3287 = vmatpush3.msra.mxu1 %v166_v10  ;;  %v32_v9 = vld [vmem:[%s4965_s0 + $0x2a] sm:$0x3]  ;;  %v226_v10 = vld [vmem:[%s4964_s1 + $0x5b8] sm:$0xff] }
  0x89   :  { %3269 = vmatprep.subr.mxu0 %v3603_v0  ;;  %3288 = vmatprep.subr.mxu1 %v3603_v0 }
  0x8a   :  { %3270 = vmatpush3.msra.mxu0 %v157_v11  ;;  %3289 = vmatpush3.msra.mxu1 %v165_v12  ;;  %v234_v11 = vld [vmem:[%s4964_s1 + $0x5f8] sm:$0xff]  ;;  %v225_v12 = vld [vmem:[%s4964_s1 + $0x5b0] sm:$0xff] }
  0x8b   :  { %3271 = vmatprep.subr.mxu0 %v3603_v0  ;;  %3290 = vmatprep.subr.mxu1 %v3603_v0 }
  0x8c   :  { %3272 = vmatpush3.msra.mxu0 %v156_v13  ;;  %3291 = vmatpush3.msra.mxu1 %v164_v14  ;;  %v233_v13 = vld [vmem:[%s4964_s1 + $0x5f0] sm:$0xff]  ;;  %v224_v14 = vld [vmem:[%s4964_s1 + $0x5a8] sm:$0xff] }
  0x8d   :  { %3273 = vmatprep.subr.mxu0 %v3603_v0  ;;  %3292 = vmatprep.subr.mxu1 %v3603_v0 }
  0x8e   :  { %3274 = vmatpush3.msra.mxu0 %v155_v15  ;;  %3275 = vmatprep.mubr.msk.f32.mxu0 %vm3604_vm1, %v3603_v0  ;;  %v232_v15 = vld [vmem:[%s4964_s1 + $0x5e8] sm:$0xff] }
  0x8f   :  { %3293 = vmatpush3.msra.mxu1 %v163_v16  ;;  %3294 = vmatprep.mubr.msk.f32.mxu1 %vm3604_vm1, %v3603_v0  ;;  %v223_v16 = vld [vmem:[%s4964_s1 + $0x5a0] sm:$0xff] }
  0x90   :  { %3276 = vmatmul.mubr.msk.f32.vlgmr.msra.gmra.mxu0 %vm299_vm0, %v25_v17  ;;  %3295 = vmatmul.mubr.msk.f32.vlgmr.msra.gmra.mxu1 %vm299_vm0, %v26_v18  ;;  %v231_v17 = vld [vmem:[%s4964_s1 + $0x5e0] sm:$0xff]  ;;  %v222_v18 = vld [vmem:[%s4964_s1 + $0x598] sm:$0xff] }
  0x91   :  { %3297 = vmatprep.subr.mxu0 %v3603_v0  ;;  %3316 = vmatprep.subr.mxu1 %v3603_v0 }
  0x92   :  { %3298 = vmatpush3.msra.mxu0 %v178_v19  ;;  %3317 = vmatpush3.msra.mxu1 %v186_v20  ;;  %v230_v19 = vld [vmem:[%s4964_s1 + $0x5d8] sm:$0xff]  ;;  %v221_v20 = vld [vmem:[%s4964_s1 + $0x590] sm:$0xff] }
  0x93   :  { %3299 = vmatprep.subr.mxu0 %v3603_v0  ;;  %3318 = vmatprep.subr.mxu1 %v3603_v0 }
  0x94   :  { %3300 = vmatpush3.msra.mxu0 %v177_v21  ;;  %3319 = vmatpush3.msra.mxu1 %v185_v22  ;;  %v229_v21 = vld [vmem:[%s4964_s1 + $0x5d0] sm:$0xff]  ;;  %v220_v22 = vld [vmem:[%s4964_s1 + $0x588] sm:$0xff] }
  0x95   :  { %3301 = vmatprep.subr.mxu0 %v3603_v0  ;;  %3320 = vmatprep.subr.mxu1 %v3603_v0 }
  0x96   :  { %3302 = vmatpush3.msra.mxu0 %v176_v23  ;;  %3321 = vmatpush3.msra.mxu1 %v184_v24  ;;  %v228_v23 = vld [vmem:[%s4964_s1 + $0x5c8] sm:$0xff] }
  0x97   :  { %3303 = vmatprep.subr.mxu0 %v3603_v0  ;;  %3322 = vmatprep.subr.mxu1 %v3603_v0 }
  0x98   :  { %3304 = vmatpush3.msra.mxu0 %v175_v25  ;;  %3323 = vmatpush3.msra.mxu1 %v183_v26  ;;  %v219_v26 = vld [vmem:[%s4964_s1 + $0x580] sm:$0xff] }
  0x99   :  { %3305 = vmatprep.subr.mxu0 %v3603_v0  ;;  %3324 = vmatprep.subr.mxu1 %v3603_v0 }
  0x9a   :  { %3306 = vmatpush3.msra.mxu0 %v174_v27  ;;  %3325 = vmatpush3.msra.mxu1 %v182_v28  ;;  %v227_v27 = vld [vmem:[%s4964_s1 + $0x5c0] sm:$0xff] }
  0x9b   :  { %3307 = vmatprep.subr.mxu0 %v3603_v0  ;;  %3326 = vmatprep.subr.mxu1 %v3603_v0 }
  0x9c   :  { %3308 = vmatpush3.msra.mxu0 %v173_v29  ;;  %3327 = vmatpush3.msra.mxu1 %v181_v30  ;;  %v33_v30 = vld [vmem:[%s4965_s0 + $0x2c] sm:$0x3] }
  0x9d   :  { %3309 = vmatprep.subr.mxu0 %v3603_v0  ;;  %3328 = vmatprep.subr.mxu1 %v3603_v0 }
  0x9e   :  { %3310 = vmatpush3.msra.mxu0 %v172_v31  ;;  %3329 = vmatpush3.msra.mxu1 %v180_v32  ;;  %v34_v31 = vld [vmem:[%s4965_s0 + $0x2e] sm:$0x3]  ;;  %v242_v32 = vld [vmem:[%s4964_s1 + $0x638] sm:$0xff] }
  0x9f   :  { %3311 = vmatprep.subr.mxu0 %v3603_v0  ;;  %3330 = vmatprep.subr.mxu1 %v3603_v0 }
  0xa0   :  { %3312 = vmatpush3.msra.mxu0 %v171_v33  ;;  %3313 = vmatprep.mubr.msk.f32.mxu0 %vm3604_vm1, %v3603_v0  ;;  %v250_v33 = vld [vmem:[%s4964_s1 + $0x678] sm:$0xff] }
  0xa1   :  { %3331 = vmatpush3.msra.mxu1 %v179_v34  ;;  %3332 = vmatprep.mubr.msk.f32.mxu1 %vm3604_vm1, %v3603_v0  ;;  %v241_v34 = vld [vmem:[%s4964_s1 + $0x630] sm:$0xff] }
  0xa2   :  { %3314 = vmatmul.mubr.msk.f32.vlgmr.msra.gmra.mxu0 %vm299_vm0, %v27_v35  ;;  %3333 = vmatmul.mubr.msk.f32.vlgmr.msra.gmra.mxu1 %vm299_vm0, %v28_v36  ;;  %v249_v35 = vld [vmem:[%s4964_s1 + $0x670] sm:$0xff]  ;;  %v240_v36 = vld [vmem:[%s4964_s1 + $0x628] sm:$0xff] }
  0xa3   :  { %3335 = vmatprep.subr.mxu0 %v3603_v0  ;;  %3354 = vmatprep.subr.mxu1 %v3603_v0 }
  0xa4   :  { %3336 = vmatpush3.msra.mxu0 %v194_v37  ;;  %3355 = vmatpush3.msra.mxu1 %v202_v38  ;;  %v248_v37 = vld [vmem:[%s4964_s1 + $0x668] sm:$0xff]  ;;  %v239_v38 = vld [vmem:[%s4964_s1 + $0x620] sm:$0xff] }
  0xa5   :  { %3337 = vmatprep.subr.mxu0 %v3603_v0  ;;  %3356 = vmatprep.subr.mxu1 %v3603_v0 }
  0xa6   :  { %3338 = vmatpush3.msra.mxu0 %v193_v39  ;;  %3357 = vmatpush3.msra.mxu1 %v201_v40  ;;  %v247_v39 = vld [vmem:[%s4964_s1 + $0x660] sm:$0xff]  ;;  %v238_v40 = vld [vmem:[%s4964_s1 + $0x618] sm:$0xff] }
  0xa7   :  { %3339 = vmatprep.subr.mxu0 %v3603_v0  ;;  %3358 = vmatprep.subr.mxu1 %v3603_v0 }
  0xa8   :  { %3340 = vmatpush3.msra.mxu0 %v192_v41  ;;  %3359 = vmatpush3.msra.mxu1 %v200_v42  ;;  %v246_v41 = vld [vmem:[%s4964_s1 + $0x658] sm:$0xff]  ;;  %v237_v42 = vld [vmem:[%s4964_s1 + $0x610] sm:$0xff] }
  0xa9   :  { %3341 = vmatprep.subr.mxu0 %v3603_v0  ;;  %3360 = vmatprep.subr.mxu1 %v3603_v0 }
  0xaa   :  { %3342 = vmatpush3.msra.mxu0 %v191_v43  ;;  %3361 = vmatpush3.msra.mxu1 %v199_v44  ;;  %v245_v43 = vld [vmem:[%s4964_s1 + $0x650] sm:$0xff]  ;;  %v236_v44 = vld [vmem:[%s4964_s1 + $0x608] sm:$0xff] }
  0xab   :  { %3343 = vmatprep.subr.mxu0 %v3603_v0  ;;  %3362 = vmatprep.subr.mxu1 %v3603_v0 }
  0xac   :  { %3344 = vmatpush3.msra.mxu0 %v190_v45  ;;  %3363 = vmatpush3.msra.mxu1 %v198_v46  ;;  %v244_v45 = vld [vmem:[%s4964_s1 + $0x648] sm:$0xff] }
  0xad   :  { %3345 = vmatprep.subr.mxu0 %v3603_v0  ;;  %3364 = vmatprep.subr.mxu1 %v3603_v0 }
  0xae   :  { %3346 = vmatpush3.msra.mxu0 %v189_v47  ;;  %3365 = vmatpush3.msra.mxu1 %v197_v48  ;;  %v235_v48 = vld [vmem:[%s4964_s1 + $0x600] sm:$0xff] }
  0xaf   :  { %3347 = vmatprep.subr.mxu0 %v3603_v0  ;;  %3366 = vmatprep.subr.mxu1 %v3603_v0 }
  0xb0   :  { %3348 = vmatpush3.msra.mxu0 %v188_v49  ;;  %3367 = vmatpush3.msra.mxu1 %v196_v50  ;;  %v243_v49 = vld [vmem:[%s4964_s1 + $0x640] sm:$0xff] }
  0xb1   :  { %3349 = vmatprep.subr.mxu0 %v3603_v0  ;;  %3368 = vmatprep.subr.mxu1 %v3603_v0 }
  0xb2   :  { %3350 = vmatpush3.msra.mxu0 %v187_v51  ;;  %3351 = vmatprep.mubr.msk.f32.mxu0 %vm3604_vm1, %v3603_v0 }
  0xb3   :  { %3369 = vmatpush3.msra.mxu1 %v195_v52  ;;  %3370 = vmatprep.mubr.msk.f32.mxu1 %vm3604_vm1, %v3603_v0  ;;  %v35_v52 = vld [vmem:[%s4965_s0 + $0x30] sm:$0x3] }
  0xb4   :  { %3352 = vmatmul.mubr.msk.f32.vlgmr.msra.gmra.mxu0 %vm299_vm0, %v29_v53  ;;  %3371 = vmatmul.mubr.msk.f32.vlgmr.msra.gmra.mxu1 %vm299_vm0, %v30_v54  ;;  %v36_v53 = vld [vmem:[%s4965_s0 + $0x32] sm:$0x3]  ;;  %v258_v54 = vld [vmem:[%s4964_s1 + $0x6b8] sm:$0xff] }
  0xb5   :  { %3373 = vmatprep.subr.mxu0 %v3603_v0  ;;  %3392 = vmatprep.subr.mxu1 %v3603_v0 }
  0xb6   :  { %3374 = vmatpush3.msra.mxu0 %v210_v55  ;;  %3393 = vmatpush3.msra.mxu1 %v218_v56  ;;  %v266_v55 = vld [vmem:[%s4964_s1 + $0x6f8] sm:$0xff]  ;;  %v257_v56 = vld [vmem:[%s4964_s1 + $0x6b0] sm:$0xff] }
  0xb7   :  { %3375 = vmatprep.subr.mxu0 %v3603_v0  ;;  %3394 = vmatprep.subr.mxu1 %v3603_v0 }
  0xb8   :  { %3376 = vmatpush3.msra.mxu0 %v209_v57  ;;  %3395 = vmatpush3.msra.mxu1 %v217_v58  ;;  %v265_v57 = vld [vmem:[%s4964_s1 + $0x6f0] sm:$0xff]  ;;  %v256_v58 = vld [vmem:[%s4964_s1 + $0x6a8] sm:$0xff] }
  0xb9   :  { %3377 = vmatprep.subr.mxu0 %v3603_v0  ;;  %3396 = vmatprep.subr.mxu1 %v3603_v0 }
  0xba   :  { %3378 = vmatpush3.msra.mxu0 %v208_v59  ;;  %3397 = vmatpush3.msra.mxu1 %v216_v60  ;;  %v264_v59 = vld [vmem:[%s4964_s1 + $0x6e8] sm:$0xff]  ;;  %v255_v60 = vld [vmem:[%s4964_s1 + $0x6a0] sm:$0xff] }
  0xbb   :  { %3379 = vmatprep.subr.mxu0 %v3603_v0  ;;  %3398 = vmatprep.subr.mxu1 %v3603_v0 }
  0xbc   :  { %3380 = vmatpush3.msra.mxu0 %v207_v61  ;;  %3399 = vmatpush3.msra.mxu1 %v215_v62  ;;  %v263_v61 = vld [vmem:[%s4964_s1 + $0x6e0] sm:$0xff]  ;;  %v254_v62 = vld [vmem:[%s4964_s1 + $0x698] sm:$0xff] }
  0xbd   :  { %3381 = vmatprep.subr.mxu0 %v3603_v0  ;;  %3400 = vmatprep.subr.mxu1 %v3603_v0 }
  0xbe   :  { %3382 = vmatpush3.msra.mxu0 %v206_v63  ;;  %3401 = vmatpush3.msra.mxu1 %v214_v1  ;;  %v262_v63 = vld [vmem:[%s4964_s1 + $0x6d8] sm:$0xff]  ;;  %v253_v1 = vld [vmem:[%s4964_s1 + $0x690] sm:$0xff] }
  0xbf   :  { %3383 = vmatprep.subr.mxu0 %v3603_v0  ;;  %3402 = vmatprep.subr.mxu1 %v3603_v0 }
  0xc0   :  { %3384 = vmatpush3.msra.mxu0 %v205_v2  ;;  %3403 = vmatpush3.msra.mxu1 %v213_v3  ;;  %v261_v2 = vld [vmem:[%s4964_s1 + $0x6d0] sm:$0xff]  ;;  %v252_v3 = vld [vmem:[%s4964_s1 + $0x688] sm:$0xff] }
  0xc1   :  { %3385 = vmatprep.subr.mxu0 %v3603_v0  ;;  %3404 = vmatprep.subr.mxu1 %v3603_v0 }
  0xc2   :  { %3386 = vmatpush3.msra.mxu0 %v204_v4  ;;  %3405 = vmatpush3.msra.mxu1 %v212_v5  ;;  %v260_v4 = vld [vmem:[%s4964_s1 + $0x6c8] sm:$0xff] }
  0xc3   :  { %3387 = vmatprep.subr.mxu0 %v3603_v0  ;;  %3406 = vmatprep.subr.mxu1 %v3603_v0 }
  0xc4   :  { %3388 = vmatpush3.msra.mxu0 %v203_v6  ;;  %3389 = vmatprep.mubr.msk.f32.mxu0 %vm3604_vm1, %v3603_v0 }
  0xc5   :  { %3407 = vmatpush3.msra.mxu1 %v211_v7  ;;  %3408 = vmatprep.mubr.msk.f32.mxu1 %vm3604_vm1, %v3603_v0  ;;  %v251_v7 = vld [vmem:[%s4964_s1 + $0x680] sm:$0xff] }
  0xc6   :  { %3390 = vmatmul.mubr.msk.f32.vlgmr.msra.gmra.mxu0 %vm299_vm0, %v31_v8  ;;  %3409 = vmatmul.mubr.msk.f32.vlgmr.msra.gmra.mxu1 %vm299_vm0, %v32_v9  ;;  %v259_v8 = vld [vmem:[%s4964_s1 + $0x6c0] sm:$0xff] }
  0xc7   :  { %3411 = vmatprep.subr.mxu0 %v3603_v0  ;;  %3430 = vmatprep.subr.mxu1 %v3603_v0 }
  0xc8   :  { %3412 = vmatpush3.msra.mxu0 %v226_v10  ;;  %3431 = vmatpush3.msra.mxu1 %v234_v11  ;;  %v37_v11 = vld [vmem:[%s4965_s0 + $0x34] sm:$0x3] }
  0xc9   :  { %3413 = vmatprep.subr.mxu0 %v3603_v0  ;;  %3432 = vmatprep.subr.mxu1 %v3603_v0 }
  0xca   :  { %3414 = vmatpush3.msra.mxu0 %v225_v12  ;;  %3433 = vmatpush3.msra.mxu1 %v233_v13  ;;  %v38_v12 = vld [vmem:[%s4965_s0 + $0x36] sm:$0x3]  ;;  %v274_v13 = vld [vmem:[%s4964_s1 + $0x738] sm:$0xff] }
  0xcb   :  { %3415 = vmatprep.subr.mxu0 %v3603_v0  ;;  %3434 = vmatprep.subr.mxu1 %v3603_v0 }
  0xcc   :  { %3416 = vmatpush3.msra.mxu0 %v224_v14  ;;  %3435 = vmatpush3.msra.mxu1 %v232_v15  ;;  %v282_v14 = vld [vmem:[%s4964_s1 + $0x778] sm:$0xff]  ;;  %v273_v15 = vld [vmem:[%s4964_s1 + $0x730] sm:$0xff] }
  0xcd   :  { %3417 = vmatprep.subr.mxu0 %v3603_v0  ;;  %3436 = vmatprep.subr.mxu1 %v3603_v0 }
  0xce   :  { %3418 = vmatpush3.msra.mxu0 %v223_v16  ;;  %3437 = vmatpush3.msra.mxu1 %v231_v17  ;;  %v281_v16 = vld [vmem:[%s4964_s1 + $0x770] sm:$0xff]  ;;  %v272_v17 = vld [vmem:[%s4964_s1 + $0x728] sm:$0xff] }
  0xcf   :  { %3419 = vmatprep.subr.mxu0 %v3603_v0  ;;  %3438 = vmatprep.subr.mxu1 %v3603_v0 }
  0xd0   :  { %3420 = vmatpush3.msra.mxu0 %v222_v18  ;;  %3439 = vmatpush3.msra.mxu1 %v230_v19  ;;  %v280_v18 = vld [vmem:[%s4964_s1 + $0x768] sm:$0xff]  ;;  %v271_v19 = vld [vmem:[%s4964_s1 + $0x720] sm:$0xff] }
  0xd1   :  { %3421 = vmatprep.subr.mxu0 %v3603_v0  ;;  %3440 = vmatprep.subr.mxu1 %v3603_v0 }
  0xd2   :  { %3422 = vmatpush3.msra.mxu0 %v221_v20  ;;  %3441 = vmatpush3.msra.mxu1 %v229_v21  ;;  %v369_v24 = vpop.f32.mrf.mxu0  ;;  %v442_v25 = vpop.f32.mrf.mxu1  ;;  %v279_v20 = vld [vmem:[%s4964_s1 + $0x760] sm:$0xff]  ;;  %v270_v21 = vld [vmem:[%s4964_s1 + $0x718] sm:$0xff] }
  0xd3   :  { %3423 = vmatprep.subr.mxu0 %v3603_v0  ;;  %3442 = vmatprep.subr.mxu1 %v3603_v0  ;;  %2637 = vst.msk [vmem:[%s4966_s2] sm:$0x3] %vm2636_vm2, %v369_v24  ;;  %2638 = vst.msk [vmem:[%s4966_s2 + $0x2] sm:$0x3] %vm2636_vm2, %v442_v25  ;;  %v277_v24 = vld [vmem:[%s4964_s1 + $0x750] sm:$0xff]  ;;  %v268_v25 = vld [vmem:[%s4964_s1 + $0x708] sm:$0xff] }
  0xd4   :  { %3424 = vmatpush3.msra.mxu0 %v220_v22  ;;  %3443 = vmatpush3.msra.mxu1 %v228_v23  ;;  %v3011_v28 = vpop.f32.mrf.mxu0  ;;  %v3030_v29 = vpop.f32.mrf.mxu1  ;;  %v278_v22 = vld [vmem:[%s4964_s1 + $0x758] sm:$0xff]  ;;  %v269_v23 = vld [vmem:[%s4964_s1 + $0x710] sm:$0xff] }
  0xd5   :  { %3425 = vmatprep.subr.mxu0 %v3603_v0  ;;  %3444 = vmatprep.subr.mxu1 %v3603_v0  ;;  %v267_v29 = vld [vmem:[%s4964_s1 + $0x700] sm:$0xff] }
  0xd6   :  { %3426 = vmatpush3.msra.mxu0 %v219_v26  ;;  %3427 = vmatprep.mubr.msk.f32.mxu0 %vm3604_vm1, %v3603_v0  ;;  %v276_v26 = vld [vmem:[%s4964_s1 + $0x748] sm:$0xff] }
  0xd7   :  { %3445 = vmatpush3.msra.mxu1 %v227_v27  ;;  %3446 = vmatprep.mubr.msk.f32.mxu1 %vm3604_vm1, %v3603_v0 }
  0xd8   :  { %3428 = vmatmul.mubr.msk.f32.vlgmr.msra.gmra.mxu0 %vm299_vm0, %v33_v30  ;;  %3447 = vmatmul.mubr.msk.f32.vlgmr.msra.gmra.mxu1 %vm299_vm0, %v34_v31  ;;  %v275_v30 = vld [vmem:[%s4964_s1 + $0x740] sm:$0xff] }
  0xd9   :  { %3449 = vmatprep.subr.mxu0 %v3603_v0  ;;  %3468 = vmatprep.subr.mxu1 %v3603_v0 }
  0xda   :  { %3450 = vmatpush3.msra.mxu0 %v242_v32  ;;  %3469 = vmatpush3.msra.mxu1 %v250_v33  ;;  %v39_v33 = vld [vmem:[%s4965_s0 + $0x38] sm:$0x3] }
  0xdb   :  { %3451 = vmatprep.subr.mxu0 %v3603_v0  ;;  %3470 = vmatprep.subr.mxu1 %v3603_v0 }
  0xdc   :  { %3452 = vmatpush3.msra.mxu0 %v241_v34  ;;  %3471 = vmatpush3.msra.mxu1 %v249_v35  ;;  %v40_v34 = vld [vmem:[%s4965_s0 + $0x3a] sm:$0x3] }
  0xdd   :  { %3453 = vmatprep.subr.mxu0 %v3603_v0  ;;  %3472 = vmatprep.subr.mxu1 %v3603_v0  ;;  %v290_v35 = vld [vmem:[%s4964_s1 + $0x7b8] sm:$0xff] }
  0xde   :  { %3454 = vmatpush3.msra.mxu0 %v240_v36  ;;  %3473 = vmatpush3.msra.mxu1 %v248_v37  ;;  %v298_v36 = vld [vmem:[%s4964_s1 + $0x7f8] sm:$0xff]  ;;  %v289_v37 = vld [vmem:[%s4964_s1 + $0x7b0] sm:$0xff] }
  0xdf   :  { %3455 = vmatprep.subr.mxu0 %v3603_v0  ;;  %3474 = vmatprep.subr.mxu1 %v3603_v0 }
  0xe0   :  { %3456 = vmatpush3.msra.mxu0 %v239_v38  ;;  %3475 = vmatpush3.msra.mxu1 %v247_v39  ;;  %v297_v38 = vld [vmem:[%s4964_s1 + $0x7f0] sm:$0xff]  ;;  %v288_v39 = vld [vmem:[%s4964_s1 + $0x7a8] sm:$0xff] }
  0xe1   :  { %3457 = vmatprep.subr.mxu0 %v3603_v0  ;;  %3476 = vmatprep.subr.mxu1 %v3603_v0 }
  0xe2   :  { %3458 = vmatpush3.msra.mxu0 %v238_v40  ;;  %3477 = vmatpush3.msra.mxu1 %v246_v41  ;;  %v296_v40 = vld [vmem:[%s4964_s1 + $0x7e8] sm:$0xff]  ;;  %v287_v41 = vld [vmem:[%s4964_s1 + $0x7a0] sm:$0xff] }
  0xe3   :  { %3459 = vmatprep.subr.mxu0 %v3603_v0  ;;  %3478 = vmatprep.subr.mxu1 %v3603_v0 }
  0xe4   :  { %3460 = vmatpush3.msra.mxu0 %v237_v42  ;;  %3479 = vmatpush3.msra.mxu1 %v245_v43  ;;  %v515_v46 = vpop.f32.mrf.mxu0  ;;  %v588_v47 = vpop.f32.mrf.mxu1  ;;  %v295_v42 = vld [vmem:[%s4964_s1 + $0x7e0] sm:$0xff]  ;;  %v286_v43 = vld [vmem:[%s4964_s1 + $0x798] sm:$0xff] }
  0xe5   :  { %3461 = vmatprep.subr.mxu0 %v3603_v0  ;;  %3480 = vmatprep.subr.mxu1 %v3603_v0  ;;  %2639 = vst.msk [vmem:[%s4966_s2 + $0x4] sm:$0x3] %vm2636_vm2, %v515_v46  ;;  %2640 = vst.msk [vmem:[%s4966_s2 + $0x6] sm:$0x3] %vm2636_vm2, %v588_v47  ;;  %v293_v46 = vld [vmem:[%s4964_s1 + $0x7d0] sm:$0xff]  ;;  %v284_v47 = vld [vmem:[%s4964_s1 + $0x788] sm:$0xff] }
  0xe6   :  { %3462 = vmatpush3.msra.mxu0 %v236_v44  ;;  %3481 = vmatpush3.msra.mxu1 %v244_v45  ;;  %v3049_v50 = vpop.f32.mrf.mxu0  ;;  %v3068_v51 = vpop.f32.mrf.mxu1  ;;  %v294_v44 = vld [vmem:[%s4964_s1 + $0x7d8] sm:$0xff]  ;;  %v285_v45 = vld [vmem:[%s4964_s1 + $0x790] sm:$0xff] }
  0xe7   :  { %3463 = vmatprep.subr.mxu0 %v3603_v0  ;;  %3482 = vmatprep.subr.mxu1 %v3603_v0  ;;  %v283_v51 = vld [vmem:[%s4964_s1 + $0x780] sm:$0xff] }
  0xe8   :  { %3464 = vmatpush3.msra.mxu0 %v235_v48  ;;  %3465 = vmatprep.mubr.msk.f32.mxu0 %vm3604_vm1, %v3603_v0  ;;  %v292_v48 = vld [vmem:[%s4964_s1 + $0x7c8] sm:$0xff] }
  0xe9   :  { %3483 = vmatpush3.msra.mxu1 %v243_v49  ;;  %3484 = vmatprep.mubr.msk.f32.mxu1 %vm3604_vm1, %v3603_v0 }
  0xea   :  { %3466 = vmatmul.mubr.msk.f32.vlgmr.msra.gmra.mxu0 %vm299_vm0, %v35_v52  ;;  %3485 = vmatmul.mubr.msk.f32.vlgmr.msra.gmra.mxu1 %vm299_vm0, %v36_v53  ;;  %v291_v52 = vld [vmem:[%s4964_s1 + $0x7c0] sm:$0xff] }
  0xeb   :  { %3487 = vmatprep.subr.mxu0 %v3603_v0  ;;  %3506 = vmatprep.subr.mxu1 %v3603_v0 }
  0xec   :  { %3488 = vmatpush3.msra.mxu0 %v258_v54  ;;  %3507 = vmatpush3.msra.mxu1 %v266_v55  ;;  %v41_v55 = vld [vmem:[%s4965_s0 + $0x3c] sm:$0x3] }
  0xed   :  { %3489 = vmatprep.subr.mxu0 %v3603_v0  ;;  %3508 = vmatprep.subr.mxu1 %v3603_v0 }
  0xee   :  { %3490 = vmatpush3.msra.mxu0 %v257_v56  ;;  %3509 = vmatpush3.msra.mxu1 %v265_v57  ;;  %v42_v56 = vld [vmem:[%s4965_s0 + $0x3e] sm:$0x3] }
  0xef   :  { %3491 = vmatprep.subr.mxu0 %v3603_v0  ;;  %3510 = vmatprep.subr.mxu1 %v3603_v0 }
  0xf0   :  { %3492 = vmatpush3.msra.mxu0 %v256_v58  ;;  %3511 = vmatpush3.msra.mxu1 %v264_v59 }
  0xf1   :  { %3493 = vmatprep.subr.mxu0 %v3603_v0  ;;  %3512 = vmatprep.subr.mxu1 %v3603_v0 }
  0xf2   :  { %3494 = vmatpush3.msra.mxu0 %v255_v60  ;;  %3513 = vmatpush3.msra.mxu1 %v263_v61 }
  0xf3   :  { %3495 = vmatprep.subr.mxu0 %v3603_v0  ;;  %3514 = vmatprep.subr.mxu1 %v3603_v0 }
  0xf4   :  { %3496 = vmatpush3.msra.mxu0 %v254_v62  ;;  %3515 = vmatpush3.msra.mxu1 %v262_v63 }
  0xf5   :  { %3497 = vmatprep.subr.mxu0 %v3603_v0  ;;  %3516 = vmatprep.subr.mxu1 %v3603_v0 }
  0xf6   :  { %3498 = vmatpush3.msra.mxu0 %v253_v1  ;;  %3517 = vmatpush3.msra.mxu1 %v261_v2  ;;  %v661_v5 = vpop.f32.mrf.mxu0  ;;  %v734_v6 = vpop.f32.mrf.mxu1 }
  0xf7   :  { %3499 = vmatprep.subr.mxu0 %v3603_v0  ;;  %3518 = vmatprep.subr.mxu1 %v3603_v0  ;;  %2641 = vst.msk [vmem:[%s4966_s2 + $0x8] sm:$0x3] %vm2636_vm2, %v661_v5  ;;  %2642 = vst.msk [vmem:[%s4966_s2 + $0xa] sm:$0x3] %vm2636_vm2, %v734_v6 }
  0xf8   :  { %3500 = vmatpush3.msra.mxu0 %v252_v3  ;;  %3519 = vmatpush3.msra.mxu1 %v260_v4  ;;  %v3087_v9 = vpop.f32.mrf.mxu0  ;;  %v3106_v10 = vpop.f32.mrf.mxu1 }
  0xf9   :  { %3501 = vmatprep.subr.mxu0 %v3603_v0  ;;  %3520 = vmatprep.subr.mxu1 %v3603_v0 }
  0xfa   :  { %3502 = vmatpush3.msra.mxu0 %v251_v7  ;;  %3503 = vmatprep.mubr.msk.f32.mxu0 %vm3604_vm1, %v3603_v0 }
  0xfb   :  { %3521 = vmatpush3.msra.mxu1 %v259_v8  ;;  %3522 = vmatprep.mubr.msk.f32.mxu1 %vm3604_vm1, %v3603_v0 }
  0xfc   :  { %3504 = vmatmul.mubr.msk.f32.vlgmr.msra.gmra.mxu0 %vm299_vm0, %v37_v11  ;;  %3523 = vmatmul.mubr.msk.f32.vlgmr.msra.gmra.mxu1 %vm299_vm0, %v38_v12 }
  0xfd   :  { %3525 = vmatprep.subr.mxu0 %v3603_v0  ;;  %3544 = vmatprep.subr.mxu1 %v3603_v0 }
  0xfe   :  { %3526 = vmatpush3.msra.mxu0 %v274_v13  ;;  %3545 = vmatpush3.msra.mxu1 %v282_v14 }
  0xff   :  { %3527 = vmatprep.subr.mxu0 %v3603_v0  ;;  %3546 = vmatprep.subr.mxu1 %v3603_v0 }
 0x100   :  { %3528 = vmatpush3.msra.mxu0 %v273_v15  ;;  %3547 = vmatpush3.msra.mxu1 %v281_v16 }
 0x101   :  { %3529 = vmatprep.subr.mxu0 %v3603_v0  ;;  %3548 = vmatprep.subr.mxu1 %v3603_v0 }
 0x102   :  { %3530 = vmatpush3.msra.mxu0 %v272_v17  ;;  %3549 = vmatpush3.msra.mxu1 %v280_v18 }
 0x103   :  { %3531 = vmatprep.subr.mxu0 %v3603_v0  ;;  %3550 = vmatprep.subr.mxu1 %v3603_v0 }
 0x104   :  { %3532 = vmatpush3.msra.mxu0 %v271_v19  ;;  %3551 = vmatpush3.msra.mxu1 %v279_v20 }
 0x105   :  { %3533 = vmatprep.subr.mxu0 %v3603_v0  ;;  %3552 = vmatprep.subr.mxu1 %v3603_v0 }
 0x106   :  { %3534 = vmatpush3.msra.mxu0 %v270_v21  ;;  %3553 = vmatpush3.msra.mxu1 %v278_v22 }
 0x107   :  { %3535 = vmatprep.subr.mxu0 %v3603_v0  ;;  %3554 = vmatprep.subr.mxu1 %v3603_v0 }
 0x108   :  { %3536 = vmatpush3.msra.mxu0 %v269_v23  ;;  %3555 = vmatpush3.msra.mxu1 %v277_v24  ;;  %v807_v27 = vpop.f32.mrf.mxu0  ;;  %v880_v28 = vpop.f32.mrf.mxu1 }
 0x109   :  { %3537 = vmatprep.subr.mxu0 %v3603_v0  ;;  %3556 = vmatprep.subr.mxu1 %v3603_v0  ;;  %2643 = vst.msk [vmem:[%s4966_s2 + $0xc] sm:$0x3] %vm2636_vm2, %v807_v27  ;;  %2644 = vst.msk [vmem:[%s4966_s2 + $0xe] sm:$0x3] %vm2636_vm2, %v880_v28 }
 0x10a   :  { %3538 = vmatpush3.msra.mxu0 %v268_v25  ;;  %3557 = vmatpush3.msra.mxu1 %v276_v26  ;;  %v3125_v31 = vpop.f32.mrf.mxu0  ;;  %v3144_v32 = vpop.f32.mrf.mxu1 }
 0x10b   :  { %3539 = vmatprep.subr.mxu0 %v3603_v0  ;;  %3558 = vmatprep.subr.mxu1 %v3603_v0 }
 0x10c   :  { %3540 = vmatpush3.msra.mxu0 %v267_v29  ;;  %3541 = vmatprep.mubr.msk.f32.mxu0 %vm3604_vm1, %v3603_v0 }
 0x10d   :  { %3559 = vmatpush3.msra.mxu1 %v275_v30  ;;  %3560 = vmatprep.mubr.msk.f32.mxu1 %vm3604_vm1, %v3603_v0 }
 0x10e   :  { %3542 = vmatmul.mubr.msk.f32.vlgmr.msra.gmra.mxu0 %vm299_vm0, %v39_v33  ;;  %3561 = vmatmul.mubr.msk.f32.vlgmr.msra.gmra.mxu1 %vm299_vm0, %v40_v34 }
 0x10f   :  { %3563 = vmatprep.subr.mxu0 %v3603_v0  ;;  %3582 = vmatprep.subr.mxu1 %v3603_v0 }
 0x110   :  { %3564 = vmatpush3.msra.mxu0 %v290_v35  ;;  %3583 = vmatpush3.msra.mxu1 %v298_v36 }
 0x111   :  { %3565 = vmatprep.subr.mxu0 %v3603_v0  ;;  %3584 = vmatprep.subr.mxu1 %v3603_v0 }
 0x112   :  { %3566 = vmatpush3.msra.mxu0 %v289_v37  ;;  %3585 = vmatpush3.msra.mxu1 %v297_v38 }
 0x113   :  { %3567 = vmatprep.subr.mxu0 %v3603_v0  ;;  %3586 = vmatprep.subr.mxu1 %v3603_v0 }
 0x114   :  { %3568 = vmatpush3.msra.mxu0 %v288_v39  ;;  %3587 = vmatpush3.msra.mxu1 %v296_v40 }
 0x115   :  { %3569 = vmatprep.subr.mxu0 %v3603_v0  ;;  %3588 = vmatprep.subr.mxu1 %v3603_v0 }
 0x116   :  { %3570 = vmatpush3.msra.mxu0 %v287_v41  ;;  %3589 = vmatpush3.msra.mxu1 %v295_v42 }
 0x117   :  { %3571 = vmatprep.subr.mxu0 %v3603_v0  ;;  %3590 = vmatprep.subr.mxu1 %v3603_v0 }
 0x118   :  { %3572 = vmatpush3.msra.mxu0 %v286_v43  ;;  %3591 = vmatpush3.msra.mxu1 %v294_v44 }
 0x119   :  { %3573 = vmatprep.subr.mxu0 %v3603_v0  ;;  %3592 = vmatprep.subr.mxu1 %v3603_v0 }
 0x11a   :  { %3574 = vmatpush3.msra.mxu0 %v285_v45  ;;  %3593 = vmatpush3.msra.mxu1 %v293_v46  ;;  %v953_v49 = vpop.f32.mrf.mxu0  ;;  %v1026_v50 = vpop.f32.mrf.mxu1 }
 0x11b   :  { %3575 = vmatprep.subr.mxu0 %v3603_v0  ;;  %3594 = vmatprep.subr.mxu1 %v3603_v0  ;;  %2645 = vst.msk [vmem:[%s4966_s2 + $0x10] sm:$0x3] %vm2636_vm2, %v953_v49  ;;  %2646 = vst.msk [vmem:[%s4966_s2 + $0x12] sm:$0x3] %vm2636_vm2, %v1026_v50 }
 0x11c   :  { %3576 = vmatpush3.msra.mxu0 %v284_v47  ;;  %3595 = vmatpush3.msra.mxu1 %v292_v48  ;;  %v3163_v53 = vpop.f32.mrf.mxu0  ;;  %v3182_v54 = vpop.f32.mrf.mxu1 }
 0x11d   :  { %3577 = vmatprep.subr.mxu0 %v3603_v0  ;;  %3596 = vmatprep.subr.mxu1 %v3603_v0 }
 0x11e   :  { %3578 = vmatpush3.msra.mxu0 %v283_v51  ;;  %3579 = vmatprep.mubr.msk.f32.mxu0 %vm3604_vm1, %v3603_v0 }
 0x11f   :  { %3597 = vmatpush3.msra.mxu1 %v291_v52  ;;  %3598 = vmatprep.mubr.msk.f32.mxu1 %vm3604_vm1, %v3603_v0 }
 0x120   :  { %3580 = vmatmul.mubr.msk.f32.vlgmr.msra.gmra.mxu0 %vm299_vm0, %v41_v55  ;;  %3599 = vmatmul.mubr.msk.f32.vlgmr.msra.gmra.mxu1 %vm299_vm0, %v42_v56 }
 0x12c   :  { %v1099_v57 = vpop.f32.mrf.mxu0  ;;  %v1172_v58 = vpop.f32.mrf.mxu1 }
 0x12d   :  { %2647 = vst.msk [vmem:[%s4966_s2 + $0x14] sm:$0x3] %vm2636_vm2, %v1099_v57  ;;  %2648 = vst.msk [vmem:[%s4966_s2 + $0x16] sm:$0x3] %vm2636_vm2, %v1172_v58 }
 0x12e   :  { %v3201_v59 = vpop.f32.mrf.mxu0  ;;  %v3220_v60 = vpop.f32.mrf.mxu1 }
 0x13e   :  { %v1245_v61 = vpop.f32.mrf.mxu0  ;;  %v1318_v0 = vpop.f32.mrf.mxu1 }
 0x13f   :  { %2649 = vst.msk [vmem:[%s4966_s2 + $0x18] sm:$0x3] %vm2636_vm2, %v1245_v61  ;;  %2650 = vst.msk [vmem:[%s4966_s2 + $0x1a] sm:$0x3] %vm2636_vm2, %v1318_v0 }
 0x140   :  { %v3239_v62 = vpop.f32.mrf.mxu0  ;;  %v3258_v63 = vpop.f32.mrf.mxu1 }
 0x150   :  { %v1391_v1 = vpop.f32.mrf.mxu0  ;;  %v1464_v2 = vpop.f32.mrf.mxu1 }
 0x151   :  { %2651 = vst.msk [vmem:[%s4966_s2 + $0x1c] sm:$0x3] %vm2636_vm2, %v1391_v1  ;;  %2652 = vst.msk [vmem:[%s4966_s2 + $0x1e] sm:$0x3] %vm2636_vm2, %v1464_v2 }
 0x152   :  { %v3277_v3 = vpop.f32.mrf.mxu0  ;;  %v3296_v4 = vpop.f32.mrf.mxu1 }
 0x162   :  { %v1537_v5 = vpop.f32.mrf.mxu0  ;;  %v1610_v6 = vpop.f32.mrf.mxu1 }
 0x163   :  { %2653 = vst.msk [vmem:[%s4966_s2 + $0x20] sm:$0x3] %vm2636_vm2, %v1537_v5  ;;  %2654 = vst.msk [vmem:[%s4966_s2 + $0x22] sm:$0x3] %vm2636_vm2, %v1610_v6 }
 0x164   :  { %v3315_v7 = vpop.f32.mrf.mxu0  ;;  %v3334_v8 = vpop.f32.mrf.mxu1 }
 0x174   :  { %v1683_v9 = vpop.f32.mrf.mxu0  ;;  %v1756_v10 = vpop.f32.mrf.mxu1 }
 0x175   :  { %2655 = vst.msk [vmem:[%s4966_s2 + $0x24] sm:$0x3] %vm2636_vm2, %v1683_v9  ;;  %2656 = vst.msk [vmem:[%s4966_s2 + $0x26] sm:$0x3] %vm2636_vm2, %v1756_v10 }
 0x176   :  { %v3353_v11 = vpop.f32.mrf.mxu0  ;;  %v3372_v12 = vpop.f32.mrf.mxu1 }
 0x186   :  { %v1829_v13 = vpop.f32.mrf.mxu0  ;;  %v1902_v14 = vpop.f32.mrf.mxu1 }
 0x187   :  { %2657 = vst.msk [vmem:[%s4966_s2 + $0x28] sm:$0x3] %vm2636_vm2, %v1829_v13  ;;  %2658 = vst.msk [vmem:[%s4966_s2 + $0x2a] sm:$0x3] %vm2636_vm2, %v1902_v14 }
 0x188   :  { %v3391_v15 = vpop.f32.mrf.mxu0  ;;  %v3410_v16 = vpop.f32.mrf.mxu1 }
 0x198   :  { %v1975_v17 = vpop.f32.mrf.mxu0  ;;  %v2048_v18 = vpop.f32.mrf.mxu1 }
 0x199   :  { %2659 = vst.msk [vmem:[%s4966_s2 + $0x2c] sm:$0x3] %vm2636_vm2, %v1975_v17  ;;  %2660 = vst.msk [vmem:[%s4966_s2 + $0x2e] sm:$0x3] %vm2636_vm2, %v2048_v18 }
 0x19a   :  { %v3429_v19 = vpop.f32.mrf.mxu0  ;;  %v3448_v20 = vpop.f32.mrf.mxu1 }
 0x1aa   :  { %v2121_v21 = vpop.f32.mrf.mxu0  ;;  %v2194_v22 = vpop.f32.mrf.mxu1 }
 0x1ab   :  { %2661 = vst.msk [vmem:[%s4966_s2 + $0x30] sm:$0x3] %vm2636_vm2, %v2121_v21  ;;  %2662 = vst.msk [vmem:[%s4966_s2 + $0x32] sm:$0x3] %vm2636_vm2, %v2194_v22 }
 0x1ac   :  { %v3467_v23 = vpop.f32.mrf.mxu0  ;;  %v3486_v24 = vpop.f32.mrf.mxu1 }
 0x1bc   :  { %v2267_v25 = vpop.f32.mrf.mxu0  ;;  %v2340_v26 = vpop.f32.mrf.mxu1 }
 0x1bd   :  { %2663 = vst.msk [vmem:[%s4966_s2 + $0x34] sm:$0x3] %vm2636_vm2, %v2267_v25  ;;  %2664 = vst.msk [vmem:[%s4966_s2 + $0x36] sm:$0x3] %vm2636_vm2, %v2340_v26 }
 0x1be   :  { %v3505_v27 = vpop.f32.mrf.mxu0  ;;  %v3524_v28 = vpop.f32.mrf.mxu1 }
 0x1ce   :  { %v2413_v29 = vpop.f32.mrf.mxu0  ;;  %v2486_v30 = vpop.f32.mrf.mxu1 }
 0x1cf   :  { %2665 = vst.msk [vmem:[%s4966_s2 + $0x38] sm:$0x3] %vm2636_vm2, %v2413_v29  ;;  %2666 = vst.msk [vmem:[%s4966_s2 + $0x3a] sm:$0x3] %vm2636_vm2, %v2486_v30 }
 0x1d0   :  { %v3543_v31 = vpop.f32.mrf.mxu0  ;;  %v3562_v32 = vpop.f32.mrf.mxu1 }
 0x1e0   :  { %v2559_v33 = vpop.f32.mrf.mxu0  ;;  %v2632_v34 = vpop.f32.mrf.mxu1 }
 0x1e1   :  { %2667 = vst.msk [vmem:[%s4966_s2 + $0x3c] sm:$0x3] %vm2636_vm2, %v2559_v33  ;;  %2668 = vst.msk [vmem:[%s4966_s2 + $0x3e] sm:$0x3] %vm2636_vm2, %v2632_v34 }
 0x1e2   :  { %v3581_v35 = vpop.f32.mrf.mxu0  ;;  %v3600_v36 = vpop.f32.mrf.mxu1 }

// kernel: fnn2d_mae_forward.27
= control target key start
LH: loop header
LB: loop body
LE: loop exit
PB: predicated region body
PF: predicated region fallthrough
CT: control target
= control target key end

     0   :  { %vm233_vm0 = vcmask 130048   ;;  %s629_s1 = inlined_call_operand.vmem [shape: f32[128,16], index: 1, kind: input, shape index: {}]   ;;  %s630_s0 = inlined_call_operand.vmem [shape: f32[128,128], index: 0, kind: input, shape index: {}]   ;;  %s631_s2 = inlined_call_operand.vmem [shape: f32[1,16], index: 2, kind: input, shape index: {}]   ;;  %s632_s3 = inlined_call_operand.vmem [shape: f32[128,16], index: 3, kind: input, shape index: {}]   ;;  %s633_s4 = inlined_call_operand.vmem [shape: f32[128,16], index: 4, kind: output, shape index: {}]  }
   0x1   :  { %v48_v0 = vld [vmem:[%s629_s1 + $0x78] sm:$0xff]  ;;  %v47_v1 = vld [vmem:[%s629_s1 + $0x70] sm:$0xff]  ;;  %v46_v2 = vld [vmem:[%s629_s1 + $0x68] sm:$0xff] }
   0x2   :  { %287 = vmatprep.subr.mxu0 %v48_v0  ;;  %343 = vmatprep.subr.mxu1 %v48_v0  ;;  %v45_v3 = vld [vmem:[%s629_s1 + $0x60] sm:$0xff]  ;;  %v44_v4 = vld [vmem:[%s629_s1 + $0x58] sm:$0xff]  ;;  %v43_v5 = vld [vmem:[%s629_s1 + $0x50] sm:$0xff] }
   0x3   :  { %288 = vmatpush3.msra.mxu0 %v48_v0  ;;  %359 = vmatpush3.msra.mxu1 %v48_v0  ;;  %v42_v6 = vld [vmem:[%s629_s1 + $0x48] sm:$0xff]  ;;  %v41_v7 = vld [vmem:[%s629_s1 + $0x40] sm:$0xff]  ;;  %v40_v8 = vld [vmem:[%s629_s1 + $0x38] sm:$0xff] }
   0x4   :  { %289 = vmatprep.subr.mxu0 %v47_v1  ;;  %344 = vmatprep.subr.mxu1 %v47_v1  ;;  %v39_v9 = vld [vmem:[%s629_s1 + $0x30] sm:$0xff]  ;;  %v38_v10 = vld [vmem:[%s629_s1 + $0x28] sm:$0xff]  ;;  %v37_v11 = vld [vmem:[%s629_s1 + $0x20] sm:$0xff] }
   0x5   :  { %290 = vmatpush3.msra.mxu0 %v47_v1  ;;  %360 = vmatpush3.msra.mxu1 %v47_v1  ;;  %v36_v12 = vld [vmem:[%s629_s1 + $0x18] sm:$0xff]  ;;  %v35_v13 = vld [vmem:[%s629_s1 + $0x10] sm:$0xff]  ;;  %v34_v14 = vld [vmem:[%s629_s1 + $0x8] sm:$0xff] }
   0x6   :  { %291 = vmatprep.subr.mxu0 %v46_v2  ;;  %345 = vmatprep.subr.mxu1 %v46_v2  ;;  %v33_v15 = vld [vmem:[%s629_s1] sm:$0xff]  ;;  %v18_v18 = vld [vmem:[%s630_s0 + $0x8] sm:$0xff]  ;;  %v19_v20 = vld [vmem:[%s630_s0 + $0x10] sm:$0xff] }
   0x7   :  { %292 = vmatpush3.msra.mxu0 %v46_v2  ;;  %361 = vmatpush3.msra.mxu1 %v46_v2  ;;  %v17_v16 = vld [vmem:[%s630_s0] sm:$0xff]  ;;  %v26_v19 = vld [vmem:[%s630_s0 + $0x48] sm:$0xff]  ;;  %v27_v21 = vld [vmem:[%s630_s0 + $0x50] sm:$0xff] }
   0x8   :  { %293 = vmatprep.subr.mxu0 %v45_v3  ;;  %346 = vmatprep.subr.mxu1 %v45_v3  ;;  %v25_v17 = vld [vmem:[%s630_s0 + $0x40] sm:$0xff]  ;;  %v20_v22 = vld [vmem:[%s630_s0 + $0x18] sm:$0xff]  ;;  %v22_v26 = vld [vmem:[%s630_s0 + $0x28] sm:$0xff] }
   0x9   :  { %294 = vmatpush3.msra.mxu0 %v45_v3  ;;  %362 = vmatpush3.msra.mxu1 %v45_v3  ;;  %v28_v23 = vld [vmem:[%s630_s0 + $0x58] sm:$0xff]  ;;  %v21_v24 = vld [vmem:[%s630_s0 + $0x20] sm:$0xff]  ;;  %v30_v27 = vld [vmem:[%s630_s0 + $0x68] sm:$0xff] }
   0xa   :  { %295 = vmatprep.subr.mxu0 %v44_v4  ;;  %347 = vmatprep.subr.mxu1 %v44_v4  ;;  %v29_v25 = vld [vmem:[%s630_s0 + $0x60] sm:$0xff]  ;;  %v23_v28 = vld [vmem:[%s630_s0 + $0x30] sm:$0xff]  ;;  %v24_v30 = vld [vmem:[%s630_s0 + $0x38] sm:$0xff] }
   0xb   :  { %296 = vmatpush3.msra.mxu0 %v44_v4  ;;  %363 = vmatpush3.msra.mxu1 %v44_v4  ;;  %v31_v29 = vld [vmem:[%s630_s0 + $0x70] sm:$0xff]  ;;  %v32_v31 = vld [vmem:[%s630_s0 + $0x78] sm:$0xff]  ;;  %v499_v32 = vld [vmem:[%s631_s2] ss:$0 sm:$0xff] }
   0xc   :  { %297 = vmatprep.subr.mxu0 %v43_v5  ;;  %348 = vmatprep.subr.mxu1 %v43_v5  ;;  %v202_v34 = vld [vmem:[%s632_s3 + $0x8] sm:$0xff]  ;;  %v201_v40 = vld [vmem:[%s632_s3] sm:$0xff]  ;;  %v204_v48 = vld [vmem:[%s632_s3 + $0x18] sm:$0xff] }
   0xd   :  { %298 = vmatpush3.msra.mxu0 %v43_v5  ;;  %364 = vmatpush3.msra.mxu1 %v43_v5  ;;  %v210_v36 = vld [vmem:[%s632_s3 + $0x48] sm:$0xff]  ;;  %v209_v42 = vld [vmem:[%s632_s3 + $0x40] sm:$0xff]  ;;  %v212_v50 = vld [vmem:[%s632_s3 + $0x58] sm:$0xff] }
   0xe   :  { %299 = vmatprep.subr.mxu0 %v42_v6  ;;  %349 = vmatprep.subr.mxu1 %v42_v6  ;;  %v203_v56 = vld [vmem:[%s632_s3 + $0x10] sm:$0xff]  ;;  %v206_v0 = vld [vmem:[%s632_s3 + $0x28] sm:$0xff] }
   0xf   :  { %300 = vmatpush3.msra.mxu0 %v42_v6  ;;  %365 = vmatpush3.msra.mxu1 %v42_v6  ;;  %v211_v58 = vld [vmem:[%s632_s3 + $0x50] sm:$0xff]  ;;  %v214_v2 = vld [vmem:[%s632_s3 + $0x68] sm:$0xff] }
  0x10   :  { %301 = vmatprep.subr.mxu0 %v41_v7  ;;  %350 = vmatprep.subr.mxu1 %v41_v7 }
  0x11   :  { %302 = vmatpush3.msra.mxu0 %v41_v7  ;;  %366 = vmatpush3.msra.mxu1 %v41_v7 }
  0x12   :  { %303 = vmatprep.subr.mxu0 %v40_v8  ;;  %351 = vmatprep.subr.mxu1 %v40_v8 }
  0x13   :  { %304 = vmatpush3.msra.mxu0 %v40_v8  ;;  %367 = vmatpush3.msra.mxu1 %v40_v8  ;;  %v205_v8 = vld [vmem:[%s632_s3 + $0x20] sm:$0xff] }
  0x14   :  { %305 = vmatprep.subr.mxu0 %v39_v9  ;;  %352 = vmatprep.subr.mxu1 %v39_v9 }
  0x15   :  { %306 = vmatpush3.msra.mxu0 %v39_v9  ;;  %368 = vmatpush3.msra.mxu1 %v39_v9 }
  0x16   :  { %307 = vmatprep.subr.mxu0 %v38_v10  ;;  %353 = vmatprep.subr.mxu1 %v38_v10 }
  0x17   :  { %308 = vmatpush3.msra.mxu0 %v38_v10  ;;  %369 = vmatpush3.msra.mxu1 %v38_v10  ;;  %v213_v10 = vld [vmem:[%s632_s3 + $0x60] sm:$0xff] }
  0x18   :  { %309 = vmatprep.subr.mxu0 %v37_v11  ;;  %354 = vmatprep.subr.mxu1 %v37_v11 }
  0x19   :  { %310 = vmatpush3.msra.mxu0 %v37_v11  ;;  %370 = vmatpush3.msra.mxu1 %v37_v11 }
  0x1a   :  { %311 = vmatprep.subr.mxu0 %v36_v12  ;;  %355 = vmatprep.subr.mxu1 %v36_v12 }
  0x1b   :  { %312 = vmatpush3.msra.mxu0 %v36_v12  ;;  %371 = vmatpush3.msra.mxu1 %v36_v12 }
  0x1c   :  { %313 = vmatprep.subr.mxu0 %v35_v13  ;;  %356 = vmatprep.subr.mxu1 %v35_v13 }
  0x1d   :  { %314 = vmatpush3.msra.mxu0 %v35_v13  ;;  %372 = vmatpush3.msra.mxu1 %v35_v13 }
  0x1e   :  { %315 = vmatprep.subr.mxu0 %v34_v14  ;;  %357 = vmatprep.subr.mxu1 %v34_v14 }
  0x1f   :  { %316 = vmatpush3.msra.mxu0 %v34_v14  ;;  %373 = vmatpush3.msra.mxu1 %v34_v14 }
  0x20   :  { %317 = vmatprep.subr.mxu0 %v33_v15  ;;  %358 = vmatprep.subr.mxu1 %v33_v15 }
  0x21   :  { %318 = vmatpush3.msra.mxu0 %v33_v15  ;;  %374 = vmatpush3.msra.mxu1 %v33_v15 }
  0x22   :  { %319 = vmatprep.mubr.f32.mxu0 %v17_v16  ;;  %331 = vmatprep.mubr.f32.mxu1 %v25_v17  ;;  %v208_v16 = vld [vmem:[%s632_s3 + $0x38] sm:$0xff] }
  0x23   :  { %320 = vmatmul.mubr.f32.vlgmr.msra.gmra.mxu0 %v18_v18  ;;  %332 = vmatmul.mubr.f32.vlgmr.msra.gmra.mxu1 %v26_v19  ;;  %v216_v18 = vld [vmem:[%s632_s3 + $0x78] sm:$0xff] }
  0x24   :  { %322 = vmatprep.mubr.f32.mxu0 %v19_v20  ;;  %334 = vmatprep.mubr.f32.mxu1 %v27_v21 }
  0x27   :  { %323 = vmatmul.mubr.f32.gmra.mxu0 %v20_v22  ;;  %335 = vmatmul.mubr.f32.gmra.mxu1 %v28_v23 }
  0x28   :  { %325 = vmatprep.mubr.f32.mxu0 %v21_v24  ;;  %337 = vmatprep.mubr.f32.mxu1 %v29_v25  ;;  %v207_v24 = vld [vmem:[%s632_s3 + $0x30] sm:$0xff] }
  0x2b   :  { %326 = vmatmul.mubr.f32.gmra.mxu0 %v22_v26  ;;  %338 = vmatmul.mubr.f32.gmra.mxu1 %v30_v27  ;;  %v215_v26 = vld [vmem:[%s632_s3 + $0x70] sm:$0xff] }
  0x2c   :  { %328 = vmatprep.mubr.f32.mxu0 %v23_v28  ;;  %340 = vmatprep.mubr.f32.mxu1 %v31_v29 }
  0x2f   :  { %329 = vmatmul.mubr.f32.gmra.mxu0 %v24_v30  ;;  %341 = vmatmul.mubr.f32.gmra.mxu1 %v32_v31 }
  0xe3   :  { %v321_v33 = vpop.f32.mrf.mxu0  ;;  %v333_v35 = vpop.f32.mrf.mxu1 }
  0xe4   :  { %v128_v37 = vadd.f32 %v321_v33, %v499_v32  ;;  %v168_v38 = vadd.f32 %v333_v35, %v499_v32 }
  0xe5   :  { %v122_v39 = vpop.f32.mrf.mxu0  ;;  %v162_v41 = vpop.f32.mrf.mxu1 }
  0xe6   :  { %v218_v43 = vadd.f32 %v202_v34, %v128_v37  ;;  %v226_v44 = vadd.f32 %v210_v36, %v168_v38  ;;  %v123_v45 = vadd.f32 %v499_v32, %v122_v39  ;;  %v163_v46 = vadd.f32 %v499_v32, %v162_v41 }
  0xe7   :  { %v324_v47 = vpop.f32.mrf.mxu0  ;;  %v336_v49 = vpop.f32.mrf.mxu1 }
  0xe8   :  { %235 = vst.msk [vmem:[%s633_s4 + $0x8] sm:$0xff] %vm233_vm0, %v218_v43  ;;  %243 = vst.msk [vmem:[%s633_s4 + $0x48] sm:$0xff] %vm233_vm0, %v226_v44  ;;  %v217_v51 = vadd.f32 %v201_v40, %v123_v45  ;;  %v225_v52 = vadd.f32 %v209_v42, %v163_v46  ;;  %v138_v53 = vadd.f32 %v324_v47, %v499_v32 }
  0xe9   :  { %v178_v54 = vadd.f32 %v336_v49, %v499_v32  ;;  %v132_v55 = vpop.f32.mrf.mxu0  ;;  %v172_v57 = vpop.f32.mrf.mxu1 }
  0xea   :  { %234 = vst.msk [vmem:[%s633_s4] sm:$0xff] %vm233_vm0, %v217_v51  ;;  %242 = vst.msk [vmem:[%s633_s4 + $0x40] sm:$0xff] %vm233_vm0, %v225_v52  ;;  %v220_v59 = vadd.f32 %v204_v48, %v138_v53  ;;  %v133_v61 = vadd.f32 %v499_v32, %v132_v55  ;;  %v173_v62 = vadd.f32 %v499_v32, %v172_v57 }
  0xeb   :  { %v228_v60 = vadd.f32 %v212_v50, %v178_v54  ;;  %v327_v63 = vpop.f32.mrf.mxu0  ;;  %v339_v1 = vpop.f32.mrf.mxu1 }
  0xec   :  { %237 = vst.msk [vmem:[%s633_s4 + $0x18] sm:$0xff] %vm233_vm0, %v220_v59  ;;  %v219_v3 = vadd.f32 %v203_v56, %v133_v61  ;;  %v227_v4 = vadd.f32 %v211_v58, %v173_v62  ;;  %v148_v5 = vadd.f32 %v327_v63, %v499_v32  ;;  %v188_v6 = vadd.f32 %v339_v1, %v499_v32 }
  0xed   :  { %245 = vst.msk [vmem:[%s633_s4 + $0x58] sm:$0xff] %vm233_vm0, %v228_v60  ;;  %v142_v7 = vpop.f32.mrf.mxu0  ;;  %v182_v9 = vpop.f32.mrf.mxu1 }
  0xee   :  { %236 = vst.msk [vmem:[%s633_s4 + $0x10] sm:$0xff] %vm233_vm0, %v219_v3  ;;  %244 = vst.msk [vmem:[%s633_s4 + $0x50] sm:$0xff] %vm233_vm0, %v227_v4  ;;  %v222_v11 = vadd.f32 %v206_v0, %v148_v5  ;;  %v230_v12 = vadd.f32 %v214_v2, %v188_v6  ;;  %v143_v13 = vadd.f32 %v499_v32, %v142_v7 }
  0xef   :  { %v183_v14 = vadd.f32 %v499_v32, %v182_v9  ;;  %v330_v15 = vpop.f32.mrf.mxu0  ;;  %v342_v17 = vpop.f32.mrf.mxu1 }
  0xf0   :  { %239 = vst.msk [vmem:[%s633_s4 + $0x28] sm:$0xff] %vm233_vm0, %v222_v11  ;;  %247 = vst.msk [vmem:[%s633_s4 + $0x68] sm:$0xff] %vm233_vm0, %v230_v12  ;;  %v221_v19 = vadd.f32 %v205_v8, %v143_v13  ;;  %v158_v21 = vadd.f32 %v330_v15, %v499_v32  ;;  %v198_v22 = vadd.f32 %v342_v17, %v499_v32 }
  0xf1   :  { %v229_v20 = vadd.f32 %v213_v10, %v183_v14  ;;  %v152_v23 = vpop.f32.mrf.mxu0  ;;  %v192_v25 = vpop.f32.mrf.mxu1 }
  0xf2   :  { %238 = vst.msk [vmem:[%s633_s4 + $0x20] sm:$0xff] %vm233_vm0, %v221_v19  ;;  %v224_v27 = vadd.f32 %v208_v16, %v158_v21  ;;  %v232_v28 = vadd.f32 %v216_v18, %v198_v22  ;;  %v153_v29 = vadd.f32 %v499_v32, %v152_v23  ;;  %v193_v30 = vadd.f32 %v499_v32, %v192_v25 }
  0xf3   :  { %246 = vst.msk [vmem:[%s633_s4 + $0x60] sm:$0xff] %vm233_vm0, %v229_v20 }
  0xf4   :  { %241 = vst.msk [vmem:[%s633_s4 + $0x38] sm:$0xff] %vm233_vm0, %v224_v27  ;;  %249 = vst.msk [vmem:[%s633_s4 + $0x78] sm:$0xff] %vm233_vm0, %v232_v28  ;;  %v223_v31 = vadd.f32 %v207_v24, %v153_v29  ;;  %v231_v33 = vadd.f32 %v215_v26, %v193_v30 }
  0xf6   :  { %240 = vst.msk [vmem:[%s633_s4 + $0x30] sm:$0xff] %vm233_vm0, %v223_v31  ;;  %248 = vst.msk [vmem:[%s633_s4 + $0x70] sm:$0xff] %vm233_vm0, %v231_v33 }

</bundles_post_ra>
